<compile_context>
chip_gen: v6e
topology: v6e:2x2x1
jax: 0.10.0
libtpu: 0.0.40
codegen_flags: <defaults>
</compile_context>

<pallas_src>
import functools
import numpy as np
import jax
import jax.numpy as jnp
from jax import lax
from jax.experimental import pallas as pl
from jax.experimental.pallas import tpu as pltpu

EPS = 1e-5
K = 3
LANES = 128


# ----------------------------- host-side helpers ----------------------------

def _tap_offsets(W):
    """Flat row offsets of the 9 stencil taps for (b, h, w) row-major rows."""
    return [(dy - 1) * W + (dx - 1) for dy in range(K) for dx in range(K)]


def _build_masks(B, H, W):
    """(R, 9) validity mask: mask[r, t] == 1 iff tap t of row r is in-bounds."""
    R = B * H * W
    m = np.zeros((R, K * K), np.float32)
    for b in range(B):
        for h in range(H):
            for w in range(W):
                r = b * H * W + h * W + w
                for dy in range(K):
                    for dx in range(K):
                        if 0 <= h + dy - 1 < H and 0 <= w + dx - 1 < W:
                            m[r, dy * K + dx] = 1.0
    return m


class _ParamPacker:
    """Packs many small parameters into one lane-dense (rows, 128) slab."""

    def __init__(self, row_align=8):
        self.row_align = row_align
        self.rows = 0
        self.layout = {}
        self._chunks = []

    def add(self, name, arr):
        arr = np.asarray(arr, np.float32)
        if arr.ndim == 1:
            arr = arr[None, :]
        assert arr.ndim == 2 and arr.shape[1] <= LANES, (name, arr.shape)
        self.layout[name] = (int(self.rows), (int(arr.shape[0]), int(arr.shape[1])))
        self._chunks.append((self.rows, arr))
        a = self.row_align
        self.rows += -(-arr.shape[0] // a) * a          # aligned start per entry

    def build(self):
        slab = np.zeros((max(self.rows, self.row_align), LANES), np.float32)
        for row, arr in self._chunks:
            slab[row:row + arr.shape[0], :arr.shape[1]] = arr
        return slab


def init_packed_params(key, B, H, W):
    """Deterministic synthetic parameters (shapes follow ImgEncoder.__init__),
    packed into a single slab + a static layout table."""
    chans = [(1, 16), (16, 8), (8, 1)]              # (in_channels, output_channels)
    R = B * H * W
    keys = iter(jax.random.split(key, 16))

    def nrm(shape, scale=0.1):
        return np.asarray(scale * jax.random.normal(next(keys), shape, jnp.float32))

    # 16-row alignment so bf16 slab slices start on packed-sublane boundaries.
    pk = _ParamPacker(row_align=16)
    for blk, (cin, cout) in enumerate(chans):
        # Conv weights flattened so row = tap*Cin + c (matches im2col layout).
        # Conv biases are OMITTED: each conv feeds a training-mode BatchNorm,
        # whose mean subtraction cancels a per-channel constant exactly.
        pk.add(f"b{blk}_w1", nrm((9 * cin, cout)))   # conv1 3x3
        pk.add(f"b{blk}_w2", nrm((9 * cout, cout)))  # conv2 3x3
        pk.add(f"b{blk}_w3", nrm((cin, cout)))       # conv3 1x1
        # BN affine params stacked: rows = [g1, be1, g2, be2, g3, be3].
        bn = np.zeros((6, cout), np.float32)
        bn[0::2] = 1.0                               # torch init: gamma=1, beta=0
        pk.add(f"b{blk}_bn", bn)

    wl = nrm((16, 8))                                # == torch Linear(16,8).weight.T
    pk.add("wl_big", np.tile(wl, (B, 1)))            # (R, 8): per-row Linear weight
    head = np.zeros((3, 8), np.float32)              # rows = [bl, ln_gamma, ln_beta]
    head[0] = nrm((8,))
    head[1] = 1.0
    pk.add("head_vecs", head)

    bsum = np.zeros((B, R), np.float32)              # (B, R) row -> batch selector
    for b in range(B):
        bsum[b, b * H * W:(b + 1) * H * W] = 1.0
    pk.add("bsum", bsum)

    # Pre-expanded stencil masks, one per needed Cin width (lane-group split
    # when 9*Cin > 128): mask_exp[r, t*Cin + c] = base[r, t].
    base_mask = _build_masks(B, H, W)                # (R, 9)
    for cin in sorted({c for pair in chans for c in pair}):
        exp = np.repeat(base_mask, cin, axis=1)      # (R, 9*cin)
        if exp.shape[1] <= LANES:
            pk.add(f"mask{cin}", exp)
        else:
            pk.add(f"mask{cin}_a", exp[:, :LANES])
            pk.add(f"mask{cin}_b", exp[:, LANES:])

    return pk.build(), pk.layout, chans


# ------------------------------- Pallas kernel -------------------------------

def _img_encoder_kernel(layout, offsets, chans, x_ref, slab_ref, o_ref):
    R = x_ref.shape[0]

    def get(name):                                   # static slice of the slab
        row, (r, c) = layout[name]
        return slab_ref[row:row + r, :c].astype(jnp.float32)

    mask_cache = {}

    def get_mask(cin):                               # (R, 9*cin) expanded mask
        if cin not in mask_cache:
            if 9 * cin <= LANES:
                mask_cache[cin] = get(f"mask{cin}")
            else:                                    # 144-wide: two lane groups
                mask_cache[cin] = jnp.concatenate(
                    [get(f"mask{cin}_a"), get(f"mask{cin}_b")], axis=1)
        return mask_cache[cin]

    def conv3x3(x, w_flat, mask_exp):
        # im2col via 9 sublane rotations (wrapped rows are all out-of-image taps
        # and get zeroed by the mask), one full-width mask multiply, ONE matmul.
        cols = [x if off == 0 else pltpu.roll(x, (-off) % R, axis=0)
                for off in offsets]
        x2 = jnp.concatenate(cols, axis=1) * mask_exp        # (R, 9*cin)
        return jnp.dot(x2, w_flat, preferred_element_type=jnp.float32)

    def conv1x1(x, w):
        if w.shape[0] == 1:                          # Cin == 1: pure lane broadcast
            return x * w
        return jnp.dot(x, w, preferred_element_type=jnp.float32)

    def bn_relu(y, g, be):
        # BatchNorm2d training-mode forward (batch stats over rows), fused with
        # ReLU as relu(y*s + t); one-pass stats, rsqrt on the EUP.
        mu = jnp.mean(y, axis=0, keepdims=True)
        var = jnp.mean(y * y, axis=0, keepdims=True) - mu * mu
        s = g * lax.rsqrt(var + EPS)
        return jnp.maximum(y * s + (be - mu * s), 0.0)

    act = x_ref[...]                                 # (R, Cin0), already f32
    for blk, (cin, cout) in enumerate(chans):
        bn = get(f"b{blk}_bn")                       # (6, cout): g1,be1,g2,be2,g3,be3
        y = bn_relu(conv3x3(act, get(f"b{blk}_w1"), get_mask(cin)),
                    bn[0:1, :], bn[1:2, :])
        y = bn_relu(conv3x3(y, get(f"b{blk}_w2"), get_mask(cout)),
                    bn[2:3, :], bn[3:4, :])
        z = bn_relu(conv1x1(act, get(f"b{blk}_w3")),
                    bn[4:5, :], bn[5:6, :])
        act = z + y                                  # residual add (no post-ReLU)

    # Head: x.view(B,16) @ Wl + bl, then LayerNorm(8).  The (R,1)->(B,16)
    # regroup is folded into a (B,R) selector matmul: no in-kernel reshape.
    head = get("head_vecs")                          # (3, 8): bl, ln_g, ln_b
    h = jnp.dot(get("bsum"), act * get("wl_big"),
                preferred_element_type=jnp.float32) + head[0:1, :]   # (B, 8)
    mu = jnp.mean(h, axis=-1, keepdims=True)
    var = jnp.mean(h * h, axis=-1, keepdims=True) - mu * mu
    o_ref[...] = (h - mu) * lax.rsqrt(var + EPS) * head[1:2, :] + head[2:3, :]


# ------------------------------- JAX wrapper ---------------------------------

def make_forward(layout, offsets, chans, B, H, W, slab_bytes):
    kernel = functools.partial(_img_encoder_kernel, layout, offsets, chans)
    vmem = pl.BlockSpec(memory_space=pltpu.MemorySpace.VMEM)
    R = B * H * W

    flops = 0
    for cin, cout in chans:
        flops += 2 * R * (9 * cin) * cout            # conv1 (3x3)
        flops += 2 * R * (9 * cout) * cout           # conv2 (3x3)
        flops += 2 * R * cin * cout                  # conv3 (1x1)
    flops += 2 * B * R * 8                           # head selector matmul
    trans = sum(3 * cout for _, cout in chans) + 8   # rsqrt count (BN x3/blk + LN)

    # NOTE: for realistic workloads (many 2-image batches), add a batch grid
    # axis (one batch per grid step, slab resident via constant index_map) so
    # fixed per-call overhead and the slab DMA are amortized; not needed here.

    @jax.jit
    def forward(x_nchw, slab):
        c = x_nchw.shape[1]
        # NCHW -> (B*H*W, C) channels-last rows.
        x = jnp.transpose(x_nchw, (0, 2, 3, 1)).reshape(R, c)
        return pl.pallas_call(
            kernel,
            out_shape=jax.ShapeDtypeStruct((B, 8), jnp.float32),
            in_specs=[vmem, vmem],
            out_specs=vmem,
            cost_estimate=pl.CostEstimate(
                flops=flops, transcendentals=trans,
                bytes_accessed=slab_bytes + R * c * 4 + B * 8 * 4),
        )(x, slab)

    return forward


# ------------------------- plain-JAX reference check -------------------------

def reference_forward(x_nchw, slab, layout, chans, B, H, W):
    """Reference using real convolutions (validates roll/mask/packing). Uses
    HIGHEST matmul precision so the comparison tolerance can be tight."""
    hp = lax.Precision.HIGHEST

    def get(name):
        row, (r, c) = layout[name]
        return jnp.asarray(slab[row:row + r, :c], jnp.float32)

    def bn_relu(y, g, be):
        mu = jnp.mean(y, axis=(0, 2, 3), keepdims=True)
        var = jnp.mean((y - mu) ** 2, axis=(0, 2, 3), keepdims=True)
        return jnp.maximum((y - mu) * lax.rsqrt(var + EPS) * g.reshape(1, -1, 1, 1)
                           + be.reshape(1, -1, 1, 1), 0.0)

    def conv(a, k):
        return lax.conv_general_dilated(
            a, k, window_strides=(1, 1), padding=((1, 1), (1, 1)),
            dimension_numbers=("NCHW", "OIHW", "NCHW"), precision=hp)

    act = jnp.asarray(x_nchw)
    for blk, (cin, cout) in enumerate(chans):
        bn = get(f"b{blk}_bn")
        w1 = get(f"b{blk}_w1").reshape(3, 3, cin, cout).transpose(3, 2, 0, 1)
        w2 = get(f"b{blk}_w2").reshape(3, 3, cout, cout).transpose(3, 2, 0, 1)
        y = bn_relu(conv(act, w1), bn[0], bn[1])
        y = bn_relu(conv(y, w2), bn[2], bn[3])
        z = jnp.einsum("bchw,co->bohw", act, get(f"b{blk}_w3"), precision=hp)
        z = bn_relu(z, bn[4], bn[5])
        act = z + y
    flat = act.reshape(B, -1)                        # (B, 16): C == 1 after block 3
    head = get("head_vecs")
    h = jnp.dot(flat, get("wl_big")[:H * W, :], precision=hp) + head[0]
    mu = jnp.mean(h, axis=-1, keepdims=True)
    var = jnp.mean((h - mu) ** 2, axis=-1, keepdims=True)
    return (h - mu) * lax.rsqrt(var + EPS) * head[1] + head[2]


if __name__ == "__main__":
    key = jax.random.PRNGKey(0)
    kx, kp = jax.random.split(key)

    # Linear(in_features=16) forces C*H*W == 16 after the blocks => 1x4x4 input.
    B, C, H, W = 2, 1, 4, 4
    x = jax.random.normal(kx, (B, C, H, W), jnp.float32)

    slab_np, layout, chans = init_packed_params(kp, B, H, W)
    slab = jnp.asarray(slab_np, jnp.bfloat16)        # bf16 storage halves slab DMA
    offsets = _tap_offsets(W)

    forward = make_forward(layout, offsets, chans, B, H, W,
                           slab_bytes=int(slab.size * 2))
    out = jax.block_until_ready(forward(x, slab))

    # Sanity check against a true-convolution reference using the SAME
    # bf16-rounded parameter values (so only computation-order error remains).
    # NOTE: BatchNorm uses batch statistics (torch training-mode forward);
    # running-stat updates (a training side effect) are not modeled.
    slab_ref_vals = np.asarray(slab.astype(jnp.float32))
    ref = reference_forward(x, slab_ref_vals, layout, chans, B, H, W)
    err = float(jnp.max(jnp.abs(out - ref)))

    assert out.shape == (B, 8)
    assert bool(jnp.all(jnp.isfinite(out)))
    assert err < 5e-3, f"mismatch vs reference: max|err| = {err}"
    print("KERNEL_OK")
</pallas_src>

<mosaic_0001>
module attributes {stable_mosaic.version = 11 : i64} {
  func.func @_img_encoder_kernel(%arg0: memref<32x1xf32, #tpu.memory_space<vmem>>, %arg1: memref<768x128xbf16, #tpu.memory_space<vmem>>, %arg2: memref<2x8xf32, #tpu.memory_space<vmem>>) attributes {dimension_semantics = [], scalar_prefetch = 0 : i64, scratch_operands = 0 : i64, tpu.core_type = #tpu.core_type<tc>} {
    %c0 = arith.constant 0 : index
    %c0_0 = arith.constant 0 : index
    %0 = vector.load %arg0[%c0, %c0_0] : memref<32x1xf32, #tpu.memory_space<vmem>>, vector<32x1xf32>
    %c176 = arith.constant 176 : index
    %c0_1 = arith.constant 0 : index
    %1 = vector.load %arg1[%c176, %c0_1] : memref<768x128xbf16, #tpu.memory_space<vmem>>, vector<6x16xbf16>
    %2 = arith.extf %1 : vector<6x16xbf16> to vector<6x16xf32>
    %c0_2 = arith.constant 0 : index
    %c0_3 = arith.constant 0 : index
    %3 = vector.load %arg1[%c0_2, %c0_3] : memref<768x128xbf16, #tpu.memory_space<vmem>>, vector<9x16xbf16>
    %4 = arith.extf %3 : vector<9x16xbf16> to vector<9x16xf32>
    %c640 = arith.constant 640 : index
    %c0_4 = arith.constant 0 : index
    %5 = vector.load %arg1[%c640, %c0_4] : memref<768x128xbf16, #tpu.memory_space<vmem>>, vector<32x9xbf16>
    %6 = arith.extf %5 : vector<32x9xbf16> to vector<32x9xf32>
    %c5_i32 = arith.constant 5 : i32
    %7 = tpu.dynamic_rotate %0 by %c5_i32 dim 0 : vector<32x1xf32>, i32 -> vector<32x1xf32>
    %c4_i32 = arith.constant 4 : i32
    %8 = tpu.dynamic_rotate %0 by %c4_i32 dim 0 : vector<32x1xf32>, i32 -> vector<32x1xf32>
    %c3_i32 = arith.constant 3 : i32
    %9 = tpu.dynamic_rotate %0 by %c3_i32 dim 0 : vector<32x1xf32>, i32 -> vector<32x1xf32>
    %c1_i32 = arith.constant 1 : i32
    %10 = tpu.dynamic_rotate %0 by %c1_i32 dim 0 : vector<32x1xf32>, i32 -> vector<32x1xf32>
    %c31_i32 = arith.constant 31 : i32
    %11 = tpu.dynamic_rotate %0 by %c31_i32 dim 0 : vector<32x1xf32>, i32 -> vector<32x1xf32>
    %c29_i32 = arith.constant 29 : i32
    %12 = tpu.dynamic_rotate %0 by %c29_i32 dim 0 : vector<32x1xf32>, i32 -> vector<32x1xf32>
    %c28_i32 = arith.constant 28 : i32
    %13 = tpu.dynamic_rotate %0 by %c28_i32 dim 0 : vector<32x1xf32>, i32 -> vector<32x1xf32>
    %c27_i32 = arith.constant 27 : i32
    %14 = tpu.dynamic_rotate %0 by %c27_i32 dim 0 : vector<32x1xf32>, i32 -> vector<32x1xf32>
    %15 = tpu.concatenate %7, %8, %9, %10, %0, %11, %12, %13, %14 in 1 : vector<32x1xf32>, vector<32x1xf32>, vector<32x1xf32>, vector<32x1xf32>, vector<32x1xf32>, vector<32x1xf32>, vector<32x1xf32>, vector<32x1xf32>, vector<32x1xf32> -> vector<32x9xf32>
    %16 = arith.mulf %15, %6 : vector<32x9xf32>
    %cst = arith.constant dense<0.000000e+00> : vector<32x16xf32>
    %17 = tpu.matmul %16, %4, %cst {dimension_numbers = #tpu.dot_dimension_numbers<[1], [0], [0], [1], [0, 0, 1, 1], [], []>} : vector<32x9xf32>, vector<9x16xf32>, vector<32x16xf32> -> vector<32x16xf32>
    %18 = vector.extract_strided_slice %2 {offsets = [0, 0], sizes = [1, 16], strides = [1, 1]} : vector<6x16xf32> to vector<1x16xf32>
    %19 = vector.extract_strided_slice %2 {offsets = [1, 0], sizes = [1, 16], strides = [1, 1]} : vector<6x16xf32> to vector<1x16xf32>
    %cst_5 = arith.constant dense<0.000000e+00> : vector<16xf32>
    %20 = vector.multi_reduction <add>, %17, %cst_5 [0] : vector<32x16xf32> to vector<16xf32>
    %21 = vector.shape_cast %20 : vector<16xf32> to vector<1x16xf32>
    %cst_6 = arith.constant 3.200000e+01 : f32
    %22 = vector.broadcast %cst_6 : f32 to vector<1x16xf32>
    %23 = arith.divf %21, %22 : vector<1x16xf32>
    %24 = arith.mulf %17, %17 : vector<32x16xf32>
    %cst_7 = arith.constant dense<0.000000e+00> : vector<16xf32>
    %25 = vector.multi_reduction <add>, %24, %cst_7 [0] : vector<32x16xf32> to vector<16xf32>
    %26 = vector.shape_cast %25 : vector<16xf32> to vector<1x16xf32>
    %cst_8 = arith.constant 3.200000e+01 : f32
    %27 = vector.broadcast %cst_8 : f32 to vector<1x16xf32>
    %28 = arith.divf %26, %27 : vector<1x16xf32>
    %29 = arith.mulf %23, %23 : vector<1x16xf32>
    %30 = arith.subf %28, %29 : vector<1x16xf32>
    %cst_9 = arith.constant 9.99999974E-6 : f32
    %31 = vector.broadcast %cst_9 : f32 to vector<1x16xf32>
    %32 = arith.addf %30, %31 : vector<1x16xf32>
    %33 = math.rsqrt %32 : vector<1x16xf32>
    %34 = arith.mulf %18, %33 : vector<1x16xf32>
    %35 = vector.broadcast %34 : vector<1x16xf32> to vector<32x16xf32>
    %36 = arith.mulf %17, %35 : vector<32x16xf32>
    %37 = arith.mulf %23, %34 : vector<1x16xf32>
    %38 = arith.subf %19, %37 : vector<1x16xf32>
    %39 = vector.broadcast %38 : vector<1x16xf32> to vector<32x16xf32>
    %40 = arith.addf %36, %39 : vector<32x16xf32>
    %cst_10 = arith.constant 0.000000e+00 : f32
    %41 = vector.broadcast %cst_10 : f32 to vector<32x16xf32>
    %42 = arith.maximumf %40, %41 : vector<32x16xf32>
    %c16 = arith.constant 16 : index
    %c0_11 = arith.constant 0 : index
    %43 = vector.load %arg1[%c16, %c0_11] : memref<768x128xbf16, #tpu.memory_space<vmem>>, vector<144x16xbf16>
    %44 = arith.extf %43 : vector<144x16xbf16> to vector<144x16xf32>
    %c704 = arith.constant 704 : index
    %c0_12 = arith.constant 0 : index
    %45 = vector.load %arg1[%c704, %c0_12] : memref<768x128xbf16, #tpu.memory_space<vmem>>, vector<32x128xbf16>
    %46 = arith.extf %45 : vector<32x128xbf16> to vector<32x128xf32>
    %c736 = arith.constant 736 : index
    %c0_13 = arith.constant 0 : index
    %47 = vector.load %arg1[%c736, %c0_13] : memref<768x128xbf16, #tpu.memory_space<vmem>>, vector<32x16xbf16>
    %48 = arith.extf %47 : vector<32x16xbf16> to vector<32x16xf32>
    %49 = tpu.concatenate %46, %48 in 1 : vector<32x128xf32>, vector<32x16xf32> -> vector<32x144xf32>
    %c5_i32_14 = arith.constant 5 : i32
    %50 = tpu.dynamic_rotate %42 by %c5_i32_14 dim 0 : vector<32x16xf32>, i32 -> vector<32x16xf32>
    %c4_i32_15 = arith.constant 4 : i32
    %51 = tpu.dynamic_rotate %42 by %c4_i32_15 dim 0 : vector<32x16xf32>, i32 -> vector<32x16xf32>
    %c3_i32_16 = arith.constant 3 : i32
    %52 = tpu.dynamic_rotate %42 by %c3_i32_16 dim 0 : vector<32x16xf32>, i32 -> vector<32x16xf32>
    %c1_i32_17 = arith.constant 1 : i32
    %53 = tpu.dynamic_rotate %42 by %c1_i32_17 dim 0 : vector<32x16xf32>, i32 -> vector<32x16xf32>
    %c31_i32_18 = arith.constant 31 : i32
    %54 = tpu.dynamic_rotate %42 by %c31_i32_18 dim 0 : vector<32x16xf32>, i32 -> vector<32x16xf32>
    %c29_i32_19 = arith.constant 29 : i32
    %55 = tpu.dynamic_rotate %42 by %c29_i32_19 dim 0 : vector<32x16xf32>, i32 -> vector<32x16xf32>
    %c28_i32_20 = arith.constant 28 : i32
    %56 = tpu.dynamic_rotate %42 by %c28_i32_20 dim 0 : vector<32x16xf32>, i32 -> vector<32x16xf32>
    %c27_i32_21 = arith.constant 27 : i32
    %57 = tpu.dynamic_rotate %42 by %c27_i32_21 dim 0 : vector<32x16xf32>, i32 -> vector<32x16xf32>
    %58 = tpu.concatenate %50, %51, %52, %53, %42, %54, %55, %56, %57 in 1 : vector<32x16xf32>, vector<32x16xf32>, vector<32x16xf32>, vector<32x16xf32>, vector<32x16xf32>, vector<32x16xf32>, vector<32x16xf32>, vector<32x16xf32>, vector<32x16xf32> -> vector<32x144xf32>
    %59 = arith.mulf %58, %49 : vector<32x144xf32>
    %cst_22 = arith.constant dense<0.000000e+00> : vector<32x16xf32>
    %60 = tpu.matmul %59, %44, %cst_22 {dimension_numbers = #tpu.dot_dimension_numbers<[1], [0], [0], [1], [0, 0, 1, 1], [], []>} : vector<32x144xf32>, vector<144x16xf32>, vector<32x16xf32> -> vector<32x16xf32>
    %61 = vector.extract_strided_slice %2 {offsets = [2, 0], sizes = [1, 16], strides = [1, 1]} : vector<6x16xf32> to vector<1x16xf32>
    %62 = vector.extract_strided_slice %2 {offsets = [3, 0], sizes = [1, 16], strides = [1, 1]} : vector<6x16xf32> to vector<1x16xf32>
    %cst_23 = arith.constant dense<0.000000e+00> : vector<16xf32>
    %63 = vector.multi_reduction <add>, %60, %cst_23 [0] : vector<32x16xf32> to vector<16xf32>
    %64 = vector.shape_cast %63 : vector<16xf32> to vector<1x16xf32>
    %cst_24 = arith.constant 3.200000e+01 : f32
    %65 = vector.broadcast %cst_24 : f32 to vector<1x16xf32>
    %66 = arith.divf %64, %65 : vector<1x16xf32>
    %67 = arith.mulf %60, %60 : vector<32x16xf32>
    %cst_25 = arith.constant dense<0.000000e+00> : vector<16xf32>
    %68 = vector.multi_reduction <add>, %67, %cst_25 [0] : vector<32x16xf32> to vector<16xf32>
    %69 = vector.shape_cast %68 : vector<16xf32> to vector<1x16xf32>
    %cst_26 = arith.constant 3.200000e+01 : f32
    %70 = vector.broadcast %cst_26 : f32 to vector<1x16xf32>
    %71 = arith.divf %69, %70 : vector<1x16xf32>
    %72 = arith.mulf %66, %66 : vector<1x16xf32>
    %73 = arith.subf %71, %72 : vector<1x16xf32>
    %cst_27 = arith.constant 9.99999974E-6 : f32
    %74 = vector.broadcast %cst_27 : f32 to vector<1x16xf32>
    %75 = arith.addf %73, %74 : vector<1x16xf32>
    %76 = math.rsqrt %75 : vector<1x16xf32>
    %77 = arith.mulf %61, %76 : vector<1x16xf32>
    %78 = vector.broadcast %77 : vector<1x16xf32> to vector<32x16xf32>
    %79 = arith.mulf %60, %78 : vector<32x16xf32>
    %80 = arith.mulf %66, %77 : vector<1x16xf32>
    %81 = arith.subf %62, %80 : vector<1x16xf32>
    %82 = vector.broadcast %81 : vector<1x16xf32> to vector<32x16xf32>
    %83 = arith.addf %79, %82 : vector<32x16xf32>
    %cst_28 = arith.constant 0.000000e+00 : f32
    %84 = vector.broadcast %cst_28 : f32 to vector<32x16xf32>
    %85 = arith.maximumf %83, %84 : vector<32x16xf32>
    %c160 = arith.constant 160 : index
    %c0_29 = arith.constant 0 : index
    %86 = vector.load %arg1[%c160, %c0_29] : memref<768x128xbf16, #tpu.memory_space<vmem>>, vector<1x16xbf16>
    %87 = arith.extf %86 : vector<1x16xbf16> to vector<1x16xf32>
    %88 = vector.broadcast %0 : vector<32x1xf32> to vector<32x16xf32>
    %89 = vector.broadcast %87 : vector<1x16xf32> to vector<32x16xf32>
    %90 = arith.mulf %88, %89 : vector<32x16xf32>
    %91 = vector.extract_strided_slice %2 {offsets = [4, 0], sizes = [1, 16], strides = [1, 1]} : vector<6x16xf32> to vector<1x16xf32>
    %92 = vector.extract_strided_slice %2 {offsets = [5, 0], sizes = [1, 16], strides = [1, 1]} : vector<6x16xf32> to vector<1x16xf32>
    %cst_30 = arith.constant dense<0.000000e+00> : vector<16xf32>
    %93 = vector.multi_reduction <add>, %90, %cst_30 [0] : vector<32x16xf32> to vector<16xf32>
    %94 = vector.shape_cast %93 : vector<16xf32> to vector<1x16xf32>
    %cst_31 = arith.constant 3.200000e+01 : f32
    %95 = vector.broadcast %cst_31 : f32 to vector<1x16xf32>
    %96 = arith.divf %94, %95 : vector<1x16xf32>
    %97 = arith.mulf %90, %90 : vector<32x16xf32>
    %cst_32 = arith.constant dense<0.000000e+00> : vector<16xf32>
    %98 = vector.multi_reduction <add>, %97, %cst_32 [0] : vector<32x16xf32> to vector<16xf32>
    %99 = vector.shape_cast %98 : vector<16xf32> to vector<1x16xf32>
    %cst_33 = arith.constant 3.200000e+01 : f32
    %100 = vector.broadcast %cst_33 : f32 to vector<1x16xf32>
    %101 = arith.divf %99, %100 : vector<1x16xf32>
    %102 = arith.mulf %96, %96 : vector<1x16xf32>
    %103 = arith.subf %101, %102 : vector<1x16xf32>
    %cst_34 = arith.constant 9.99999974E-6 : f32
    %104 = vector.broadcast %cst_34 : f32 to vector<1x16xf32>
    %105 = arith.addf %103, %104 : vector<1x16xf32>
    %106 = math.rsqrt %105 : vector<1x16xf32>
    %107 = arith.mulf %91, %106 : vector<1x16xf32>
    %108 = vector.broadcast %107 : vector<1x16xf32> to vector<32x16xf32>
    %109 = arith.mulf %90, %108 : vector<32x16xf32>
    %110 = arith.mulf %96, %107 : vector<1x16xf32>
    %111 = arith.subf %92, %110 : vector<1x16xf32>
    %112 = vector.broadcast %111 : vector<1x16xf32> to vector<32x16xf32>
    %113 = arith.addf %109, %112 : vector<32x16xf32>
    %cst_35 = arith.constant 0.000000e+00 : f32
    %114 = vector.broadcast %cst_35 : f32 to vector<32x16xf32>
    %115 = arith.maximumf %113, %114 : vector<32x16xf32>
    %116 = arith.addf %115, %85 : vector<32x16xf32>
    %c432 = arith.constant 432 : index
    %c0_36 = arith.constant 0 : index
    %117 = vector.load %arg1[%c432, %c0_36] : memref<768x128xbf16, #tpu.memory_space<vmem>>, vector<6x8xbf16>
    %118 = arith.extf %117 : vector<6x8xbf16> to vector<6x8xf32>
    %c192 = arith.constant 192 : index
    %c0_37 = arith.constant 0 : index
    %119 = vector.load %arg1[%c192, %c0_37] : memref<768x128xbf16, #tpu.memory_space<vmem>>, vector<144x8xbf16>
    %120 = arith.extf %119 : vector<144x8xbf16> to vector<144x8xf32>
    %c5_i32_38 = arith.constant 5 : i32
    %121 = tpu.dynamic_rotate %116 by %c5_i32_38 dim 0 : vector<32x16xf32>, i32 -> vector<32x16xf32>
    %c4_i32_39 = arith.constant 4 : i32
    %122 = tpu.dynamic_rotate %116 by %c4_i32_39 dim 0 : vector<32x16xf32>, i32 -> vector<32x16xf32>
    %c3_i32_40 = arith.constant 3 : i32
    %123 = tpu.dynamic_rotate %116 by %c3_i32_40 dim 0 : vector<32x16xf32>, i32 -> vector<32x16xf32>
    %c1_i32_41 = arith.constant 1 : i32
    %124 = tpu.dynamic_rotate %116 by %c1_i32_41 dim 0 : vector<32x16xf32>, i32 -> vector<32x16xf32>
    %c31_i32_42 = arith.constant 31 : i32
    %125 = tpu.dynamic_rotate %116 by %c31_i32_42 dim 0 : vector<32x16xf32>, i32 -> vector<32x16xf32>
    %c29_i32_43 = arith.constant 29 : i32
    %126 = tpu.dynamic_rotate %116 by %c29_i32_43 dim 0 : vector<32x16xf32>, i32 -> vector<32x16xf32>
    %c28_i32_44 = arith.constant 28 : i32
    %127 = tpu.dynamic_rotate %116 by %c28_i32_44 dim 0 : vector<32x16xf32>, i32 -> vector<32x16xf32>
    %c27_i32_45 = arith.constant 27 : i32
    %128 = tpu.dynamic_rotate %116 by %c27_i32_45 dim 0 : vector<32x16xf32>, i32 -> vector<32x16xf32>
    %129 = tpu.concatenate %121, %122, %123, %124, %116, %125, %126, %127, %128 in 1 : vector<32x16xf32>, vector<32x16xf32>, vector<32x16xf32>, vector<32x16xf32>, vector<32x16xf32>, vector<32x16xf32>, vector<32x16xf32>, vector<32x16xf32>, vector<32x16xf32> -> vector<32x144xf32>
    %130 = arith.mulf %129, %49 : vector<32x144xf32>
    %cst_46 = arith.constant dense<0.000000e+00> : vector<32x8xf32>
    %131 = tpu.matmul %130, %120, %cst_46 {dimension_numbers = #tpu.dot_dimension_numbers<[1], [0], [0], [1], [0, 0, 1, 1], [], []>} : vector<32x144xf32>, vector<144x8xf32>, vector<32x8xf32> -> vector<32x8xf32>
    %132 = vector.extract_strided_slice %118 {offsets = [0, 0], sizes = [1, 8], strides = [1, 1]} : vector<6x8xf32> to vector<1x8xf32>
    %133 = vector.extract_strided_slice %118 {offsets = [1, 0], sizes = [1, 8], strides = [1, 1]} : vector<6x8xf32> to vector<1x8xf32>
    %cst_47 = arith.constant dense<0.000000e+00> : vector<8xf32>
    %134 = vector.multi_reduction <add>, %131, %cst_47 [0] : vector<32x8xf32> to vector<8xf32>
    %135 = vector.shape_cast %134 : vector<8xf32> to vector<1x8xf32>
    %cst_48 = arith.constant 3.200000e+01 : f32
    %136 = vector.broadcast %cst_48 : f32 to vector<1x8xf32>
    %137 = arith.divf %135, %136 : vector<1x8xf32>
    %138 = arith.mulf %131, %131 : vector<32x8xf32>
    %cst_49 = arith.constant dense<0.000000e+00> : vector<8xf32>
    %139 = vector.multi_reduction <add>, %138, %cst_49 [0] : vector<32x8xf32> to vector<8xf32>
    %140 = vector.shape_cast %139 : vector<8xf32> to vector<1x8xf32>
    %cst_50 = arith.constant 3.200000e+01 : f32
    %141 = vector.broadcast %cst_50 : f32 to vector<1x8xf32>
    %142 = arith.divf %140, %141 : vector<1x8xf32>
    %143 = arith.mulf %137, %137 : vector<1x8xf32>
    %144 = arith.subf %142, %143 : vector<1x8xf32>
    %cst_51 = arith.constant 9.99999974E-6 : f32
    %145 = vector.broadcast %cst_51 : f32 to vector<1x8xf32>
    %146 = arith.addf %144, %145 : vector<1x8xf32>
    %147 = math.rsqrt %146 : vector<1x8xf32>
    %148 = arith.mulf %132, %147 : vector<1x8xf32>
    %149 = vector.broadcast %148 : vector<1x8xf32> to vector<32x8xf32>
    %150 = arith.mulf %131, %149 : vector<32x8xf32>
    %151 = arith.mulf %137, %148 : vector<1x8xf32>
    %152 = arith.subf %133, %151 : vector<1x8xf32>
    %153 = vector.broadcast %152 : vector<1x8xf32> to vector<32x8xf32>
    %154 = arith.addf %150, %153 : vector<32x8xf32>
    %cst_52 = arith.constant 0.000000e+00 : f32
    %155 = vector.broadcast %cst_52 : f32 to vector<32x8xf32>
    %156 = arith.maximumf %154, %155 : vector<32x8xf32>
    %c336 = arith.constant 336 : index
    %c0_53 = arith.constant 0 : index
    %157 = vector.load %arg1[%c336, %c0_53] : memref<768x128xbf16, #tpu.memory_space<vmem>>, vector<72x8xbf16>
    %158 = arith.extf %157 : vector<72x8xbf16> to vector<72x8xf32>
    %c672 = arith.constant 672 : index
    %c0_54 = arith.constant 0 : index
    %159 = vector.load %arg1[%c672, %c0_54] : memref<768x128xbf16, #tpu.memory_space<vmem>>, vector<32x72xbf16>
    %160 = arith.extf %159 : vector<32x72xbf16> to vector<32x72xf32>
    %c5_i32_55 = arith.constant 5 : i32
    %161 = tpu.dynamic_rotate %156 by %c5_i32_55 dim 0 : vector<32x8xf32>, i32 -> vector<32x8xf32>
    %c4_i32_56 = arith.constant 4 : i32
    %162 = tpu.dynamic_rotate %156 by %c4_i32_56 dim 0 : vector<32x8xf32>, i32 -> vector<32x8xf32>
    %c3_i32_57 = arith.constant 3 : i32
    %163 = tpu.dynamic_rotate %156 by %c3_i32_57 dim 0 : vector<32x8xf32>, i32 -> vector<32x8xf32>
    %c1_i32_58 = arith.constant 1 : i32
    %164 = tpu.dynamic_rotate %156 by %c1_i32_58 dim 0 : vector<32x8xf32>, i32 -> vector<32x8xf32>
    %c31_i32_59 = arith.constant 31 : i32
    %165 = tpu.dynamic_rotate %156 by %c31_i32_59 dim 0 : vector<32x8xf32>, i32 -> vector<32x8xf32>
    %c29_i32_60 = arith.constant 29 : i32
    %166 = tpu.dynamic_rotate %156 by %c29_i32_60 dim 0 : vector<32x8xf32>, i32 -> vector<32x8xf32>
    %c28_i32_61 = arith.constant 28 : i32
    %167 = tpu.dynamic_rotate %156 by %c28_i32_61 dim 0 : vector<32x8xf32>, i32 -> vector<32x8xf32>
    %c27_i32_62 = arith.constant 27 : i32
    %168 = tpu.dynamic_rotate %156 by %c27_i32_62 dim 0 : vector<32x8xf32>, i32 -> vector<32x8xf32>
    %169 = tpu.concatenate %161, %162, %163, %164, %156, %165, %166, %167, %168 in 1 : vector<32x8xf32>, vector<32x8xf32>, vector<32x8xf32>, vector<32x8xf32>, vector<32x8xf32>, vector<32x8xf32>, vector<32x8xf32>, vector<32x8xf32>, vector<32x8xf32> -> vector<32x72xf32>
    %170 = arith.mulf %169, %160 : vector<32x72xf32>
    %cst_63 = arith.constant dense<0.000000e+00> : vector<32x8xf32>
    %171 = tpu.matmul %170, %158, %cst_63 {dimension_numbers = #tpu.dot_dimension_numbers<[1], [0], [0], [1], [0, 0, 1, 1], [], []>} : vector<32x72xf32>, vector<72x8xf32>, vector<32x8xf32> -> vector<32x8xf32>
    %172 = vector.extract_strided_slice %118 {offsets = [2, 0], sizes = [1, 8], strides = [1, 1]} : vector<6x8xf32> to vector<1x8xf32>
    %173 = vector.extract_strided_slice %118 {offsets = [3, 0], sizes = [1, 8], strides = [1, 1]} : vector<6x8xf32> to vector<1x8xf32>
    %cst_64 = arith.constant dense<0.000000e+00> : vector<8xf32>
    %174 = vector.multi_reduction <add>, %171, %cst_64 [0] : vector<32x8xf32> to vector<8xf32>
    %175 = vector.shape_cast %174 : vector<8xf32> to vector<1x8xf32>
    %cst_65 = arith.constant 3.200000e+01 : f32
    %176 = vector.broadcast %cst_65 : f32 to vector<1x8xf32>
    %177 = arith.divf %175, %176 : vector<1x8xf32>
    %178 = arith.mulf %171, %171 : vector<32x8xf32>
    %cst_66 = arith.constant dense<0.000000e+00> : vector<8xf32>
    %179 = vector.multi_reduction <add>, %178, %cst_66 [0] : vector<32x8xf32> to vector<8xf32>
    %180 = vector.shape_cast %179 : vector<8xf32> to vector<1x8xf32>
    %cst_67 = arith.constant 3.200000e+01 : f32
    %181 = vector.broadcast %cst_67 : f32 to vector<1x8xf32>
    %182 = arith.divf %180, %181 : vector<1x8xf32>
    %183 = arith.mulf %177, %177 : vector<1x8xf32>
    %184 = arith.subf %182, %183 : vector<1x8xf32>
    %cst_68 = arith.constant 9.99999974E-6 : f32
    %185 = vector.broadcast %cst_68 : f32 to vector<1x8xf32>
    %186 = arith.addf %184, %185 : vector<1x8xf32>
    %187 = math.rsqrt %186 : vector<1x8xf32>
    %188 = arith.mulf %172, %187 : vector<1x8xf32>
    %189 = vector.broadcast %188 : vector<1x8xf32> to vector<32x8xf32>
    %190 = arith.mulf %171, %189 : vector<32x8xf32>
    %191 = arith.mulf %177, %188 : vector<1x8xf32>
    %192 = arith.subf %173, %191 : vector<1x8xf32>
    %193 = vector.broadcast %192 : vector<1x8xf32> to vector<32x8xf32>
    %194 = arith.addf %190, %193 : vector<32x8xf32>
    %cst_69 = arith.constant 0.000000e+00 : f32
    %195 = vector.broadcast %cst_69 : f32 to vector<32x8xf32>
    %196 = arith.maximumf %194, %195 : vector<32x8xf32>
    %c416 = arith.constant 416 : index
    %c0_70 = arith.constant 0 : index
    %197 = vector.load %arg1[%c416, %c0_70] : memref<768x128xbf16, #tpu.memory_space<vmem>>, vector<16x8xbf16>
    %198 = arith.extf %197 : vector<16x8xbf16> to vector<16x8xf32>
    %cst_71 = arith.constant dense<0.000000e+00> : vector<32x8xf32>
    %199 = tpu.matmul %116, %198, %cst_71 {dimension_numbers = #tpu.dot_dimension_numbers<[1], [0], [0], [1], [0, 0, 1, 1], [], []>} : vector<32x16xf32>, vector<16x8xf32>, vector<32x8xf32> -> vector<32x8xf32>
    %200 = vector.extract_strided_slice %118 {offsets = [4, 0], sizes = [1, 8], strides = [1, 1]} : vector<6x8xf32> to vector<1x8xf32>
    %201 = vector.extract_strided_slice %118 {offsets = [5, 0], sizes = [1, 8], strides = [1, 1]} : vector<6x8xf32> to vector<1x8xf32>
    %cst_72 = arith.constant dense<0.000000e+00> : vector<8xf32>
    %202 = vector.multi_reduction <add>, %199, %cst_72 [0] : vector<32x8xf32> to vector<8xf32>
    %203 = vector.shape_cast %202 : vector<8xf32> to vector<1x8xf32>
    %cst_73 = arith.constant 3.200000e+01 : f32
    %204 = vector.broadcast %cst_73 : f32 to vector<1x8xf32>
    %205 = arith.divf %203, %204 : vector<1x8xf32>
    %206 = arith.mulf %199, %199 : vector<32x8xf32>
    %cst_74 = arith.constant dense<0.000000e+00> : vector<8xf32>
    %207 = vector.multi_reduction <add>, %206, %cst_74 [0] : vector<32x8xf32> to vector<8xf32>
    %208 = vector.shape_cast %207 : vector<8xf32> to vector<1x8xf32>
    %cst_75 = arith.constant 3.200000e+01 : f32
    %209 = vector.broadcast %cst_75 : f32 to vector<1x8xf32>
    %210 = arith.divf %208, %209 : vector<1x8xf32>
    %211 = arith.mulf %205, %205 : vector<1x8xf32>
    %212 = arith.subf %210, %211 : vector<1x8xf32>
    %cst_76 = arith.constant 9.99999974E-6 : f32
    %213 = vector.broadcast %cst_76 : f32 to vector<1x8xf32>
    %214 = arith.addf %212, %213 : vector<1x8xf32>
    %215 = math.rsqrt %214 : vector<1x8xf32>
    %216 = arith.mulf %200, %215 : vector<1x8xf32>
    %217 = vector.broadcast %216 : vector<1x8xf32> to vector<32x8xf32>
    %218 = arith.mulf %199, %217 : vector<32x8xf32>
    %219 = arith.mulf %205, %216 : vector<1x8xf32>
    %220 = arith.subf %201, %219 : vector<1x8xf32>
    %221 = vector.broadcast %220 : vector<1x8xf32> to vector<32x8xf32>
    %222 = arith.addf %218, %221 : vector<32x8xf32>
    %cst_77 = arith.constant 0.000000e+00 : f32
    %223 = vector.broadcast %cst_77 : f32 to vector<32x8xf32>
    %224 = arith.maximumf %222, %223 : vector<32x8xf32>
    %225 = arith.addf %224, %196 : vector<32x8xf32>
    %c560 = arith.constant 560 : index
    %c0_78 = arith.constant 0 : index
    %226 = vector.load %arg1[%c560, %c0_78] : memref<768x128xbf16, #tpu.memory_space<vmem>>, vector<6x1xbf16>
    %227 = arith.extf %226 : vector<6x1xbf16> to vector<6x1xf32>
    %c448 = arith.constant 448 : index
    %c0_79 = arith.constant 0 : index
    %228 = vector.load %arg1[%c448, %c0_79] : memref<768x128xbf16, #tpu.memory_space<vmem>>, vector<72x1xbf16>
    %229 = arith.extf %228 : vector<72x1xbf16> to vector<72x1xf32>
    %c5_i32_80 = arith.constant 5 : i32
    %230 = tpu.dynamic_rotate %225 by %c5_i32_80 dim 0 : vector<32x8xf32>, i32 -> vector<32x8xf32>
    %c4_i32_81 = arith.constant 4 : i32
    %231 = tpu.dynamic_rotate %225 by %c4_i32_81 dim 0 : vector<32x8xf32>, i32 -> vector<32x8xf32>
    %c3_i32_82 = arith.constant 3 : i32
    %232 = tpu.dynamic_rotate %225 by %c3_i32_82 dim 0 : vector<32x8xf32>, i32 -> vector<32x8xf32>
    %c1_i32_83 = arith.constant 1 : i32
    %233 = tpu.dynamic_rotate %225 by %c1_i32_83 dim 0 : vector<32x8xf32>, i32 -> vector<32x8xf32>
    %c31_i32_84 = arith.constant 31 : i32
    %234 = tpu.dynamic_rotate %225 by %c31_i32_84 dim 0 : vector<32x8xf32>, i32 -> vector<32x8xf32>
    %c29_i32_85 = arith.constant 29 : i32
    %235 = tpu.dynamic_rotate %225 by %c29_i32_85 dim 0 : vector<32x8xf32>, i32 -> vector<32x8xf32>
    %c28_i32_86 = arith.constant 28 : i32
    %236 = tpu.dynamic_rotate %225 by %c28_i32_86 dim 0 : vector<32x8xf32>, i32 -> vector<32x8xf32>
    %c27_i32_87 = arith.constant 27 : i32
    %237 = tpu.dynamic_rotate %225 by %c27_i32_87 dim 0 : vector<32x8xf32>, i32 -> vector<32x8xf32>
    %238 = tpu.concatenate %230, %231, %232, %233, %225, %234, %235, %236, %237 in 1 : vector<32x8xf32>, vector<32x8xf32>, vector<32x8xf32>, vector<32x8xf32>, vector<32x8xf32>, vector<32x8xf32>, vector<32x8xf32>, vector<32x8xf32>, vector<32x8xf32> -> vector<32x72xf32>
    %239 = arith.mulf %238, %160 : vector<32x72xf32>
    %cst_88 = arith.constant dense<0.000000e+00> : vector<32x1xf32>
    %240 = tpu.matmul %239, %229, %cst_88 {dimension_numbers = #tpu.dot_dimension_numbers<[1], [0], [0], [1], [0, 0, 1, 1], [], []>} : vector<32x72xf32>, vector<72x1xf32>, vector<32x1xf32> -> vector<32x1xf32>
    %241 = vector.extract_strided_slice %227 {offsets = [0, 0], sizes = [1, 1], strides = [1, 1]} : vector<6x1xf32> to vector<1x1xf32>
    %242 = vector.extract_strided_slice %227 {offsets = [1, 0], sizes = [1, 1], strides = [1, 1]} : vector<6x1xf32> to vector<1x1xf32>
    %cst_89 = arith.constant dense<0.000000e+00> : vector<1xf32>
    %243 = vector.multi_reduction <add>, %240, %cst_89 [0] : vector<32x1xf32> to vector<1xf32>
    %244 = vector.shape_cast %243 : vector<1xf32> to vector<1x1xf32>
    %cst_90 = arith.constant 3.200000e+01 : f32
    %245 = vector.broadcast %cst_90 : f32 to vector<1x1xf32>
    %246 = arith.divf %244, %245 : vector<1x1xf32>
    %247 = arith.mulf %240, %240 : vector<32x1xf32>
    %cst_91 = arith.constant dense<0.000000e+00> : vector<1xf32>
    %248 = vector.multi_reduction <add>, %247, %cst_91 [0] : vector<32x1xf32> to vector<1xf32>
    %249 = vector.shape_cast %248 : vector<1xf32> to vector<1x1xf32>
    %cst_92 = arith.constant 3.200000e+01 : f32
    %250 = vector.broadcast %cst_92 : f32 to vector<1x1xf32>
    %251 = arith.divf %249, %250 : vector<1x1xf32>
    %252 = arith.mulf %246, %246 : vector<1x1xf32>
    %253 = arith.subf %251, %252 : vector<1x1xf32>
    %cst_93 = arith.constant 9.99999974E-6 : f32
    %254 = vector.broadcast %cst_93 : f32 to vector<1x1xf32>
    %255 = arith.addf %253, %254 : vector<1x1xf32>
    %256 = math.rsqrt %255 : vector<1x1xf32>
    %257 = arith.mulf %241, %256 : vector<1x1xf32>
    %258 = vector.broadcast %257 : vector<1x1xf32> to vector<32x1xf32>
    %259 = arith.mulf %240, %258 : vector<32x1xf32>
    %260 = arith.mulf %246, %257 : vector<1x1xf32>
    %261 = arith.subf %242, %260 : vector<1x1xf32>
    %262 = vector.broadcast %261 : vector<1x1xf32> to vector<32x1xf32>
    %263 = arith.addf %259, %262 : vector<32x1xf32>
    %cst_94 = arith.constant 0.000000e+00 : f32
    %264 = vector.broadcast %cst_94 : f32 to vector<32x1xf32>
    %265 = arith.maximumf %263, %264 : vector<32x1xf32>
    %c528 = arith.constant 528 : index
    %c0_95 = arith.constant 0 : index
    %266 = vector.load %arg1[%c528, %c0_95] : memref<768x128xbf16, #tpu.memory_space<vmem>>, vector<9x1xbf16>
    %267 = arith.extf %266 : vector<9x1xbf16> to vector<9x1xf32>
    %c5_i32_96 = arith.constant 5 : i32
    %268 = tpu.dynamic_rotate %265 by %c5_i32_96 dim 0 : vector<32x1xf32>, i32 -> vector<32x1xf32>
    %c4_i32_97 = arith.constant 4 : i32
    %269 = tpu.dynamic_rotate %265 by %c4_i32_97 dim 0 : vector<32x1xf32>, i32 -> vector<32x1xf32>
    %c3_i32_98 = arith.constant 3 : i32
    %270 = tpu.dynamic_rotate %265 by %c3_i32_98 dim 0 : vector<32x1xf32>, i32 -> vector<32x1xf32>
    %c1_i32_99 = arith.constant 1 : i32
    %271 = tpu.dynamic_rotate %265 by %c1_i32_99 dim 0 : vector<32x1xf32>, i32 -> vector<32x1xf32>
    %c31_i32_100 = arith.constant 31 : i32
    %272 = tpu.dynamic_rotate %265 by %c31_i32_100 dim 0 : vector<32x1xf32>, i32 -> vector<32x1xf32>
    %c29_i32_101 = arith.constant 29 : i32
    %273 = tpu.dynamic_rotate %265 by %c29_i32_101 dim 0 : vector<32x1xf32>, i32 -> vector<32x1xf32>
    %c28_i32_102 = arith.constant 28 : i32
    %274 = tpu.dynamic_rotate %265 by %c28_i32_102 dim 0 : vector<32x1xf32>, i32 -> vector<32x1xf32>
    %c27_i32_103 = arith.constant 27 : i32
    %275 = tpu.dynamic_rotate %265 by %c27_i32_103 dim 0 : vector<32x1xf32>, i32 -> vector<32x1xf32>
    %276 = tpu.concatenate %268, %269, %270, %271, %265, %272, %273, %274, %275 in 1 : vector<32x1xf32>, vector<32x1xf32>, vector<32x1xf32>, vector<32x1xf32>, vector<32x1xf32>, vector<32x1xf32>, vector<32x1xf32>, vector<32x1xf32>, vector<32x1xf32> -> vector<32x9xf32>
    %277 = arith.mulf %276, %6 : vector<32x9xf32>
    %cst_104 = arith.constant dense<0.000000e+00> : vector<32x1xf32>
    %278 = tpu.matmul %277, %267, %cst_104 {dimension_numbers = #tpu.dot_dimension_numbers<[1], [0], [0], [1], [0, 0, 1, 1], [], []>} : vector<32x9xf32>, vector<9x1xf32>, vector<32x1xf32> -> vector<32x1xf32>
    %279 = vector.extract_strided_slice %227 {offsets = [2, 0], sizes = [1, 1], strides = [1, 1]} : vector<6x1xf32> to vector<1x1xf32>
    %280 = vector.extract_strided_slice %227 {offsets = [3, 0], sizes = [1, 1], strides = [1, 1]} : vector<6x1xf32> to vector<1x1xf32>
    %cst_105 = arith.constant dense<0.000000e+00> : vector<1xf32>
    %281 = vector.multi_reduction <add>, %278, %cst_105 [0] : vector<32x1xf32> to vector<1xf32>
    %282 = vector.shape_cast %281 : vector<1xf32> to vector<1x1xf32>
    %cst_106 = arith.constant 3.200000e+01 : f32
    %283 = vector.broadcast %cst_106 : f32 to vector<1x1xf32>
    %284 = arith.divf %282, %283 : vector<1x1xf32>
    %285 = arith.mulf %278, %278 : vector<32x1xf32>
    %cst_107 = arith.constant dense<0.000000e+00> : vector<1xf32>
    %286 = vector.multi_reduction <add>, %285, %cst_107 [0] : vector<32x1xf32> to vector<1xf32>
    %287 = vector.shape_cast %286 : vector<1xf32> to vector<1x1xf32>
    %cst_108 = arith.constant 3.200000e+01 : f32
    %288 = vector.broadcast %cst_108 : f32 to vector<1x1xf32>
    %289 = arith.divf %287, %288 : vector<1x1xf32>
    %290 = arith.mulf %284, %284 : vector<1x1xf32>
    %291 = arith.subf %289, %290 : vector<1x1xf32>
    %cst_109 = arith.constant 9.99999974E-6 : f32
    %292 = vector.broadcast %cst_109 : f32 to vector<1x1xf32>
    %293 = arith.addf %291, %292 : vector<1x1xf32>
    %294 = math.rsqrt %293 : vector<1x1xf32>
    %295 = arith.mulf %279, %294 : vector<1x1xf32>
    %296 = vector.broadcast %295 : vector<1x1xf32> to vector<32x1xf32>
    %297 = arith.mulf %278, %296 : vector<32x1xf32>
    %298 = arith.mulf %284, %295 : vector<1x1xf32>
    %299 = arith.subf %280, %298 : vector<1x1xf32>
    %300 = vector.broadcast %299 : vector<1x1xf32> to vector<32x1xf32>
    %301 = arith.addf %297, %300 : vector<32x1xf32>
    %cst_110 = arith.constant 0.000000e+00 : f32
    %302 = vector.broadcast %cst_110 : f32 to vector<32x1xf32>
    %303 = arith.maximumf %301, %302 : vector<32x1xf32>
    %c544 = arith.constant 544 : index
    %c0_111 = arith.constant 0 : index
    %304 = vector.load %arg1[%c544, %c0_111] : memref<768x128xbf16, #tpu.memory_space<vmem>>, vector<8x1xbf16>
    %305 = arith.extf %304 : vector<8x1xbf16> to vector<8x1xf32>
    %cst_112 = arith.constant dense<0.000000e+00> : vector<32x1xf32>
    %306 = tpu.matmul %225, %305, %cst_112 {dimension_numbers = #tpu.dot_dimension_numbers<[1], [0], [0], [1], [0, 0, 1, 1], [], []>} : vector<32x8xf32>, vector<8x1xf32>, vector<32x1xf32> -> vector<32x1xf32>
    %307 = vector.extract_strided_slice %227 {offsets = [4, 0], sizes = [1, 1], strides = [1, 1]} : vector<6x1xf32> to vector<1x1xf32>
    %308 = vector.extract_strided_slice %227 {offsets = [5, 0], sizes = [1, 1], strides = [1, 1]} : vector<6x1xf32> to vector<1x1xf32>
    %cst_113 = arith.constant dense<0.000000e+00> : vector<1xf32>
    %309 = vector.multi_reduction <add>, %306, %cst_113 [0] : vector<32x1xf32> to vector<1xf32>
    %310 = vector.shape_cast %309 : vector<1xf32> to vector<1x1xf32>
    %cst_114 = arith.constant 3.200000e+01 : f32
    %311 = vector.broadcast %cst_114 : f32 to vector<1x1xf32>
    %312 = arith.divf %310, %311 : vector<1x1xf32>
    %313 = arith.mulf %306, %306 : vector<32x1xf32>
    %cst_115 = arith.constant dense<0.000000e+00> : vector<1xf32>
    %314 = vector.multi_reduction <add>, %313, %cst_115 [0] : vector<32x1xf32> to vector<1xf32>
    %315 = vector.shape_cast %314 : vector<1xf32> to vector<1x1xf32>
    %cst_116 = arith.constant 3.200000e+01 : f32
    %316 = vector.broadcast %cst_116 : f32 to vector<1x1xf32>
    %317 = arith.divf %315, %316 : vector<1x1xf32>
    %318 = arith.mulf %312, %312 : vector<1x1xf32>
    %319 = arith.subf %317, %318 : vector<1x1xf32>
    %cst_117 = arith.constant 9.99999974E-6 : f32
    %320 = vector.broadcast %cst_117 : f32 to vector<1x1xf32>
    %321 = arith.addf %319, %320 : vector<1x1xf32>
    %322 = math.rsqrt %321 : vector<1x1xf32>
    %323 = arith.mulf %307, %322 : vector<1x1xf32>
    %324 = vector.broadcast %323 : vector<1x1xf32> to vector<32x1xf32>
    %325 = arith.mulf %306, %324 : vector<32x1xf32>
    %326 = arith.mulf %312, %323 : vector<1x1xf32>
    %327 = arith.subf %308, %326 : vector<1x1xf32>
    %328 = vector.broadcast %327 : vector<1x1xf32> to vector<32x1xf32>
    %329 = arith.addf %325, %328 : vector<32x1xf32>
    %cst_118 = arith.constant 0.000000e+00 : f32
    %330 = vector.broadcast %cst_118 : f32 to vector<32x1xf32>
    %331 = arith.maximumf %329, %330 : vector<32x1xf32>
    %332 = arith.addf %331, %303 : vector<32x1xf32>
    %c608 = arith.constant 608 : index
    %c0_119 = arith.constant 0 : index
    %333 = vector.load %arg1[%c608, %c0_119] : memref<768x128xbf16, #tpu.memory_space<vmem>>, vector<3x8xbf16>
    %334 = arith.extf %333 : vector<3x8xbf16> to vector<3x8xf32>
    %c624 = arith.constant 624 : index
    %c0_120 = arith.constant 0 : index
    %335 = vector.load %arg1[%c624, %c0_120] : memref<768x128xbf16, #tpu.memory_space<vmem>>, vector<2x32xbf16>
    %336 = arith.extf %335 : vector<2x32xbf16> to vector<2x32xf32>
    %c576 = arith.constant 576 : index
    %c0_121 = arith.constant 0 : index
    %337 = vector.load %arg1[%c576, %c0_121] : memref<768x128xbf16, #tpu.memory_space<vmem>>, vector<32x8xbf16>
    %338 = arith.extf %337 : vector<32x8xbf16> to vector<32x8xf32>
    %339 = vector.broadcast %332 : vector<32x1xf32> to vector<32x8xf32>
    %340 = arith.mulf %339, %338 : vector<32x8xf32>
    %cst_122 = arith.constant dense<0.000000e+00> : vector<2x8xf32>
    %341 = tpu.matmul %336, %340, %cst_122 {dimension_numbers = #tpu.dot_dimension_numbers<[1], [0], [0], [1], [0, 0, 1, 1], [], []>} : vector<2x32xf32>, vector<32x8xf32>, vector<2x8xf32> -> vector<2x8xf32>
    %342 = vector.extract_strided_slice %334 {offsets = [0, 0], sizes = [1, 8], strides = [1, 1]} : vector<3x8xf32> to vector<1x8xf32>
    %343 = vector.broadcast %342 : vector<1x8xf32> to vector<2x8xf32>
    %344 = arith.addf %341, %343 : vector<2x8xf32>
    %cst_123 = arith.constant dense<0.000000e+00> : vector<2xf32>
    %345 = vector.multi_reduction <add>, %344, %cst_123 [1] : vector<2x8xf32> to vector<2xf32>
    %346 = vector.shape_cast %345 : vector<2xf32> to vector<2x1xf32>
    %cst_124 = arith.constant 8.000000e+00 : f32
    %347 = vector.broadcast %cst_124 : f32 to vector<2x1xf32>
    %348 = arith.divf %346, %347 : vector<2x1xf32>
    %349 = arith.mulf %344, %344 : vector<2x8xf32>
    %cst_125 = arith.constant dense<0.000000e+00> : vector<2xf32>
    %350 = vector.multi_reduction <add>, %349, %cst_125 [1] : vector<2x8xf32> to vector<2xf32>
    %351 = vector.shape_cast %350 : vector<2xf32> to vector<2x1xf32>
    %cst_126 = arith.constant 8.000000e+00 : f32
    %352 = vector.broadcast %cst_126 : f32 to vector<2x1xf32>
    %353 = arith.divf %351, %352 : vector<2x1xf32>
    %354 = arith.mulf %348, %348 : vector<2x1xf32>
    %355 = arith.subf %353, %354 : vector<2x1xf32>
    %356 = vector.broadcast %348 : vector<2x1xf32> to vector<2x8xf32>
    %357 = arith.subf %344, %356 : vector<2x8xf32>
    %cst_127 = arith.constant 9.99999974E-6 : f32
    %358 = vector.broadcast %cst_127 : f32 to vector<2x1xf32>
    %359 = arith.addf %355, %358 : vector<2x1xf32>
    %360 = math.rsqrt %359 : vector<2x1xf32>
    %361 = vector.broadcast %360 : vector<2x1xf32> to vector<2x8xf32>
    %362 = arith.mulf %357, %361 : vector<2x8xf32>
    %363 = vector.extract_strided_slice %334 {offsets = [1, 0], sizes = [1, 8], strides = [1, 1]} : vector<3x8xf32> to vector<1x8xf32>
    %364 = vector.broadcast %363 : vector<1x8xf32> to vector<2x8xf32>
    %365 = arith.mulf %362, %364 : vector<2x8xf32>
    %366 = vector.extract_strided_slice %334 {offsets = [2, 0], sizes = [1, 8], strides = [1, 1]} : vector<3x8xf32> to vector<1x8xf32>
    %367 = vector.broadcast %366 : vector<1x8xf32> to vector<2x8xf32>
    %368 = arith.addf %365, %367 : vector<2x8xf32>
    %c0_128 = arith.constant 0 : index
    %c0_129 = arith.constant 0 : index
    %369 = vector.load %arg2[%c0_128, %c0_129] : memref<2x8xf32, #tpu.memory_space<vmem>>, vector<2x8xf32>
    tpu.vector_store %arg2[%c0_128, %c0_129], %368 {strides = array<i32>} : memref<2x8xf32, #tpu.memory_space<vmem>>, vector<2x8xf32>,
    return
  }
}

</mosaic_0001>

<bundles_post_ra>
// kernel: forward.1
= control target key start
LH: loop header
LB: loop body
LE: loop exit
PB: predicated region body
PF: predicated region fallthrough
CT: control target
= control target key end

     0   :  { %7 = vsyncpa [#allocation3], 0  ;;  %s4906_s0 = inlined_call_operand.vmem [shape: f32[32,1], index: 0, kind: input, shape index: {}]   ;;  %s4907_s1 = inlined_call_operand.hbm [shape: bf16[768,128], index: 1, kind: input, shape index: {}]   ;;  %s4908_s2 = inlined_call_operand.hbm [shape: f32[2,8], index: 2, kind: output, shape index: {}]  }
   0x1   :  { %8 = vsyncpa [#allocation4], 0  ;;  %s3357_s9 = smov [#allocation2]  }
   0x2   :  { %s16_s10 = sshll.u32 %s3357_s9, 4  ;;  %s17_s10 = int_to_ptr.vmem [resolvable:$true] %s16_s10 }
   0x3   :  { %s3321_s11 = scalar_lea.vmem %s17_s10, 6144  ;;  %p3326_p1 = scmp.lt.s32.totalorder %s17_s10, %s17_s10 }
   0x4   :  { %p3322_p0 = scmp.ne.s32.totalorder %s17_s10, %s3321_s11  ;;  %p3327_p2 = scmp.lt.s32.totalorder %s3321_s11, %s3321_s11 }
   0x6   :  { %p3328_p3 = por %p3327_p2, %p3326_p1 }
   0x8   :  { %p3329_p4 = pnand %p3328_p3, %p3322_p0 }
   0xa   :  { %3332 = shalt.err (!%p3329_p4)
}
   0xb   :  { %s3358_s12 = smov 64   ;;  %s3359_s13 = smov 4  }
   0xc   :  { %22 = dma.hbm_to_vmem [thread:$0]  %s4907_s1, 6144, %s17_s10, [#allocation3], %s3358_s12, %s3358_s12, %s3359_s13  }
   0xd   :  { %3353 = dma.done.wait [#allocation3], 6144  }
   0xe   :  { %3354 = vsyncadd [#allocation3], 4294961152  ;;  %v48_v0 = vlaneseq  ;;  %v3406_v2 = vld [vmem:[%s4906_s0] sm:$0xff]  ;;  %v3411_v3 = vld [vmem:[%s4906_s0 + $0x18] sm:$0xff]  ;;  %s3360_s21 = smov 2   ;;  %s3361_s22 = smov 1  }
   0xf   :  { %v3418_v4 = vld [vmem:[%s4906_s0 + $0x8] sm:$0xff]  ;;  %v64_v5 = vrot.slane %v3406_v2, 5  ;;  %v67_v6 = vrot.slane %v3411_v3, 5  ;;  %v55_v7 = vrot.slane %v3406_v2, 4  ;;  %v58_v8 = vrot.slane %v3411_v3, 4  ;;  %v3449_v18 = vld [vmem:[%s4906_s0 + $0x10] sm:$0xff] }
  0x10   :  { %v3401_v1 = vshrl.u32 %v48_v0, 7  ;;  %v65_v9 = vrot.slane %v3418_v4, 5  ;;  %v56_v10 = vrot.slane %v3418_v4, 4  ;;  %v73_v13 = vrot.slane %v3406_v2, 7  ;;  %s3362_s25 = smov 3   ;;  %s3363_s0 = smov 5  }
  0x11   :  { %v74_v16 = vrot.slane %v3418_v4, 7  ;;  %v76_v17 = vrot.slane %v3411_v3, 7  ;;  %v57_v21 = vrot.slane %v3449_v18, 4  ;;  %v82_v23 = vrot.slane %v3406_v2, 1  ;;  %s3364_s26 = smov 6   ;;  %s3365_s27 = smov 7  }
  0x12   :  { %vm68_vm0 = vcmp.lt.s32.totalorder %v3401_v1, 3  ;;  %vm59_vm1 = vcmp.lt.s32.totalorder %v3401_v1, 4  ;;  %vm77_vm2 = vcmp.lt.s32.totalorder %v3401_v1, 1  ;;  %v83_v24 = vrot.slane %v3418_v4, 1  ;;  %v33_v39 = vld [vmem:[#allocation2 + $0x4] sm:$0x1] }
  0x13   :  { %v3428_v11 = vsel %vm68_vm0, %v67_v6, %v64_v5  ;;  %v3432_v12 = vsel %vm59_vm1, %v58_v8, %v55_v7  ;;  %v71_v14 = vsel %vm68_vm0, %v64_v5, %v65_v9  ;;  %v62_v15 = vsel %vm59_vm1, %v55_v7, %v56_v10  ;;  %v32_v42 = vld [vmem:[#allocation2] sm:$0xf]  ;;  %s3366_s28 = smov 8   ;;  %s3368_s29 = smov 32  }
  0x14   :  { %111 = vrot.lane.b32.xlu1 %v3428_v11, %s3360_s21  ;;  %95 = vrot.lane.b32.xlu0 %v3432_v12, %s3361_s22  ;;  %v80_v19 = vsel %vm77_vm2, %v73_v13, %v74_v16  ;;  %v81_v20 = vsel %vm77_vm2, %v76_v17, %v73_v13  ;;  %v61_v22 = vsel %vm59_vm1, %v56_v10, %v57_v21  ;;  %vm86_vm3 = vcmp.lt.s32.totalorder %v3401_v1, 7  ;;  %v3545_v10 = vld [vmem:[#allocation2 + $0x140] sm:$0xff]   ;;  %s3369_s30 = smov 16   ;;  %s3370_s3 = smov 80  }
  0x15   :  { %v89_v25 = vsel %vm86_vm3, %v82_v23, %v83_v24  ;;  %v66_v26 = vrot.slane %v3449_v18, 5  ;;  %v60_v27 = vsel %vm59_vm1, %v57_v21, %v58_v8  ;;  %v84_v29 = vrot.slane %v3449_v18, 1  ;;  %s3371_s4 = smov 48   ;;  %s3372_s5 = smov 96  }
  0x16   :  { %v44_v30 = vrot.slane %v3406_v2, 3  ;;  %v45_v31 = vrot.slane %v3418_v4, 3  ;;  %vm50_vm4 = vcmp.lt.s32.totalorder %v3401_v1, 5  ;;  %v75_v34 = vrot.slane %v3449_v18, 7  ;;  %s3373_s6 = smov 112   ;;  %s3375_s7 = smov 24  }
  0x17   :  { %v70_v28 = vsel %vm68_vm0, %v65_v9, %v66_v26  ;;  %v88_v32 = vsel %vm86_vm3, %v83_v24, %v84_v29  ;;  %v69_v35 = vsel %vm68_vm0, %v66_v26, %v67_v6  ;;  %v46_v37 = vrot.slane %v3449_v18, 3  ;;  %s3376_s8 = smov 40   ;;  %s3377_s9 = smov 56  }
  0x18   :  { %113 = vrot.lane.b32.xlu1 %v71_v14, %s3360_s21  ;;  %97 = vrot.lane.b32.xlu0 %v62_v15, %s3361_s22  ;;  %v3488_v33 = vsel %vm50_vm4, %v44_v30, %v45_v31  ;;  %v79_v36 = vsel %vm77_vm2, %v74_v16, %v75_v34  ;;  %vm268_vm5 = vcmask 1040384   ;;  %v35_v40 = vunpack.c.l.bf16 %v33_v39  ;;  %s3379_s10 = smov [#allocation5]  }
  0x19   :  { %v3503_v38 = vsel %vm50_vm4, %v45_v31, %v46_v37  ;;  %v78_v41 = vsel %vm77_vm2, %v75_v34, %v76_v17  ;;  %v34_v43 = vunpack.c.l.bf16 %v32_v42  ;;  %v85_v44 = vrot.slane %v3411_v3, 1  ;;  %s2888_s11 = sshll.u32 %s3379_s10, 4  ;;  %s2889_s11 = int_to_ptr.vmem [resolvable:$true] %s2888_s11 }
  0x1a   :  { %3171 = vmatprep.subr.msk.mxu0 %vm268_vm5, %v35_v40  ;;  %v47_v47 = vrot.slane %v3411_v3, 3  ;;  %vm211_vm6 = vcmask 7168   ;;  %vm4915_vm7 = vcmask 15360   ;;  %vm4914_vm8 = vcmask 23552   ;;  %p3338_p6 = scmp.lt.s32.totalorder %s2889_s11, %s2889_s11 }
  0x1b   :  { %3172 = vmatpush3.msk.msra.mxu0 %vm268_vm5, %v35_v40  ;;  %v87_v45 = vsel %vm86_vm3, %v84_v29, %v85_v44  ;;  %v90_v46 = vsel %vm86_vm3, %v85_v44, %v82_v23  ;;  %vm4913_vm9 = vcmask 31744   ;;  %vm4912_vm10 = vcmask 39936  }
  0x1c   :  { %129 = vrot.lane.b32.xlu1 %v80_v19, %s3362_s25  ;;  %127 = vrot.lane.b32.xlu0 %v81_v20, %s3362_s25  ;;  %v3530_v48 = vsel %vm50_vm4, %v46_v37, %v47_v47  ;;  %v54_v49 = vsel %vm50_vm4, %v47_v47, %v44_v30  ;;  %vm4911_vm11 = vcmask 48128   ;;  %vm4910_vm12 = vcmask 56320  }
  0x1d   :  { %3173 = vmatprep.subr.mxu0 %v34_v43  ;;  %vm246_vm13 = vcmask 64512   ;;  %v2934_v16 = vunpack.c.l.bf16 %v3545_v10  ;;  %vm4909_vm14 = vcmask 72704   ;;  %v2935_v31 = vunpack.c.h.bf16 %v3545_v10 }
  0x1e   :  { %3174 = vmatpush3.msra.mxu0 %v34_v43  ;;  %vm357_vm15 = vcmask 130048  }
  0x20   :  { %99 = vrot.lane.b32.xlu1 %v61_v22, %s3361_s22  ;;  %143 = vrot.lane.b32.xlu0 %v3406_v2, %s3359_s13 }
  0x24   :  { %159 = vrot.lane.b32.xlu1 %v89_v25, %s3363_s0  ;;  %145 = vrot.lane.b32.xlu0 %v3418_v4, %s3359_s13 }
  0x28   :  { %115 = vrot.lane.b32.xlu1 %v70_v28, %s3360_s21  ;;  %101 = vrot.lane.b32.xlu0 %v60_v27, %s3361_s22 }
  0x2c   :  { %161 = vrot.lane.b32.xlu0 %v88_v32, %s3363_s0  ;;  %175 = vrot.lane.b32.xlu1 %v3488_v33, %s3364_s26 }
  0x30   :  { %117 = vrot.lane.b32.xlu0 %v69_v35, %s3360_s21  ;;  %131 = vrot.lane.b32.xlu1 %v79_v36, %s3362_s25 }
  0x34   :  { %177 = vrot.lane.b32.xlu0 %v3503_v38, %s3364_s26  ;;  %187 = vrot.lane.b32.xlu1 %v62_v15, %s3365_s27 }
  0x38   :  { %133 = vrot.lane.b32.xlu0 %v78_v41, %s3362_s25  ;;  %147 = vrot.lane.b32.xlu1 %v3449_v18, %s3359_s13 }
  0x3c   :  { %189 = vrot.lane.b32.xlu0 %v61_v22, %s3365_s27  ;;  %199 = vrot.lane.b32.xlu1 %v71_v14, %s3366_s28 }
  0x40   :  { %149 = vrot.lane.b32.xlu0 %v3411_v3, %s3359_s13  ;;  %163 = vrot.lane.b32.xlu1 %v87_v45, %s3363_s0  ;;  %v3576_v45 = vld [vmem:[#allocation2 + $0x148] sm:$0xff]  }
  0x44   :  { %201 = vrot.lane.b32.xlu0 %v70_v28, %s3366_s28  ;;  %165 = vrot.lane.b32.xlu1 %v90_v46, %s3363_s0 }
  0x48   :  { %179 = vrot.lane.b32.xlu0 %v3530_v48, %s3364_s26  ;;  %181 = vrot.lane.b32.xlu1 %v54_v49, %s3364_s26 }
  0x4c   :  { %191 = vrot.lane.b32.xlu0 %v60_v27, %s3365_s27  ;;  %193 = vrot.lane.b32.xlu1 %v3432_v12, %s3365_s27 }
  0x50   :  { %203 = vrot.lane.b32.xlu0 %v69_v35, %s3366_s28  ;;  %205 = vrot.lane.b32.xlu1 %v3428_v11, %s3366_s28 }
  0x86   :  { %v112_v50 = vpop.permute.xlu1 %111  ;;  %v96_v51 = vpop.permute.xlu0 %95 }
  0x87   :  { %v212_v6 = vsel %vm211_vm6, %v54_v49, %v96_v51 }
  0x88   :  { %v217_v9 = vsel %vm4915_vm7, %v212_v6, %v112_v50  ;;  %v3088_v6 = vld [vmem:[#allocation2 + $0x38] sm:$0xff]  }
  0x8a   :  { %v114_v52 = vpop.permute.xlu1 %113  ;;  %v98_v53 = vpop.permute.xlu0 %97 }
  0x8b   :  { %v213_v19 = vsel %vm211_vm6, %v3488_v33, %v98_v53  ;;  %v2938_v53 = vunpack.c.l.bf16 %v3576_v45 }
  0x8c   :  { %v218_v25 = vsel %vm4915_vm7, %v213_v19, %v114_v52 }
  0x8e   :  { %v130_v54 = vpop.permute.xlu1 %129  ;;  %v128_v55 = vpop.permute.xlu0 %127 }
  0x8f   :  { %v222_v11 = vsel %vm4914_vm8, %v217_v9, %v128_v55  ;;  %v223_v26 = vsel %vm4914_vm8, %v218_v25, %v130_v54  ;;  %v2939_v54 = vunpack.c.h.bf16 %v3576_v45 }
  0x92   :  { %v100_v56 = vpop.permute.xlu1 %99  ;;  %v144_v57 = vpop.permute.xlu0 %143 }
  0x93   :  { %v227_v14 = vsel %vm4913_vm9, %v222_v11, %v144_v57  ;;  %v214_v41 = vsel %vm211_vm6, %v3503_v38, %v100_v56  ;;  %v2967_v11 = vunpack.c.h.bf16 %v3088_v6 }
  0x96   :  { %v160_v58 = vpop.permute.xlu1 %159  ;;  %v146_v59 = vpop.permute.xlu0 %145 }
  0x97   :  { %v232_v15 = vsel %vm4912_vm10, %v227_v14, %v160_v58  ;;  %v228_v29 = vsel %vm4913_vm9, %v223_v26, %v146_v59 }
  0x9a   :  { %v116_v60 = vpop.permute.xlu1 %115  ;;  %v102_v61 = vpop.permute.xlu0 %101 }
  0x9b   :  { %v215_v42 = vsel %vm211_vm6, %v3530_v48, %v102_v61  ;;  %v219_v43 = vsel %vm4915_vm7, %v214_v41, %v116_v60 }
  0x9e   :  { %v162_v62 = vpop.permute.xlu0 %161  ;;  %v176_v63 = vpop.permute.xlu1 %175 }
  0x9f   :  { %v237_v17 = vsel %vm4911_vm11, %v232_v15, %v176_v63  ;;  %v233_v30 = vsel %vm4912_vm10, %v228_v29, %v162_v62 }
  0xa2   :  { %v118_v0 = vpop.permute.xlu0 %117  ;;  %v132_v5 = vpop.permute.xlu1 %131 }
  0xa3   :  { %v220_v44 = vsel %vm4915_vm7, %v215_v42, %v118_v0  ;;  %v224_v46 = vsel %vm4914_vm8, %v219_v43, %v132_v5  ;;  %v3089_v5 = vld [vmem:[#allocation2 + $0x40] sm:$0xff]   ;;  %vm1520_vm7 = vcmask 588800  }
  0xa4   :  { %v2971_v9 = vunpack.c.h.bf16 %v3089_v5 }
  0xa6   :  { %v178_v7 = vpop.permute.xlu0 %177  ;;  %v188_v8 = vpop.permute.xlu1 %187 }
  0xa7   :  { %v242_v20 = vsel %vm4910_vm12, %v237_v17, %v188_v8  ;;  %v238_v32 = vsel %vm4911_vm11, %v233_v30, %v178_v7  ;;  %v3367_v7 = vmov 0.0   ;;  %v2970_v8 = vunpack.c.l.bf16 %v3089_v5 }
  0xa8   :  { %675 = vmatprep.subr.mxu1 %v3367_v7  ;;  %1148 = vmatprep.subr.mxu0 %v3367_v7  ;;  %v3628_v5 = vsub.s32 0, %v3401_v1 }
  0xa9   :  { %676 = vmatpush1.msra.mxu1 %v2971_v9 }
  0xaa   :  { %v134_v12 = vpop.permute.xlu0 %133  ;;  %v148_v13 = vpop.permute.xlu1 %147  ;;  %677 = vmatprep.subr.mxu1 %v3367_v7 }
  0xab   :  { %v225_v47 = vsel %vm4914_vm8, %v220_v44, %v134_v12  ;;  %v229_v51 = vsel %vm4913_vm9, %v224_v46, %v148_v13  ;;  %v3087_v12 = vld [vmem:[#allocation2 + $0x30] sm:$0xff]   ;;  %678 = vmatpush1.msra.mxu1 %v2970_v8  ;;  %v2966_v13 = vunpack.c.l.bf16 %v3088_v6  ;;  %v3086_v6 = vld [vmem:[#allocation2 + $0x28] sm:$0xff]   ;;  %vm650_vm8 = vcmask 916480  }
  0xac   :  { %679 = vmatprep.subr.mxu1 %v3367_v7  ;;  %v2963_v14 = vunpack.c.h.bf16 %v3087_v12  ;;  %v2962_v17 = vunpack.c.l.bf16 %v3087_v12  ;;  %v2959_v9 = vunpack.c.h.bf16 %v3086_v6 }
  0xad   :  { %680 = vmatpush1.msra.mxu1 %v2967_v11  ;;  %v2958_v11 = vunpack.c.l.bf16 %v3086_v6  ;;  %v3082_v6 = vld [vmem:[#allocation2 + $0x8] sm:$0xff]  }
  0xae   :  { %v190_v21 = vpop.permute.xlu0 %189  ;;  %v200_v22 = vpop.permute.xlu1 %199  ;;  %681 = vmatprep.subr.mxu1 %v3367_v7 }
  0xaf   :  { %v247_v23 = vsel %vm246_vm13, %v242_v20, %v200_v22  ;;  %v243_v33 = vsel %vm4910_vm12, %v238_v32, %v190_v21  ;;  %682 = vmatpush1.msra.mxu1 %v2966_v13 }
  0xb0   :  { %v251_v24 = vmul.f32 %v2934_v16, %v247_v23  ;;  %683 = vmatprep.subr.mxu1 %v3367_v7 }
  0xb1   :  { %684 = vmatpush1.msra.mxu1 %v2963_v14  ;;  %v3632_v14 = vsub.s32 1, %v3401_v1 }
  0xb2   :  { %v150_v27 = vpop.permute.xlu0 %149  ;;  %3175 = vmatprep.mubr.msk.f32.mxu0 %vm4909_vm14, %v251_v24  ;;  %v164_v28 = vpop.permute.xlu1 %163  ;;  %685 = vmatprep.subr.mxu1 %v3367_v7 }
  0xb3   :  { %v230_v52 = vsel %vm4913_vm9, %v225_v47, %v150_v27  ;;  %v234_v38 = vsel %vm4912_vm10, %v229_v51, %v164_v28  ;;  %686 = vmatpush1.msra.mxu1 %v2962_v17  ;;  %v3085_v17 = vld [vmem:[#allocation2 + $0x20] sm:$0xff]   ;;  %vm645_vm9 = vcmask 785408  }
  0xb4   :  { %687 = vmatprep.subr.mxu1 %v3367_v7 }
  0xb5   :  { %688 = vmatpush1.msra.mxu1 %v2959_v9 }
  0xb6   :  { %v202_v34 = vpop.permute.xlu0 %201  ;;  %v166_v35 = vpop.permute.xlu1 %165  ;;  %689 = vmatprep.subr.mxu1 %v3367_v7 }
  0xb7   :  { %v248_v36 = vsel %vm246_vm13, %v243_v33, %v202_v34  ;;  %v235_v48 = vsel %vm4912_vm10, %v230_v52, %v166_v35  ;;  %690 = vmatpush1.msra.mxu1 %v2958_v11  ;;  %vm640_vm10 = vcmask 654336  }
  0xb8   :  { %v252_v37 = vmul.f32 %v2935_v31, %v248_v36  ;;  %691 = vmatprep.subr.mxu1 %v3367_v7 }
  0xba   :  { %v180_v39 = vpop.permute.xlu0 %179  ;;  %v182_v40 = vpop.permute.xlu1 %181  ;;  %3176 = vmatmul.mubr.msk.f32.vlgmr.msra.gmra.mxu0 %vm4909_vm14, %v252_v37 }
  0xbb   :  { %v239_v55 = vsel %vm4911_vm11, %v234_v38, %v180_v39  ;;  %v240_v56 = vsel %vm4911_vm11, %v235_v48, %v182_v40  ;;  %vm635_vm11 = vcmask 523264  }
  0xbe   :  { %v192_v49 = vpop.permute.xlu0 %191  ;;  %v194_v50 = vpop.permute.xlu1 %193 }
  0xbf   :  { %v244_v57 = vsel %vm4910_vm12, %v239_v55, %v192_v49  ;;  %v245_v58 = vsel %vm4910_vm12, %v240_v56, %v194_v50  ;;  %vm630_vm12 = vcmask 392192  }
  0xc2   :  { %v204_v59 = vpop.permute.xlu0 %203  ;;  %v206_v60 = vpop.permute.xlu1 %205 }
  0xc3   :  { %v249_v61 = vsel %vm246_vm13, %v244_v57, %v204_v59  ;;  %v250_v62 = vsel %vm246_vm13, %v245_v58, %v206_v60 }
  0xc4   :  { %v253_v63 = vmul.f32 %v2938_v53, %v249_v61  ;;  %v254_v0 = vmul.f32 %v2939_v54, %v250_v62  ;;  %v30_v61 = vld [vmem:[#allocation2 + $0x58] sm:$0x7] }
  0xc5   :  { %v3624_v62 = vunpack.c.l.bf16 %v30_v61 }
  0xc6   :  { %3178 = vmatprep.mubr.msk.f32.mxu0 %vm4909_vm14, %v253_v63 }
  0xc7   :  { %3179 = vmatmul.mubr.msk.f32.gmra.mxu0 %vm4909_vm14, %v254_v0  ;;  %vm625_vm14 = vcmask 261120  }
 0x17a   :  { %v3603_v15 = vpop.f32.mrf.mxu0 }
 0x17b   :  { %v374_v21 = vmul.f32 %v3603_v15, %v3603_v15  ;;  %v359_v24 = vsel %vm357_vm15, %v3603_v15, 0.0 }
 0x17c   :  { %v3607_v19 = vpop.f32.mrf.mxu0 }
 0x17d   :  { %v373_v20 = vmul.f32 %v3607_v19, %v3607_v19  ;;  %v358_v22 = vsel %vm357_vm15, %v3607_v19, 0.0  ;;  %v378_v28 = vsel %vm357_vm15, %v374_v21, 0.0  ;;  %v2954_v21 = vunpack.c.l.bf16 %v3085_v17 }
 0x17e   :  { %v360_v26 = vadd.f32 %v359_v24, %v358_v22 }
 0x17f   :  { %v377_v25 = vsel %vm357_vm15, %v373_v20, 0.0  ;;  %v2955_v20 = vunpack.c.h.bf16 %v3085_v17 }
 0x180   :  { %v379_v33 = vadd.f32 %v378_v28, %v377_v25 }
 0x181   :  { %692 = vmatpush1.msra.mxu1 %v2955_v20 }
 0x182   :  { %693 = vmatprep.subr.mxu1 %v3367_v7 }
 0x183   :  { %694 = vmatpush1.msra.mxu1 %v2954_v21 }
 0x184   :  { %695 = vmatprep.subr.mxu1 %v3367_v7 }
 0x187   :  { %v3180_v23 = vpop.f32.mrf.mxu0 }
 0x188   :  { %v376_v29 = vmul.f32 %v3180_v23, %v3180_v23  ;;  %v363_v35 = vsel %vm357_vm15, %v3180_v23, 0.0 }
 0x189   :  { %v348_v27 = vpop.f32.mrf.mxu0 }
 0x18a   :  { %v361_v30 = vsel %vm357_vm15, %v348_v27, 0.0  ;;  %v375_v32 = vmul.f32 %v348_v27, %v348_v27  ;;  %v382_v40 = vsel %vm357_vm15, %v376_v29, 0.0  ;;  %v3084_v29 = vld [vmem:[#allocation2 + $0x18] sm:$0xff]  }
 0x18b   :  { %v362_v34 = vadd.f32 %v361_v30, %v360_v26 }
 0x18c   :  { %v380_v36 = vsel %vm357_vm15, %v375_v32, 0.0 }
 0x18d   :  { %v364_v37 = vadd.f32 %v363_v35, %v362_v34  ;;  %v381_v39 = vadd.f32 %v380_v36, %v379_v33  ;;  %v3641_v35 = vld [vmem:[#allocation2 + $0x170] sm:$0xff]   ;;  %v2951_v36 = vunpack.c.h.bf16 %v3084_v29 }
 0x18f   :  { %v365_v41 = vrot.slane %v364_v37, 4  ;;  %v383_v42 = vadd.f32 %v382_v40, %v381_v39  ;;  %v2986_v40 = vunpack.c.l.bf16 %v3641_v35  ;;  %696 = vmatpush1.msra.mxu1 %v2951_v36 }
 0x190   :  { %697 = vmatprep.subr.mxu1 %v3367_v7 }
 0x191   :  { %v366_v43 = vadd.f32 %v365_v41, %v364_v37  ;;  %v384_v44 = vrot.slane %v383_v42, 4 }
 0x193   :  { %v367_v46 = vrot.slane %v366_v43, 2  ;;  %v385_v47 = vadd.f32 %v384_v44, %v383_v42 }
 0x195   :  { %v368_v49 = vadd.f32 %v367_v46, %v366_v43  ;;  %v386_v50 = vrot.slane %v385_v47, 2 }
 0x197   :  { %v369_v51 = vrot.slane %v368_v49, 1  ;;  %v387_v52 = vadd.f32 %v386_v50, %v385_v47 }
 0x199   :  { %v370_v38 = vadd.f32 %v369_v51, %v368_v49  ;;  %v388_v48 = vrot.slane %v387_v52, 1 }
 0x19b   :  { %v372_v55 = vmul.f32 0.03125, %v370_v38  ;;  %v389_v56 = vadd.f32 %v388_v48, %v387_v52 }
 0x19d   :  { %v390_v57 = vmul.f32 0.03125, %v389_v56  ;;  %v391_v58 = vmul.f32 %v372_v55, %v372_v55  ;;  %v3083_v56 = vld [vmem:[#allocation2 + $0x10] sm:$0xff]  }
 0x19f   :  { %v392_v59 = vsub.f32 %v390_v57, %v391_v58 }
 0x1a1   :  { %v393_v60 = vadd.f32 1e-05, %v392_v59 }
 0x1a3   :  { %3293 = vrsqrt.f32 %v393_v60 }
 0x1b0   :  { %v3294_v63 = vpop.eup %3293 }
 0x1b1   :  { %v395_v0 = vmul.f32 %v3294_v63, %v3624_v62  ;;  %v2947_v63 = vunpack.c.h.bf16 %v3083_v56 }
 0x1b3   :  { %v404_v8 = vmul.f32 %v395_v0, %v372_v55  ;;  %v399_v12 = vrot.slane %v395_v0, %v3628_v5  ;;  %v2946_v0 = vunpack.c.l.bf16 %v3083_v56  ;;  %v3811_v56 = vld [vmem:[#allocation2 + $0x160] sm:$0xff]  }
 0x1b5   :  { %v406_v13 = vrot.slane %v404_v8, 7  ;;  %v400_v24 = vmul.f32 %v399_v12, %v3607_v19  ;;  %v401_v25 = vmul.f32 %v3603_v15, %v399_v12  ;;  %v403_v26 = vmul.f32 %v3180_v23, %v399_v12 }
 0x1b6   :  { %v402_v30 = vmul.f32 %v399_v12, %v348_v27  ;;  %v2950_v23 = vunpack.c.l.bf16 %v3084_v29  ;;  %v2943_v8 = vunpack.c.h.bf16 %v3082_v6  ;;  %v3090_v12 = vld [vmem:[#allocation2 + $0x48] sm:$0xff]  }
 0x1b7   :  { %v408_v22 = vsub.f32 %v3624_v62, %v406_v13  ;;  %v2942_v13 = vunpack.c.l.bf16 %v3082_v6  ;;  %v2975_v21 = vunpack.c.h.bf16 %v3090_v12 }
 0x1b8   :  { %698 = vmatpush1.msra.mxu1 %v2950_v23 }
 0x1b9   :  { %v412_v28 = vrot.slane %v408_v22, %v3632_v14  ;;  %699 = vmatprep.subr.mxu1 %v3367_v7  ;;  %v2974_v22 = vunpack.c.l.bf16 %v3090_v12 }
 0x1ba   :  { %700 = vmatpush1.msra.mxu1 %v2947_v63 }
 0x1bb   :  { %v414_v32 = vadd.f32 %v412_v28, %v401_v25  ;;  %v413_v33 = vadd.f32 %v412_v28, %v400_v24  ;;  %v416_v34 = vadd.f32 %v412_v28, %v403_v26  ;;  %v415_v37 = vadd.f32 %v412_v28, %v402_v30  ;;  %701 = vmatprep.subr.mxu1 %v3367_v7 }
 0x1bc   :  { %702 = vmatpush1.msra.mxu1 %v2946_v0 }
 0x1bd   :  { %v3644_v19 = vmax.f32 %v414_v32, 0.0  ;;  %v3646_v15 = vmax.f32 %v413_v33, 0.0  ;;  %v3648_v39 = vmax.f32 %v416_v34, 0.0  ;;  %v3658_v42 = vmax.f32 %v415_v37, 0.0  ;;  %703 = vmatprep.subr.mxu1 %v3367_v7 }
 0x1be   :  { %704 = vmatpush1.msra.mxu1 %v2943_v8 }
 0x1bf   :  { %567 = vrot.lane.b32.xlu0 %v3644_v19, %s3358_s12  ;;  %565 = vrot.lane.b32.xlu1 %v3646_v15, %s3358_s12  ;;  %v489_v27 = vrot.slane %v3646_v15, 5  ;;  %v490_v41 = vrot.slane %v3644_v19, 5  ;;  %v492_v46 = vrot.slane %v3648_v39, 5  ;;  %v481_v47 = vrot.slane %v3646_v15, 4 }
 0x1c0   :  { %v484_v49 = vrot.slane %v3648_v39, 4  ;;  %v505_v50 = vrot.slane %v3646_v15, 1  ;;  %v506_v51 = vrot.slane %v3644_v19, 1  ;;  %v497_v52 = vrot.slane %v3646_v15, 7  ;;  %705 = vmatprep.subr.mxu1 %v3367_v7 }
 0x1c1   :  { %v495_v43 = vsel %vm68_vm0, %v489_v27, %v490_v41  ;;  %v500_v38 = vrot.slane %v3648_v39, 7  ;;  %v3683_v48 = vsel %vm68_vm0, %v492_v46, %v489_v27  ;;  %v482_v59 = vrot.slane %v3644_v19, 4  ;;  %706 = vmatpush1.msra.mxu1 %v2942_v13 }
 0x1c2   :  { %v656_v44 = vmul.f32 %v2986_v40, %v495_v43  ;;  %v3689_v55 = vsel %vm59_vm1, %v484_v49, %v481_v47  ;;  %v511_v57 = vsel %vm86_vm3, %v505_v50, %v506_v51  ;;  %v473_v60 = vrot.slane %v3646_v15, 3  ;;  %735 = vmatprep.subr.mxu1 %v3367_v7 }
 0x1c3   :  { %571 = vrot.lane.b32.xlu0 %v3648_v39, %s3358_s12  ;;  %569 = vrot.lane.b32.xlu1 %v3658_v42, %s3358_s12  ;;  %v504_v58 = vsel %vm77_vm2, %v500_v38, %v497_v52  ;;  %v474_v61 = vrot.slane %v3644_v19, 3  ;;  %v487_v9 = vsel %vm59_vm1, %v481_v47, %v482_v59  ;;  %v498_v17 = vrot.slane %v3644_v19, 7 }
 0x1c4   :  { %2902 = vmatprep.mubr.msk.f32.mxu1 %vm357_vm15, %v656_v44  ;;  %v483_v20 = vrot.slane %v3658_v42, 4  ;;  %v507_v26 = vrot.slane %v3658_v42, 1  ;;  %v491_v28 = vrot.slane %v3658_v42, 5  ;;  %736 = vmatpush2.msra.mxu1 %v2975_v21  ;;  %v475_v32 = vrot.slane %v3658_v42, 3 }
 0x1c5   :  { %v3715_v11 = vsel %vm50_vm4, %v473_v60, %v474_v61  ;;  %v503_v24 = vsel %vm77_vm2, %v497_v52, %v498_v17  ;;  %737 = vmatprep.subr.mxu1 %v3367_v7  ;;  %v499_v33 = vrot.slane %v3658_v42, 7  ;;  %v508_v37 = vrot.slane %v3648_v39, 1 }
 0x1c6   :  { %v486_v25 = vsel %vm59_vm1, %v482_v59, %v483_v20  ;;  %738 = vmatpush2.msra.mxu1 %v2974_v22  ;;  %v510_v29 = vsel %vm86_vm3, %v506_v51, %v507_v26  ;;  %v3742_v30 = vsel %vm68_vm0, %v490_v41, %v491_v28  ;;  %v3751_v34 = vsel %vm50_vm4, %v474_v61, %v475_v32 }
 0x1c7   :  { %533 = vrot.lane.b32.xlu1 %v3683_v48, %s3368_s29  ;;  %517 = vrot.lane.b32.xlu0 %v3689_v55, %s3369_s30  ;;  %v502_v36 = vsel %vm77_vm2, %v498_v17, %v499_v33  ;;  %v509_v19 = vsel %vm86_vm3, %v507_v26, %v508_v37  ;;  %v476_v23 = vrot.slane %v3648_v39, 3  ;;  %v485_v27 = vsel %vm59_vm1, %v483_v20, %v484_v49  ;;  %v3828_v26 = vld [vmem:[#allocation2 + $0x178] sm:$0xff]  }
 0x1c8   :  { %v3779_v42 = vsel %vm68_vm0, %v491_v28, %v492_v46  ;;  %v501_v44 = vsel %vm77_vm2, %v499_v33, %v500_v38  ;;  %v512_v47 = vsel %vm86_vm3, %v508_v37, %v505_v50  ;;  %v2987_v61 = vunpack.c.h.bf16 %v3641_v35 }
 0x1c9   :  { %v3770_v41 = vsel %vm50_vm4, %v475_v32, %v476_v23  ;;  %v480_v46 = vsel %vm50_vm4, %v476_v23, %v473_v60  ;;  %v2978_v60 = vunpack.c.l.bf16 %v3811_v56  ;;  %v2979_v32 = vunpack.c.h.bf16 %v3811_v56 }
 0x1ca   :  { %v658_v12 = vmul.f32 %v2987_v61, %v3742_v30  ;;  %v2990_v33 = vunpack.c.l.bf16 %v3828_v26 }
 0x1cb   :  { %581 = vrot.lane.b32.xlu1 %v511_v57, %s3370_s3  ;;  %549 = vrot.lane.b32.xlu0 %v504_v58, %s3371_s4 }
 0x1cf   :  { %519 = vrot.lane.b32.xlu0 %v487_v9, %s3369_s30  ;;  %597 = vrot.lane.b32.xlu1 %v3715_v11, %s3372_s5 }
 0x1d3   :  { %535 = vrot.lane.b32.xlu0 %v495_v43, %s3368_s29  ;;  %609 = vrot.lane.b32.xlu1 %v487_v9, %s3373_s6  ;;  %v3374_v43 = vmov 0  }
 0x1d4   :  { %3292 = vset.pattern.permute.xlu1 %v3374_v43  ;;  %3291 = vset.pattern.permute.xlu0 %v3374_v43 }
 0x1d7   :  { %551 = vrot.lane.b32.xlu0 %v503_v24, %s3371_s4  ;;  %521 = vrot.lane.b32.xlu1 %v486_v25, %s3369_s30 }
 0x1db   :  { %583 = vrot.lane.b32.xlu0 %v510_v29, %s3370_s3  ;;  %537 = vrot.lane.b32.xlu1 %v3742_v30, %s3368_s29 }
 0x1df   :  { %599 = vrot.lane.b32.xlu0 %v3751_v34, %s3372_s5  ;;  %553 = vrot.lane.b32.xlu1 %v502_v36, %s3371_s4 }
 0x1e3   :  { %611 = vrot.lane.b32.xlu0 %v486_v25, %s3373_s6  ;;  %585 = vrot.lane.b32.xlu1 %v509_v19, %s3370_s3 }
 0x1e7   :  { %523 = vrot.lane.b32.xlu0 %v485_v27, %s3369_s30  ;;  %601 = vrot.lane.b32.xlu1 %v3770_v41, %s3372_s5 }
 0x1eb   :  { %539 = vrot.lane.b32.xlu0 %v3779_v42, %s3368_s29  ;;  %613 = vrot.lane.b32.xlu1 %v485_v27, %s3373_s6 }
 0x1ef   :  { %555 = vrot.lane.b32.xlu0 %v501_v44, %s3371_s4  ;;  %587 = vrot.lane.b32.xlu1 %v512_v47, %s3370_s3  ;;  %v660_v47 = vmul.f32 %v2990_v33, %v3779_v42 }
 0x1f3   :  { %603 = vrot.lane.b32.xlu0 %v480_v46, %s3372_s5  ;;  %615 = vrot.lane.b32.xlu1 %v3689_v55, %s3373_s6 }
 0x1f7   :  { %829 = vperm.xlu1 %3292, %v3418_v4   ;;  %825 = vperm.xlu0 %3291, %v3406_v2  }
 0x1fb   :  { %833 = vperm.xlu1 %3292, %v3449_v18   ;;  %837 = vperm.xlu0 %3291, %v3411_v3  }
 0x231   :  { %v568_v39 = vpop.permute.xlu0 %567  ;;  %v566_v49 = vpop.permute.xlu1 %565 }
 0x235   :  { %v3805_v50 = vpop.permute.xlu0 %571  ;;  %v570_v15 = vpop.permute.xlu1 %569 }
 0x239   :  { %v534_v51 = vpop.permute.xlu1 %533  ;;  %v518_v52 = vpop.permute.xlu0 %517 }
 0x23a   :  { %v621_v38 = vsel %vm357_vm15, %v480_v46, %v518_v52 }
 0x23b   :  { %v626_v2 = vsel %vm625_vm14, %v621_v38, %v534_v51  ;;  %v2991_v38 = vunpack.c.h.bf16 %v3828_v26 }
 0x23d   :  { %v582_v55 = vpop.permute.xlu1 %581  ;;  %v550_v4 = vpop.permute.xlu0 %549 }
 0x23e   :  { %v631_v18 = vsel %vm630_vm12, %v626_v2, %v550_v4 }
 0x23f   :  { %v636_v3 = vsel %vm635_vm11, %v631_v18, %v566_v49 }
 0x240   :  { %v641_v59 = vsel %vm640_vm10, %v636_v3, %v582_v55 }
 0x241   :  { %v520_v57 = vpop.permute.xlu0 %519  ;;  %v598_v58 = vpop.permute.xlu1 %597 }
 0x242   :  { %v646_v63 = vsel %vm645_vm9, %v641_v59, %v598_v58  ;;  %v622_v22 = vsel %vm357_vm15, %v3715_v11, %v520_v57  ;;  %v662_v57 = vmul.f32 %v2991_v38, %v3683_v48 }
 0x245   :  { %v536_v0 = vpop.permute.xlu0 %535  ;;  %v610_v6 = vpop.permute.xlu1 %609 }
 0x246   :  { %v651_v8 = vsel %vm650_vm8, %v646_v63, %v610_v6  ;;  %v627_v24 = vsel %vm625_vm14, %v622_v22, %v536_v0 }
 0x247   :  { %v655_v9 = vmul.f32 %v2978_v60, %v651_v8 }
 0x249   :  { %v552_v13 = vpop.permute.xlu0 %551  ;;  %740 = vmatmul.mubr.f32.vlgmr.msra.gmra.mxu1 %v655_v9  ;;  %v522_v17 = vpop.permute.xlu1 %521 }
 0x24a   :  { %2903 = vmatprep.mubr.msk.f32.mxu1 %vm357_vm15, %v658_v12  ;;  %v632_v25 = vsel %vm630_vm12, %v627_v24, %v552_v13  ;;  %v623_v23 = vsel %vm357_vm15, %v3751_v34, %v522_v17 }
 0x24b   :  { %v637_v30 = vsel %vm635_vm11, %v632_v25, %v568_v39  ;;  %v3845_v39 = vld [vmem:[#allocation2 + $0x168] sm:$0xff]  }
 0x24c   :  { %v2982_v52 = vunpack.c.l.bf16 %v3845_v39  ;;  %v2983_v9 = vunpack.c.h.bf16 %v3845_v39 }
 0x24d   :  { %v584_v20 = vpop.permute.xlu0 %583  ;;  %v538_v21 = vpop.permute.xlu1 %537 }
 0x24e   :  { %v642_v36 = vsel %vm640_vm10, %v637_v30, %v584_v20  ;;  %v628_v43 = vsel %vm625_vm14, %v623_v23, %v538_v21  ;;  %v822_v20 = vld [vmem:[#allocation2 + $0x50] sm:$0x1] }
 0x24f   :  { %v823_v21 = vunpack.c.l.bf16 %v822_v20 }
 0x251   :  { %v600_v28 = vpop.permute.xlu0 %599  ;;  %v554_v29 = vpop.permute.xlu1 %553  ;;  %v843_v22 = vrot.slane %v823_v21, %v3628_v5 }
 0x252   :  { %v647_v37 = vsel %vm645_vm9, %v642_v36, %v600_v28  ;;  %v633_v46 = vsel %vm630_vm12, %v628_v43, %v554_v29 }
 0x253   :  { %v638_v34 = vsel %vm635_vm11, %v633_v46, %v570_v15 }
 0x255   :  { %v612_v19 = vpop.permute.xlu0 %611  ;;  %v586_v11 = vpop.permute.xlu1 %585 }
 0x256   :  { %v652_v27 = vsel %vm650_vm8, %v647_v37, %v612_v19  ;;  %v643_v55 = vsel %vm640_vm10, %v638_v34, %v586_v11 }
 0x257   :  { %v657_v44 = vmul.f32 %v2979_v32, %v652_v27 }
 0x259   :  { %v524_v49 = vpop.permute.xlu0 %523  ;;  %v602_v51 = vpop.permute.xlu1 %601  ;;  %745 = vmatmul.mubr.f32.gmra.mxu1 %v657_v44 }
 0x25a   :  { %2904 = vmatprep.mubr.msk.f32.mxu1 %vm357_vm15, %v660_v47  ;;  %v648_v4 = vsel %vm645_vm9, %v643_v55, %v602_v51  ;;  %v624_v15 = vsel %vm357_vm15, %v3770_v41, %v524_v49 }
 0x25d   :  { %v540_v42 = vpop.permute.xlu0 %539  ;;  %v614_v2 = vpop.permute.xlu1 %613 }
 0x25e   :  { %v653_v18 = vsel %vm650_vm8, %v648_v4, %v614_v2  ;;  %v629_v58 = vsel %vm625_vm14, %v624_v15, %v540_v42 }
 0x25f   :  { %v659_v3 = vmul.f32 %v2982_v52, %v653_v18 }
 0x261   :  { %v556_v59 = vpop.permute.xlu0 %555  ;;  %v588_v63 = vpop.permute.xlu1 %587  ;;  %750 = vmatmul.mubr.f32.gmra.mxu1 %v659_v3 }
 0x262   :  { %v634_v0 = vsel %vm630_vm12, %v629_v58, %v556_v59  ;;  %2905 = vmatprep.mubr.msk.f32.mxu1 %vm357_vm15, %v662_v57 }
 0x263   :  { %v639_v6 = vsel %vm635_vm11, %v634_v0, %v3805_v50 }
 0x264   :  { %v644_v8 = vsel %vm640_vm10, %v639_v6, %v588_v63 }
 0x265   :  { %v604_v48 = vpop.permute.xlu0 %603  ;;  %v616_v12 = vpop.permute.xlu1 %615 }
 0x266   :  { %v649_v41 = vsel %vm645_vm9, %v644_v8, %v604_v48  ;;  %v3102_v48 = vld [vmem:[#allocation2 + $0x98] sm:$0xff]  }
 0x267   :  { %v654_v13 = vsel %vm650_vm8, %v649_v41, %v616_v12  ;;  %v3101_v12 = vld [vmem:[#allocation2 + $0x90] sm:$0xff]   ;;  %v3023_v41 = vunpack.c.h.bf16 %v3102_v48 }
 0x268   :  { %v661_v17 = vmul.f32 %v2983_v9, %v654_v13  ;;  %v3022_v13 = vunpack.c.l.bf16 %v3102_v48  ;;  %v3019_v21 = vunpack.c.h.bf16 %v3101_v12 }
 0x269   :  { %1149 = vmatpush1.msra.mxu0 %v3023_v41 }
 0x26a   :  { %755 = vmatmul.mubr.f32.gmra.mxu1 %v661_v17  ;;  %1150 = vmatprep.subr.mxu0 %v3367_v7 }
 0x26b   :  { %1151 = vmatpush1.msra.mxu0 %v3022_v13 }
 0x26c   :  { %1152 = vmatprep.subr.mxu0 %v3367_v7 }
 0x26d   :  { %1153 = vmatpush1.msra.mxu0 %v3019_v21 }
 0x26e   :  { %1154 = vmatprep.subr.mxu0 %v3367_v7 }
 0x272   :  { %v830_v24 = vpop.permute.xlu1 %829  ;;  %v826_v50 = vpop.permute.xlu0 %825 }
 0x273   :  { %v3873_v25 = vmul.f32 %v843_v22, %v830_v24  ;;  %v3875_v28 = vmul.f32 %v843_v22, %v826_v50  ;;  %v3100_v24 = vld [vmem:[#allocation2 + $0x88] sm:$0xff]   ;;  %v3018_v50 = vunpack.c.l.bf16 %v3101_v12 }
 0x275   :  { %v863_v30 = vmul.f32 %v3873_v25, %v3873_v25  ;;  %v849_v36 = vsel %vm357_vm15, %v3873_v25, 0.0  ;;  %v848_v37 = vsel %vm357_vm15, %v3875_v28, 0.0  ;;  %v862_v19 = vmul.f32 %v3875_v28, %v3875_v28  ;;  %1155 = vmatpush1.msra.mxu0 %v3018_v50 }
 0x276   :  { %v834_v29 = vpop.permute.xlu1 %833  ;;  %v838_v23 = vpop.permute.xlu0 %837  ;;  %v850_v43 = vadd.f32 %v849_v36, %v848_v37  ;;  %v3015_v37 = vunpack.c.h.bf16 %v3100_v24  ;;  %1156 = vmatprep.subr.mxu0 %v3367_v7 }
 0x277   :  { %v3885_v11 = vmul.f32 %v843_v22, %v834_v29  ;;  %v867_v27 = vsel %vm357_vm15, %v863_v30, 0.0  ;;  %v866_v44 = vsel %vm357_vm15, %v862_v19, 0.0  ;;  %v3893_v49 = vmul.f32 %v843_v22, %v838_v23 }
 0x278   :  { %v868_v51 = vadd.f32 %v867_v27, %v866_v44  ;;  %v3014_v19 = vunpack.c.l.bf16 %v3100_v24  ;;  %1157 = vmatpush1.msra.mxu0 %v3015_v37 }
 0x279   :  { %v851_v47 = vsel %vm357_vm15, %v3885_v11, 0.0  ;;  %v864_v46 = vmul.f32 %v3885_v11, %v3885_v11  ;;  %v853_v4 = vsel %vm357_vm15, %v3893_v49, 0.0  ;;  %v865_v42 = vmul.f32 %v3893_v49, %v3893_v49  ;;  %1158 = vmatprep.subr.mxu0 %v3367_v7 }
 0x27a   :  { %v852_v34 = vadd.f32 %v851_v47, %v850_v43  ;;  %1159 = vmatpush1.msra.mxu0 %v3014_v19 }
 0x27b   :  { %v869_v55 = vsel %vm357_vm15, %v864_v46, 0.0  ;;  %v871_v3 = vsel %vm357_vm15, %v865_v42, 0.0  ;;  %1160 = vmatprep.subr.mxu0 %v3367_v7 }
 0x27c   :  { %v870_v2 = vadd.f32 %v869_v55, %v868_v51  ;;  %v854_v18 = vadd.f32 %v853_v4, %v852_v34 }
 0x27e   :  { %v855_v58 = vrot.slane %v854_v18, 4  ;;  %v872_v59 = vadd.f32 %v871_v3, %v870_v2 }
 0x280   :  { %v856_v63 = vadd.f32 %v855_v58, %v854_v18  ;;  %v873_v0 = vrot.slane %v872_v59, 4 }
 0x282   :  { %v857_v6 = vrot.slane %v856_v63, 2  ;;  %v874_v8 = vadd.f32 %v873_v0, %v872_v59 }
 0x284   :  { %v858_v17 = vadd.f32 %v857_v6, %v856_v63  ;;  %v875_v20 = vrot.slane %v874_v8, 2 }
 0x286   :  { %v859_v30 = vrot.slane %v858_v17, 1  ;;  %v876_v36 = vadd.f32 %v875_v20, %v874_v8 }
 0x288   :  { %v860_v23 = vadd.f32 %v859_v30, %v858_v17  ;;  %v877_v27 = vrot.slane %v876_v36, 1 }
 0x28a   :  { %v861_v46 = vmul.f32 0.03125, %v860_v23  ;;  %v878_v51 = vadd.f32 %v877_v27, %v876_v36 }
 0x28c   :  { %v879_v3 = vmul.f32 0.03125, %v878_v51 }
 0x309   :  { %v3901_v57 = vpop.f32.mrf.mxu1 }
 0x30a   :  { %v774_v34 = vmul.f32 %v3901_v57, %v3901_v57  ;;  %v760_v42 = vsel %vm357_vm15, %v3901_v57, 0.0 }
 0x30b   :  { %v743_v15 = vpop.f32.mrf.mxu1 }
 0x30c   :  { %v880_v15 = vmul.f32 %v861_v46, %v861_v46  ;;  %v778_v59 = vsel %vm357_vm15, %v774_v34, 0.0 }
 0x30e   :  { %v881_v41 = vsub.f32 %v879_v3, %v880_v15 }
 0x319   :  { %v3903_v22 = vpop.f32.mrf.mxu1 }
 0x31a   :  { %v775_v44 = vmul.f32 %v3903_v22, %v3903_v22  ;;  %v761_v55 = vsel %vm357_vm15, %v3903_v22, 0.0 }
 0x31b   :  { %v748_v29 = vpop.f32.mrf.mxu1  ;;  %v762_v58 = vadd.f32 %v761_v55, %v760_v42 }
 0x31c   :  { %v779_v2 = vsel %vm357_vm15, %v775_v44, 0.0  ;;  %v882_v29 = vadd.f32 1e-05, %v881_v41 }
 0x31d   :  { %v780_v0 = vadd.f32 %v779_v2, %v778_v59 }
 0x31e   :  { %3295 = vrsqrt.f32 %v882_v29 }
 0x321   :  { %v3909_v43 = vpop.f32.mrf.mxu1 }
 0x322   :  { %v776_v4 = vmul.f32 %v3909_v43, %v3909_v43  ;;  %v763_v18 = vsel %vm357_vm15, %v3909_v43, 0.0 }
 0x323   :  { %v753_v47 = vpop.f32.mrf.mxu1  ;;  %v764_v6 = vadd.f32 %v763_v18, %v762_v58 }
 0x324   :  { %v781_v63 = vsel %vm357_vm15, %v776_v4, 0.0 }
 0x325   :  { %v782_v13 = vadd.f32 %v781_v63, %v780_v0  ;;  %v3932_v63 = vsub.s32 4, %v3401_v1 }
 0x32a   :  { %v756_v8 = vpop.f32.mrf.mxu1 }
 0x32b   :  { %v765_v48 = vsel %vm357_vm15, %v756_v8, 0.0  ;;  %v777_v12 = vmul.f32 %v756_v8, %v756_v8  ;;  %v3296_v15 = vpop.eup %3295 }
 0x32c   :  { %v766_v17 = vadd.f32 %v765_v48, %v764_v6  ;;  %v758_v20 = vpop.f32.mrf.mxu1  ;;  %v884_v58 = vmul.f32 %v3296_v15, %v3624_v62  ;;  %v3935_v48 = vsub.s32 5, %v3401_v1 }
 0x32d   :  { %v783_v21 = vsel %vm357_vm15, %v777_v12, 0.0 }
 0x32e   :  { %v767_v24 = vrot.slane %v766_v17, 4  ;;  %v784_v50 = vadd.f32 %v783_v21, %v782_v13  ;;  %v893_v59 = vmul.f32 %v884_v58, %v861_v46  ;;  %v888_v12 = vrot.slane %v884_v58, %v3932_v63  ;;  %v3099_v21 = vld [vmem:[#allocation2 + $0x80] sm:$0xff]   ;;  %v3097_v58 = vld [vmem:[#allocation2 + $0x70] sm:$0xff]  }
 0x330   :  { %v768_v30 = vadd.f32 %v767_v24, %v766_v17  ;;  %v785_v36 = vrot.slane %v784_v50, 4  ;;  %v895_v0 = vrot.slane %v893_v59, 7  ;;  %v3941_v17 = vsub.s32 2, %v3401_v1 }
 0x331   :  { %v889_v46 = vmul.f32 %v888_v12, %v3875_v28  ;;  %v890_v24 = vmul.f32 %v888_v12, %v3873_v25 }
 0x332   :  { %v769_v37 = vrot.slane %v768_v30, 2  ;;  %v786_v19 = vadd.f32 %v785_v36, %v784_v50  ;;  %v897_v41 = vsub.f32 %v3624_v62, %v895_v0  ;;  %v3948_v36 = vsub.s32 3, %v3401_v1 }
 0x334   :  { %v770_v23 = vadd.f32 %v769_v37, %v768_v30  ;;  %v787_v27 = vrot.slane %v786_v19, 2  ;;  %v901_v50 = vrot.slane %v897_v41, %v3935_v48  ;;  %v3011_v37 = vunpack.c.h.bf16 %v3099_v21 }
 0x336   :  { %v771_v44 = vrot.slane %v770_v23, 1  ;;  %v788_v47 = vadd.f32 %v787_v27, %v786_v19  ;;  %v3010_v19 = vunpack.c.l.bf16 %v3099_v21  ;;  %v891_v27 = vmul.f32 %v888_v12, %v3885_v11  ;;  %1161 = vmatpush1.msra.mxu0 %v3011_v37 }
 0x337   :  { %v903_v25 = vadd.f32 %v901_v50, %v890_v24  ;;  %1162 = vmatprep.subr.mxu0 %v3367_v7 }
 0x338   :  { %v772_v51 = vadd.f32 %v771_v44, %v770_v23  ;;  %v789_v34 = vrot.slane %v788_v47, 1  ;;  %v892_v23 = vmul.f32 %v888_v12, %v3893_v49  ;;  %v902_v44 = vadd.f32 %v901_v50, %v889_v46  ;;  %1163 = vmatpush1.msra.mxu0 %v3010_v19 }
 0x339   :  { %1164 = vmatprep.subr.mxu0 %v3367_v7  ;;  %v907_v59 = vmax.f32 %v903_v25, 0.0  ;;  %v3003_v12 = vunpack.c.h.bf16 %v3097_v58  ;;  %v3002_v46 = vunpack.c.l.bf16 %v3097_v58  ;;  %v3103_v58 = vld [vmem:[#allocation2 + $0xa0] sm:$0xff]  }
 0x33a   :  { %v773_v55 = vmul.f32 0.03125, %v772_v51  ;;  %v790_v4 = vadd.f32 %v789_v34, %v788_v47  ;;  %v3098_v47 = vld [vmem:[#allocation2 + $0x78] sm:$0xff]  }
 0x33b   :  { %v3006_v11 = vunpack.c.l.bf16 %v3098_v47 }
 0x33c   :  { %v791_v42 = vmul.f32 0.03125, %v790_v4  ;;  %v792_v2 = vmul.f32 %v773_v55, %v773_v55 }
 0x33e   :  { %v793_v18 = vsub.f32 %v791_v42, %v792_v2  ;;  %v905_v2 = vadd.f32 %v901_v50, %v892_v23 }
 0x340   :  { %v794_v3 = vadd.f32 1e-05, %v793_v18 }
 0x342   :  { %3297 = vrsqrt.f32 %v794_v3 }
 0x34f   :  { %v3298_v6 = vpop.eup %3297 }
 0x350   :  { %v796_v13 = vmul.f32 %v3298_v6, %v3624_v62  ;;  %v909_v6 = vmax.f32 %v905_v2, 0.0 }
 0x352   :  { %v805_v20 = vmul.f32 %v796_v13, %v773_v55  ;;  %v800_v29 = vrot.slane %v796_v13, %v3941_v17  ;;  %v3007_v55 = vunpack.c.h.bf16 %v3098_v47 }
 0x354   :  { %v807_v30 = vrot.slane %v805_v20, 7  ;;  %v801_v51 = vmul.f32 %v800_v29, %v3901_v57  ;;  %v802_v34 = vmul.f32 %v800_v29, %v3903_v22  ;;  %v803_v4 = vmul.f32 %v800_v29, %v3909_v43  ;;  %1165 = vmatpush1.msra.mxu0 %v3007_v55  ;;  %v3096_v55 = vld [vmem:[#allocation2 + $0x68] sm:$0xff]  }
 0x355   :  { %v804_v42 = vmul.f32 %v800_v29, %v756_v8  ;;  %v904_v57 = vadd.f32 %v901_v50, %v891_v27  ;;  %v906_v22 = vmax.f32 %v902_v44, 0.0  ;;  %1166 = vmatprep.subr.mxu0 %v3367_v7 }
 0x356   :  { %v809_v28 = vsub.f32 %v3624_v62, %v807_v30  ;;  %1167 = vmatpush1.msra.mxu0 %v3006_v11 }
 0x357   :  { %1168 = vmatprep.subr.mxu0 %v3367_v7  ;;  %v908_v24 = vmax.f32 %v904_v57, 0.0 }
 0x358   :  { %v813_v49 = vrot.slane %v809_v28, %v3948_v36  ;;  %1169 = vmatpush1.msra.mxu0 %v3003_v12 }
 0x359   :  { %1170 = vmatprep.subr.mxu0 %v3367_v7 }
 0x35a   :  { %v814_v62 = vadd.f32 %v813_v49, %v801_v51  ;;  %v815_v18 = vadd.f32 %v813_v49, %v802_v34  ;;  %v816_v3 = vadd.f32 %v813_v49, %v803_v4  ;;  %v817_v15 = vadd.f32 %v813_v49, %v804_v42  ;;  %1171 = vmatpush1.msra.mxu0 %v3002_v46 }
 0x35b   :  { %1172 = vmatprep.subr.mxu0 %v3367_v7 }
 0x35c   :  { %v818_v43 = vmax.f32 %v814_v62, 0.0  ;;  %v819_v8 = vmax.f32 %v815_v18, 0.0  ;;  %v821_v0 = vmax.f32 %v817_v15, 0.0  ;;  %v820_v41 = vmax.f32 %v816_v3, 0.0  ;;  %v3095_v3 = vld [vmem:[#allocation2 + $0x60] sm:$0xff]  }
 0x35d   :  { %v2999_v62 = vunpack.c.h.bf16 %v3096_v55  ;;  %v2998_v18 = vunpack.c.l.bf16 %v3096_v55  ;;  %v2995_v15 = vunpack.c.h.bf16 %v3095_v3 }
 0x35e   :  { %v3961_v13 = vadd.f32 %v907_v59, %v819_v8  ;;  %v3963_v20 = vadd.f32 %v906_v22, %v818_v43  ;;  %v3965_v21 = vadd.f32 %v909_v6, %v821_v0  ;;  %v3974_v30 = vadd.f32 %v908_v24, %v820_v41 }
 0x35f   :  { %1173 = vmatpush1.msra.mxu0 %v2999_v62  ;;  %v2994_v59 = vunpack.c.l.bf16 %v3095_v3  ;;  %v3027_v0 = vunpack.c.h.bf16 %v3103_v58  ;;  %v3026_v6 = vunpack.c.l.bf16 %v3103_v58  ;;  %v3110_v62 = vld [vmem:[#allocation2 + $0xd0] sm:$0xff]  }
 0x360   :  { %1046 = vrot.lane.b32.xlu1 %v3961_v13, %s3358_s12  ;;  %1044 = vrot.lane.b32.xlu0 %v3963_v20, %s3358_s12  ;;  %v968_v50 = vrot.slane %v3963_v20, 5  ;;  %v969_v29 = vrot.slane %v3961_v13, 5  ;;  %v971_v23 = vrot.slane %v3965_v21, 5  ;;  %v960_v27 = vrot.slane %v3963_v20, 4 }
 0x361   :  { %v963_v44 = vrot.slane %v3965_v21, 4  ;;  %v984_v28 = vrot.slane %v3963_v20, 1  ;;  %v976_v47 = vrot.slane %v3963_v20, 7  ;;  %v979_v25 = vrot.slane %v3965_v21, 7  ;;  %1174 = vmatprep.subr.mxu0 %v3367_v7 }
 0x362   :  { %v974_v37 = vsel %vm68_vm0, %v968_v50, %v969_v29  ;;  %v3999_v51 = vsel %vm68_vm0, %v971_v23, %v968_v50  ;;  %v961_v49 = vrot.slane %v3961_v13, 4  ;;  %v952_v11 = vrot.slane %v3963_v20, 3  ;;  %1175 = vmatpush1.msra.mxu0 %v2998_v18 }
 0x363   :  { %v1129_v19 = vmul.f32 %v2986_v40, %v974_v37  ;;  %v985_v40 = vrot.slane %v3961_v13, 1  ;;  %v4005_v34 = vsel %vm59_vm1, %v963_v44, %v960_v27  ;;  %v983_v42 = vsel %vm77_vm2, %v979_v25, %v976_v47  ;;  %1176 = vmatprep.subr.mxu0 %v3367_v7 }
 0x364   :  { %1050 = vrot.lane.b32.xlu1 %v3965_v21, %s3358_s12  ;;  %1048 = vrot.lane.b32.xlu0 %v3974_v30, %s3358_s12  ;;  %v953_v2 = vrot.slane %v3961_v13, 3  ;;  %v966_v57 = vsel %vm59_vm1, %v960_v27, %v961_v49  ;;  %v977_v43 = vrot.slane %v3961_v13, 7  ;;  %v962_v8 = vrot.slane %v3974_v30, 4 }
 0x365   :  { %2906 = vmatprep.mubr.msk.f32.mxu0 %vm357_vm15, %v1129_v19  ;;  %v990_v4 = vsel %vm86_vm3, %v984_v28, %v985_v40  ;;  %1177 = vmatpush1.msra.mxu0 %v2995_v15  ;;  %v986_v46 = vrot.slane %v3974_v30, 1  ;;  %v970_v24 = vrot.slane %v3974_v30, 5  ;;  %v954_v19 = vrot.slane %v3974_v30, 3 }
 0x366   :  { %v4031_v22 = vsel %vm50_vm4, %v952_v11, %v953_v2  ;;  %1178 = vmatprep.subr.mxu0 %v3367_v7  ;;  %v982_v12 = vsel %vm77_vm2, %v976_v47, %v977_v43  ;;  %v965_v41 = vsel %vm59_vm1, %v961_v49, %v962_v8  ;;  %v978_v27 = vrot.slane %v3974_v30, 7 }
 0x367   :  { %1179 = vmatpush1.msra.mxu0 %v2994_v59  ;;  %v989_v50 = vsel %vm86_vm3, %v985_v40, %v986_v46  ;;  %v4064_v47 = vsel %vm50_vm4, %v953_v2, %v954_v19  ;;  %v987_v55 = vrot.slane %v3965_v21, 1  ;;  %v972_v2 = vsel %vm68_vm0, %v970_v24, %v971_v23 }
 0x368   :  { %1012 = vrot.lane.b32.xlu0 %v3999_v51, %s3368_s29  ;;  %996 = vrot.lane.b32.xlu1 %v4005_v34, %s3369_s30  ;;  %v981_v40 = vsel %vm77_vm2, %v977_v43, %v978_v27  ;;  %v980_v18 = vsel %vm77_vm2, %v978_v27, %v979_v25 }
 0x369   :  { %1208 = vmatprep.subr.mxu0 %v3367_v7  ;;  %v991_v3 = vsel %vm86_vm3, %v987_v55, %v984_v28 }
 0x36a   :  { %1209 = vmatpush2.msra.mxu0 %v3027_v0 }
 0x36b   :  { %1210 = vmatprep.subr.mxu0 %v3367_v7 }
 0x36c   :  { %1060 = vrot.lane.b32.xlu0 %v990_v4, %s3370_s3  ;;  %1028 = vrot.lane.b32.xlu1 %v983_v42, %s3371_s4  ;;  %v955_v4 = vrot.slane %v3965_v21, 3  ;;  %v964_v42 = vsel %vm59_vm1, %v962_v8, %v963_v44  ;;  %v3055_v44 = vunpack.c.h.bf16 %v3110_v62 }
 0x36d   :  { %1211 = vmatpush2.msra.mxu0 %v3026_v6 }
 0x36e   :  { %v4083_v49 = vsel %vm50_vm4, %v954_v19, %v955_v4  ;;  %3205 = vmatprep.subr.mxu0 %v3055_v44  ;;  %v959_v23 = vsel %vm50_vm4, %v955_v4, %v952_v11 }
 0x370   :  { %998 = vrot.lane.b32.xlu1 %v966_v57, %s3369_s30  ;;  %1076 = vrot.lane.b32.xlu0 %v4031_v22, %s3372_s5 }
 0x374   :  { %1014 = vrot.lane.b32.xlu1 %v974_v37, %s3368_s29  ;;  %1088 = vrot.lane.b32.xlu0 %v966_v57, %s3373_s6  ;;  %v973_v37 = vsel %vm68_vm0, %v969_v29, %v970_v24  ;;  %v988_v29 = vsel %vm86_vm3, %v986_v46, %v987_v55  ;;  %v3054_v55 = vunpack.c.l.bf16 %v3110_v62 }
 0x378   :  { %1030 = vrot.lane.b32.xlu1 %v982_v12, %s3371_s4  ;;  %1000 = vrot.lane.b32.xlu0 %v965_v41, %s3369_s30 }
 0x37c   :  { %1062 = vrot.lane.b32.xlu1 %v989_v50, %s3370_s3  ;;  %1016 = vrot.lane.b32.xlu0 %v973_v37, %s3368_s29 }
 0x380   :  { %1078 = vrot.lane.b32.xlu1 %v4064_v47, %s3372_s5  ;;  %1032 = vrot.lane.b32.xlu0 %v981_v40, %s3371_s4 }
 0x384   :  { %1090 = vrot.lane.b32.xlu1 %v965_v41, %s3373_s6  ;;  %1064 = vrot.lane.b32.xlu0 %v988_v29, %s3370_s3  ;;  %v1131_v29 = vmul.f32 %v2987_v61, %v973_v37 }
 0x388   :  { %1002 = vrot.lane.b32.xlu1 %v964_v42, %s3369_s30  ;;  %1080 = vrot.lane.b32.xlu0 %v4083_v49, %s3372_s5 }
 0x38c   :  { %1018 = vrot.lane.b32.xlu1 %v972_v2, %s3368_s29  ;;  %1092 = vrot.lane.b32.xlu0 %v964_v42, %s3373_s6 }
 0x390   :  { %1034 = vrot.lane.b32.xlu1 %v980_v18, %s3371_s4  ;;  %1066 = vrot.lane.b32.xlu0 %v991_v3, %s3370_s3 }
 0x394   :  { %1082 = vrot.lane.b32.xlu1 %v959_v23, %s3372_s5  ;;  %1094 = vrot.lane.b32.xlu0 %v4005_v34, %s3373_s6 }
 0x3d2   :  { %v1047_v25 = vpop.permute.xlu1 %1046  ;;  %v1045_v15 = vpop.permute.xlu0 %1044 }
 0x3d6   :  { %v4111_v57 = vpop.permute.xlu1 %1050  ;;  %v1049_v58 = vpop.permute.xlu0 %1048 }
 0x3da   :  { %v1013_v28 = vpop.permute.xlu0 %1012  ;;  %v997_v59 = vpop.permute.xlu1 %996 }
 0x3db   :  { %v1100_v43 = vsel %vm357_vm15, %v959_v23, %v997_v59 }
 0x3dc   :  { %v1104_v6 = vsel %vm625_vm14, %v1100_v43, %v1013_v28 }
 0x3de   :  { %v1061_v8 = vpop.permute.xlu0 %1060  ;;  %v1029_v0 = vpop.permute.xlu1 %1028 }
 0x3df   :  { %v1108_v11 = vsel %vm630_vm12, %v1104_v6, %v1029_v0  ;;  %v1133_v6 = vmul.f32 %v2990_v33, %v972_v2  ;;  %v1135_v33 = vmul.f32 %v2991_v38, %v3999_v51 }
 0x3e0   :  { %v1112_v12 = vsel %vm635_vm11, %v1108_v11, %v1045_v15 }
 0x3e1   :  { %v1116_v34 = vsel %vm640_vm10, %v1112_v12, %v1061_v8 }
 0x3e2   :  { %v999_v41 = vpop.permute.xlu1 %998  ;;  %v1077_v46 = vpop.permute.xlu0 %1076 }
 0x3e3   :  { %v1120_v24 = vsel %vm645_vm9, %v1116_v34, %v1077_v46  ;;  %v1101_v23 = vsel %vm357_vm15, %v4031_v22, %v999_v41 }
 0x3e6   :  { %v1015_v50 = vpop.permute.xlu1 %1014  ;;  %v1089_v19 = vpop.permute.xlu0 %1088 }
 0x3e7   :  { %v1124_v27 = vsel %vm650_vm8, %v1120_v24, %v1089_v19  ;;  %v1105_v15 = vsel %vm625_vm14, %v1101_v23, %v1015_v50 }
 0x3e8   :  { %v1128_v40 = vmul.f32 %v2978_v60, %v1124_v27 }
 0x3ea   :  { %v1031_v4 = vpop.permute.xlu1 %1030  ;;  %1213 = vmatmul.mubr.f32.vlgmr.msra.gmra.mxu0 %v1128_v40  ;;  %v1001_v42 = vpop.permute.xlu0 %1000 }
 0x3eb   :  { %2907 = vmatprep.mubr.msk.f32.mxu0 %vm357_vm15, %v1131_v29  ;;  %3206 = vmatpush3.msra.mxu0 %v3055_v44  ;;  %v1109_v60 = vsel %vm630_vm12, %v1105_v15, %v1031_v4  ;;  %v1102_v43 = vsel %vm357_vm15, %v4064_v47, %v1001_v42 }
 0x3ec   :  { %3207 = vmatprep.subr.mxu0 %v3054_v55  ;;  %v1113_v61 = vsel %vm635_vm11, %v1109_v60, %v1047_v25 }
 0x3ed   :  { %3208 = vmatpush3.msra.mxu0 %v3054_v55 }
 0x3ee   :  { %v1063_v18 = vpop.permute.xlu1 %1062  ;;  %v1017_v3 = vpop.permute.xlu0 %1016 }
 0x3ef   :  { %v1117_v37 = vsel %vm640_vm10, %v1113_v61, %v1063_v18  ;;  %v1106_v22 = vsel %vm625_vm14, %v1102_v43, %v1017_v3 }
 0x3f2   :  { %v1079_v62 = vpop.permute.xlu1 %1078  ;;  %v1033_v35 = vpop.permute.xlu0 %1032 }
 0x3f3   :  { %v1121_v28 = vsel %vm645_vm9, %v1117_v37, %v1079_v62  ;;  %v1110_v25 = vsel %vm630_vm12, %v1106_v22, %v1033_v35 }
 0x3f4   :  { %v1114_v41 = vsel %vm635_vm11, %v1110_v25, %v1049_v58 }
 0x3f6   :  { %v1091_v44 = vpop.permute.xlu1 %1090  ;;  %v1065_v59 = vpop.permute.xlu0 %1064 }
 0x3f7   :  { %v1125_v8 = vsel %vm650_vm8, %v1121_v28, %v1091_v44  ;;  %v1118_v47 = vsel %vm640_vm10, %v1114_v41, %v1065_v59 }
 0x3f8   :  { %v1130_v0 = vmul.f32 %v2979_v32, %v1125_v8 }
 0x3fa   :  { %v1003_v11 = vpop.permute.xlu1 %1002  ;;  %v1081_v12 = vpop.permute.xlu0 %1080  ;;  %1218 = vmatmul.mubr.f32.gmra.mxu0 %v1130_v0 }
 0x3fb   :  { %2908 = vmatprep.mubr.msk.f32.mxu0 %vm357_vm15, %v1133_v6  ;;  %v1122_v46 = vsel %vm645_vm9, %v1118_v47, %v1081_v12  ;;  %v1103_v2 = vsel %vm357_vm15, %v4083_v49, %v1003_v11 }
 0x3fe   :  { %v1019_v34 = vpop.permute.xlu1 %1018  ;;  %v1093_v24 = vpop.permute.xlu0 %1092 }
 0x3ff   :  { %v1126_v56 = vsel %vm650_vm8, %v1122_v46, %v1093_v24  ;;  %v1107_v58 = vsel %vm625_vm14, %v1103_v2, %v1019_v34 }
 0x400   :  { %v1132_v32 = vmul.f32 %v2982_v52, %v1126_v56 }
 0x402   :  { %v1035_v50 = vpop.permute.xlu1 %1034  ;;  %v1067_v19 = vpop.permute.xlu0 %1066  ;;  %1223 = vmatmul.mubr.f32.gmra.mxu0 %v1132_v32 }
 0x403   :  { %v1111_v27 = vsel %vm630_vm12, %v1107_v58, %v1035_v50  ;;  %2909 = vmatprep.mubr.msk.f32.mxu0 %vm357_vm15, %v1135_v33 }
 0x404   :  { %v1115_v40 = vsel %vm635_vm11, %v1111_v27, %v4111_v57 }
 0x405   :  { %v1119_v52 = vsel %vm640_vm10, %v1115_v40, %v1067_v19  ;;  %v914_v40 = vld [vmem:[#allocation2 + $0xd8] sm:$0x7]  ;;  %vm1507_vm10 = vcmask 457728  }
 0x406   :  { %v1083_v55 = vpop.permute.xlu1 %1082  ;;  %v1095_v26 = vpop.permute.xlu0 %1094 }
 0x407   :  { %v1123_v38 = vsel %vm645_vm9, %v1119_v52, %v1083_v55  ;;  %v4179_v52 = vunpack.c.l.bf16 %v914_v40  ;;  %vm1498_vm9 = vcmask 326656  }
 0x408   :  { %v1127_v51 = vsel %vm650_vm8, %v1123_v38, %v1095_v26  ;;  %vm1489_vm8 = vcmask 195584  }
 0x409   :  { %v1134_v49 = vmul.f32 %v2983_v9, %v1127_v51 }
 0x40b   :  { %1228 = vmatmul.mubr.f32.gmra.mxu0 %v1134_v49 }
 0x40c   :  { %3209 = vmatprep.mubr.msk.f32.mxu0 %vm357_vm15, %v3963_v20 }
 0x40f   :  { %3210 = vmatmul.mubr.msk.f32.vlgmr.msra.gmra.mxu0 %vm357_vm15, %v3961_v13 }
 0x410   :  { %3212 = vmatprep.mubr.msk.f32.mxu0 %vm357_vm15, %v3974_v30 }
 0x413   :  { %3213 = vmatmul.mubr.msk.f32.gmra.mxu0 %vm357_vm15, %v3965_v21 }
 0x4aa   :  { %v1214_v57 = vpop.f32.mrf.mxu0 }
 0x4ab   :  { %v1247_v3 = vmul.f32 %v1214_v57, %v1214_v57  ;;  %v1233_v15 = vsel %vm246_vm13, %v1214_v57, 0.0 }
 0x4ac   :  { %v1216_v29 = vpop.f32.mrf.mxu0 }
 0x4ad   :  { %v1251_v21 = vsel %vm246_vm13, %v1247_v3, 0.0 }
 0x4ba   :  { %v1219_v4 = vpop.f32.mrf.mxu0 }
 0x4bb   :  { %v1248_v39 = vmul.f32 %v1219_v4, %v1219_v4  ;;  %v1234_v23 = vsel %vm246_vm13, %v1219_v4, 0.0 }
 0x4bc   :  { %v1221_v42 = vpop.f32.mrf.mxu0  ;;  %v1235_v60 = vadd.f32 %v1234_v23, %v1233_v15 }
 0x4bd   :  { %v1252_v13 = vsel %vm246_vm13, %v1248_v39, 0.0 }
 0x4be   :  { %v1253_v35 = vadd.f32 %v1252_v13, %v1251_v21 }
 0x4c2   :  { %v1224_v18 = vpop.f32.mrf.mxu0 }
 0x4c3   :  { %v1249_v20 = vmul.f32 %v1224_v18, %v1224_v18  ;;  %v1236_v30 = vsel %vm246_vm13, %v1224_v18, 0.0 }
 0x4c4   :  { %v1226_v9 = vpop.f32.mrf.mxu0  ;;  %v1237_v61 = vadd.f32 %v1236_v30, %v1235_v60 }
 0x4c5   :  { %v1254_v62 = vsel %vm246_vm13, %v1249_v20, 0.0 }
 0x4c6   :  { %v1255_v59 = vadd.f32 %v1254_v62, %v1253_v35 }
 0x4cb   :  { %v1229_v37 = vpop.f32.mrf.mxu0 }
 0x4cc   :  { %v1238_v28 = vsel %vm246_vm13, %v1229_v37, 0.0  ;;  %v1250_v44 = vmul.f32 %v1229_v37, %v1229_v37 }
 0x4cd   :  { %v1239_v43 = vadd.f32 %v1238_v28, %v1237_v61  ;;  %v1231_v8 = vpop.f32.mrf.mxu0 }
 0x4ce   :  { %v1256_v22 = vsel %vm246_vm13, %v1250_v44, 0.0 }
 0x4cf   :  { %v1240_v0 = vrot.slane %v1239_v43, 4  ;;  %v1257_v6 = vadd.f32 %v1256_v22, %v1255_v59 }
 0x4d1   :  { %v1241_v25 = vadd.f32 %v1240_v0, %v1239_v43  ;;  %v1258_v11 = vrot.slane %v1257_v6, 4 }
 0x4d3   :  { %v1242_v12 = vrot.slane %v1241_v25, 2  ;;  %v1259_v41 = vadd.f32 %v1258_v11, %v1257_v6 }
 0x4d5   :  { %v1243_v47 = vadd.f32 %v1242_v12, %v1241_v25  ;;  %v1260_v46 = vrot.slane %v1259_v41, 2 }
 0x4d7   :  { %v1244_v34 = vrot.slane %v1243_v47, 1  ;;  %v1261_v24 = vadd.f32 %v1260_v46, %v1259_v41 }
 0x4d9   :  { %v1245_v56 = vadd.f32 %v1244_v34, %v1243_v47  ;;  %v1262_v32 = vrot.slane %v1261_v24, 1 }
 0x4db   :  { %v1246_v33 = vmul.f32 0.03125, %v1245_v56  ;;  %v1263_v2 = vadd.f32 %v1262_v32, %v1261_v24  ;;  %v4256_v56 = vld [vmem:[#allocation2 + $0xc8] ss:$56 sps:$4 sm:$0xff]  }
 0x4dc   :  { %v3107_v32 = vld [vmem:[#allocation2 + $0xc0] sm:$0xff]  }
 0x4dd   :  { %v1264_v58 = vmul.f32 0.03125, %v1263_v2  ;;  %v1265_v50 = vmul.f32 %v1246_v33, %v1246_v33  ;;  %v3043_v2 = vunpack.c.h.bf16 %v3107_v32 }
 0x4df   :  { %v1266_v19 = vsub.f32 %v1264_v58, %v1265_v50 }
 0x4e1   :  { %v1267_v27 = vadd.f32 1e-05, %v1266_v19 }
 0x4e3   :  { %3299 = vrsqrt.f32 %v1267_v27 }
 0x4f0   :  { %v3300_v55 = vpop.eup %3299 }
 0x4f1   :  { %v1269_v26 = vmul.f32 %v3300_v55, %v4179_v52  ;;  %v3042_v55 = vunpack.c.l.bf16 %v3107_v32 }
 0x4f3   :  { %v1278_v38 = vmul.f32 %v1269_v26, %v1246_v33  ;;  %v1273_v51 = vrot.slane %v1269_v26, %v3628_v5  ;;  %v1312_v33 = vunpack.c.l.bf16 %v4256_v56  ;;  %v3106_v26 = vld [vmem:[#allocation2 + $0xb8] sm:$0xff]  }
 0x4f5   :  { %v1280_v49 = vrot.slane %v1278_v38, 7  ;;  %v1274_v42 = vmul.f32 %v1273_v51, %v1214_v57  ;;  %v1275_v39 = vmul.f32 %v1273_v51, %v1219_v4  ;;  %v1276_v9 = vmul.f32 %v1273_v51, %v1224_v18  ;;  %3181 = vmatprep.subr.mxu1 %v1312_v33 }
 0x4f6   :  { %v1277_v13 = vmul.f32 %v1273_v51, %v1229_v37  ;;  %3182 = vmatpush3.msra.mxu1 %v1312_v33  ;;  %v3039_v38 = vunpack.c.h.bf16 %v3106_v26 }
 0x4f7   :  { %v1282_v29 = vsub.f32 %v4179_v52, %v1280_v49  ;;  %3183 = vmatprep.subr.mxu1 %v3043_v2 }
 0x4f8   :  { %3184 = vmatpush3.msra.mxu1 %v3043_v2 }
 0x4f9   :  { %v1286_v3 = vrot.slane %v1282_v29, %v3632_v14  ;;  %3185 = vmatprep.subr.mxu1 %v3042_v55 }
 0x4fa   :  { %3186 = vmatpush3.msra.mxu1 %v3042_v55 }
 0x4fb   :  { %v1289_v23 = vadd.f32 %v1286_v3, %v1276_v9  ;;  %v1287_v20 = vadd.f32 %v1286_v3, %v1274_v42  ;;  %v1288_v15 = vadd.f32 %v1286_v3, %v1275_v39  ;;  %v1290_v62 = vadd.f32 %v1286_v3, %v1277_v13  ;;  %3187 = vmatprep.subr.mxu1 %v3039_v38  ;;  %v3105_v39 = vld [vmem:[#allocation2 + $0xb0] sm:$0xff]   ;;  %v3104_v13 = vld [vmem:[#allocation2 + $0xa8] sm:$0xff]  }
 0x4fc   :  { %v3038_v42 = vunpack.c.l.bf16 %v3106_v26  ;;  %3188 = vmatpush3.msra.mxu1 %v3039_v38  ;;  %v3035_v9 = vunpack.c.h.bf16 %v3105_v39 }
 0x4fd   :  { %v4185_v30 = vmax.f32 %v1289_v23, 0.0  ;;  %v4187_v60 = vmax.f32 %v1287_v20, 0.0  ;;  %v4189_v21 = vmax.f32 %v1288_v15, 0.0  ;;  %v4201_v35 = vmax.f32 %v1290_v62, 0.0 }
 0x4fe   :  { %3189 = vmatprep.subr.mxu1 %v3038_v42  ;;  %v3034_v15 = vunpack.c.l.bf16 %v3105_v39 }
 0x4ff   :  { %1417 = vrot.lane.b32.xlu0 %v4185_v30, %s3368_s29  ;;  %1413 = vrot.lane.b32.xlu1 %v4187_v60, %s3368_s29  ;;  %v1329_v57 = vrot.slane %v4187_v60, 4  ;;  %v1330_v4 = vrot.slane %v4189_v21, 4  ;;  %v1337_v61 = vrot.slane %v4187_v60, 5  ;;  %v1338_v37 = vrot.slane %v4189_v21, 5 }
 0x500   :  { %v1332_v28 = vrot.slane %v4201_v35, 4  ;;  %v1345_v59 = vrot.slane %v4187_v60, 7  ;;  %v1346_v43 = vrot.slane %v4189_v21, 7  ;;  %v1340_v22 = vrot.slane %v4201_v35, 5  ;;  %3190 = vmatpush3.msra.mxu1 %v3038_v42 }
 0x501   :  { %v4199_v18 = vsel %vm59_vm1, %v1329_v57, %v1330_v4  ;;  %v4214_v44 = vsel %vm68_vm0, %v1337_v61, %v1338_v37  ;;  %v1331_v6 = vrot.slane %v4185_v30, 4  ;;  %v1348_v11 = vrot.slane %v4201_v35, 7  ;;  %3191 = vmatprep.subr.mxu1 %v3035_v9 }
 0x502   :  { %v4222_v8 = vsel %vm59_vm1, %v1332_v28, %v1329_v57  ;;  %v1351_v0 = vsel %vm77_vm2, %v1345_v59, %v1346_v43  ;;  %v4233_v25 = vsel %vm68_vm0, %v1340_v22, %v1337_v61  ;;  %v1353_v41 = vrot.slane %v4187_v60, 1  ;;  %3192 = vmatpush3.msra.mxu1 %v3035_v9 }
 0x503   :  { %1415 = vrot.lane.b32.xlu1 %v4189_v21, %s3368_s29  ;;  %1367 = vrot.lane.b32.xlu0 %v4199_v18, %s3366_s28  ;;  %v4240_v12 = vsel %vm59_vm1, %v1330_v4, %v1331_v6  ;;  %v1354_v47 = vrot.slane %v4189_v21, 1  ;;  %v1352_v46 = vsel %vm77_vm2, %v1348_v11, %v1345_v59  ;;  %v1339_v24 = vrot.slane %v4185_v30, 5 }
 0x504   :  { %v4262_v58 = vsel %vm59_vm1, %v1331_v6, %v1332_v28  ;;  %v1355_v50 = vrot.slane %v4185_v30, 1  ;;  %v1321_v27 = vrot.slane %v4187_v60, 3  ;;  %v1322_v40 = vrot.slane %v4189_v21, 3  ;;  %3193 = vmatprep.subr.mxu1 %v3034_v15 }
 0x505   :  { %v1359_v34 = vsel %vm86_vm3, %v1353_v41, %v1354_v47  ;;  %v1342_v19 = vsel %vm68_vm0, %v1338_v37, %v1339_v24  ;;  %v1347_v29 = vrot.slane %v4185_v30, 7  ;;  %v1341_v3 = vsel %vm68_vm0, %v1339_v24, %v1340_v22  ;;  %3194 = vmatpush3.msra.mxu1 %v3034_v15 }
 0x506   :  { %v1358_v51 = vsel %vm86_vm3, %v1354_v47, %v1355_v50  ;;  %v4277_v49 = vsel %vm50_vm4, %v1321_v27, %v1322_v40  ;;  %v1323_v23 = vrot.slane %v4185_v30, 3  ;;  %v3031_v21 = vunpack.c.h.bf16 %v3104_v13 }
 0x507   :  { %1419 = vrot.lane.b32.xlu1 %v4201_v35, %s3368_s29  ;;  %1383 = vrot.lane.b32.xlu0 %v4214_v44, %s3369_s30  ;;  %v1350_v20 = vsel %vm77_vm2, %v1346_v43, %v1347_v29  ;;  %v3030_v30 = vunpack.c.l.bf16 %v3104_v13  ;;  %v1349_v57 = vsel %vm77_vm2, %v1347_v29, %v1348_v11  ;;  %v1356_v4 = vrot.slane %v4201_v35, 1 }
 0x508   :  { %v4291_v62 = vsel %vm50_vm4, %v1322_v40, %v1323_v23  ;;  %3195 = vmatprep.subr.mxu1 %v3031_v21  ;;  %v1324_v61 = vrot.slane %v4201_v35, 3  ;;  %v4341_v40 = vld [vmem:[#allocation2 + $0x150] sm:$0xff]  }
 0x509   :  { %3196 = vmatpush3.msra.mxu1 %v3031_v21  ;;  %v1360_v37 = vsel %vm86_vm3, %v1356_v4, %v1353_v41  ;;  %v3046_v38 = vunpack.c.l.bf16 %v4341_v40 }
 0x50a   :  { %3197 = vmatprep.subr.mxu1 %v3030_v30  ;;  %v4319_v28 = vsel %vm50_vm4, %v1323_v23, %v1324_v61 }
 0x50b   :  { %1365 = vrot.lane.b32.xlu1 %v4222_v8, %s3366_s28  ;;  %1399 = vrot.lane.b32.xlu0 %v1351_v0, %s3375_s7 }
 0x50c   :  { %3198 = vmatpush3.msra.mxu1 %v3030_v30 }
 0x50f   :  { %1381 = vrot.lane.b32.xlu1 %v4233_v25, %s3369_s30  ;;  %1369 = vrot.lane.b32.xlu0 %v4240_v12, %s3366_s28 }
 0x513   :  { %1397 = vrot.lane.b32.xlu1 %v1352_v46, %s3375_s7  ;;  %1429 = vrot.lane.b32.xlu0 %v1359_v34, %s3376_s8 }
 0x517   :  { %1371 = vrot.lane.b32.xlu1 %v4262_v58, %s3366_s28  ;;  %1385 = vrot.lane.b32.xlu0 %v1342_v19, %s3369_s30 }
 0x51b   :  { %1431 = vrot.lane.b32.xlu1 %v1358_v51, %s3376_s8  ;;  %1445 = vrot.lane.b32.xlu0 %v4277_v49, %s3371_s4 }
 0x51f   :  { %1387 = vrot.lane.b32.xlu1 %v1341_v3, %s3369_s30  ;;  %1401 = vrot.lane.b32.xlu0 %v1350_v20, %s3375_s7 }
 0x523   :  { %1447 = vrot.lane.b32.xlu1 %v4291_v62, %s3371_s4  ;;  %1457 = vrot.lane.b32.xlu0 %v4199_v18, %s3377_s9  ;;  %v1357_v18 = vsel %vm86_vm3, %v1355_v50, %v1356_v4 }
 0x527   :  { %1403 = vrot.lane.b32.xlu1 %v1349_v57, %s3375_s7  ;;  %1469 = vrot.lane.b32.xlu0 %v4214_v44, %s3358_s12  ;;  %v1328_v44 = vsel %vm50_vm4, %v1324_v61, %v1321_v27  ;;  %v3047_v57 = vunpack.c.h.bf16 %v4341_v40 }
 0x52b   :  { %1459 = vrot.lane.b32.xlu1 %v4240_v12, %s3377_s9  ;;  %1433 = vrot.lane.b32.xlu0 %v1357_v18, %s3376_s8 }
 0x52f   :  { %1471 = vrot.lane.b32.xlu1 %v1342_v19, %s3358_s12  ;;  %1435 = vrot.lane.b32.xlu0 %v1360_v37, %s3376_s8 }
 0x533   :  { %1449 = vrot.lane.b32.xlu1 %v4319_v28, %s3371_s4  ;;  %1451 = vrot.lane.b32.xlu0 %v1328_v44, %s3371_s4 }
 0x537   :  { %1461 = vrot.lane.b32.xlu1 %v4262_v58, %s3377_s9  ;;  %1463 = vrot.lane.b32.xlu0 %v4222_v8, %s3377_s9 }
 0x53b   :  { %1473 = vrot.lane.b32.xlu1 %v1341_v3, %s3358_s12  ;;  %1475 = vrot.lane.b32.xlu0 %v4233_v25, %s3358_s12 }
 0x571   :  { %v4333_v60 = vpop.permute.xlu0 %1417  ;;  %v1414_v35 = vpop.permute.xlu1 %1413 }
 0x575   :  { %v1416_v59 = vpop.permute.xlu1 %1415  ;;  %v1368_v43 = vpop.permute.xlu0 %1367 }
 0x576   :  { %v1482_v51 = vsel %vm246_vm13, %v4277_v49, %v1368_v43 }
 0x579   :  { %v4335_v22 = vpop.permute.xlu1 %1419  ;;  %v1384_v0 = vpop.permute.xlu0 %1383 }
 0x57a   :  { %v1486_v39 = vsel %vm357_vm15, %v1482_v51, %v1384_v0 }
 0x57d   :  { %v1366_v6 = vpop.permute.xlu1 %1365  ;;  %v1400_v11 = vpop.permute.xlu0 %1399 }
 0x57e   :  { %v1481_v25 = vsel %vm246_vm13, %v1328_v44, %v1366_v6  ;;  %v1491_v23 = vsel %vm1489_vm8, %v1486_v39, %v1400_v11 }
 0x57f   :  { %v1495_v21 = vsel %vm625_vm14, %v1491_v23, %v1416_v59 }
 0x581   :  { %v1382_v12 = vpop.permute.xlu1 %1381  ;;  %v1370_v41 = vpop.permute.xlu0 %1369 }
 0x582   :  { %v1485_v33 = vsel %vm357_vm15, %v1481_v25, %v1382_v12  ;;  %v1483_v59 = vsel %vm246_vm13, %v4291_v62, %v1370_v41 }
 0x585   :  { %v1398_v47 = vpop.permute.xlu1 %1397  ;;  %v1430_v46 = vpop.permute.xlu0 %1429 }
 0x586   :  { %v1490_v58 = vsel %vm1489_vm8, %v1485_v33, %v1398_v47 }
 0x587   :  { %v1494_v19 = vsel %vm625_vm14, %v1490_v58, %v1414_v35 }
 0x588   :  { %v1499_v26 = vsel %vm1498_vm9, %v1494_v19, %v1430_v46 }
 0x589   :  { %v1372_v8 = vpop.permute.xlu1 %1371  ;;  %v1386_v34 = vpop.permute.xlu0 %1385 }
 0x58a   :  { %v1484_v0 = vsel %vm246_vm13, %v4319_v28, %v1372_v8  ;;  %v1487_v6 = vsel %vm357_vm15, %v1483_v59, %v1386_v34 }
 0x58d   :  { %v1432_v24 = vpop.permute.xlu1 %1431  ;;  %v1446_v32 = vpop.permute.xlu0 %1445 }
 0x58e   :  { %v1503_v29 = vsel %vm630_vm12, %v1499_v26, %v1446_v32  ;;  %v1500_v30 = vsel %vm1498_vm9, %v1495_v21, %v1432_v24  ;;  %v4372_v24 = vld [vmem:[#allocation2 + $0x158] sm:$0xff]  }
 0x58f   :  { %v3050_v8 = vunpack.c.l.bf16 %v4372_v24 }
 0x591   :  { %v1388_v2 = vpop.permute.xlu1 %1387  ;;  %v1402_v50 = vpop.permute.xlu0 %1401 }
 0x592   :  { %v1488_v12 = vsel %vm357_vm15, %v1484_v0, %v1388_v2  ;;  %v1492_v47 = vsel %vm1489_vm8, %v1487_v6, %v1402_v50  ;;  %v3051_v2 = vunpack.c.h.bf16 %v4372_v24 }
 0x593   :  { %v1496_v62 = vsel %vm625_vm14, %v1492_v47, %v4333_v60 }
 0x595   :  { %v1448_v27 = vpop.permute.xlu1 %1447  ;;  %v1458_v55 = vpop.permute.xlu0 %1457 }
 0x596   :  { %v1508_v9 = vsel %vm1507_vm10, %v1503_v29, %v1458_v55  ;;  %v1504_v4 = vsel %vm630_vm12, %v1500_v30, %v1448_v27  ;;  %v4394_v29 = vpop.f32.mrf.mxu0 }
 0x599   :  { %v1404_v42 = vpop.permute.xlu1 %1403  ;;  %v1470_v3 = vpop.permute.xlu0 %1469 }
 0x59a   :  { %v1512_v20 = vsel %vm635_vm11, %v1508_v9, %v1470_v3  ;;  %v1493_v46 = vsel %vm1489_vm8, %v1488_v12, %v1404_v42  ;;  %v4396_v42 = vpop.f32.mrf.mxu0 }
 0x59b   :  { %v1516_v15 = vmul.f32 %v3046_v38, %v1512_v20  ;;  %v1497_v28 = vsel %vm625_vm14, %v1493_v46, %v4335_v22  ;;  %v1777_v3 = vsel %vm246_vm13, %v4396_v42, 0.0  ;;  %v1791_v23 = vmul.f32 %v4396_v42, %v4396_v42 }
 0x59c   :  { %v4398_v39 = vpop.f32.mrf.mxu0  ;;  %v1778_v20 = vsel %vm246_vm13, %v4394_v29, 0.0 }
 0x59d   :  { %v1460_v13 = vpop.permute.xlu1 %1459  ;;  %3199 = vmatprep.mubr.msk.f32.mxu1 %vm1520_vm7, %v1516_v15  ;;  %v1434_v49 = vpop.permute.xlu0 %1433  ;;  %v1792_v15 = vmul.f32 %v4394_v29, %v4394_v29  ;;  %v1795_v30 = vsel %vm246_vm13, %v1791_v23, 0.0 }
 0x59e   :  { %v1509_v18 = vsel %vm1507_vm10, %v1504_v4, %v1460_v13  ;;  %v1501_v25 = vsel %vm1498_vm9, %v1496_v62, %v1434_v49  ;;  %v4400_v9 = vpop.f32.mrf.mxu0  ;;  %v1779_v49 = vadd.f32 %v1778_v20, %v1777_v3 }
 0x59f   :  { %v1780_v13 = vsel %vm246_vm13, %v4400_v9, 0.0  ;;  %v1793_v21 = vmul.f32 %v4400_v9, %v4400_v9 }
 0x5a0   :  { %v1781_v4 = vadd.f32 %v1780_v13, %v1779_v49 }
 0x5a1   :  { %v1472_v61 = vpop.permute.xlu1 %1471  ;;  %v1436_v44 = vpop.permute.xlu0 %1435 }
 0x5a2   :  { %v1513_v37 = vsel %vm635_vm11, %v1509_v18, %v1472_v61  ;;  %v1502_v34 = vsel %vm1498_vm9, %v1497_v28, %v1436_v44  ;;  %v1796_v18 = vsel %vm246_vm13, %v1792_v15, 0.0  ;;  %v1798_v61 = vsel %vm246_vm13, %v1793_v21, 0.0 }
 0x5a3   :  { %v1517_v35 = vmul.f32 %v3047_v57, %v1513_v37  ;;  %v1797_v37 = vadd.f32 %v1796_v18, %v1795_v30  ;;  %v1782_v44 = vsel %vm246_vm13, %v4398_v39, 0.0 }
 0x5a4   :  { %v1783_v59 = vadd.f32 %v1782_v44, %v1781_v4 }
 0x5a5   :  { %v1450_v43 = vpop.permute.xlu1 %1449  ;;  %3200 = vmatmul.mubr.msk.f32.vlgmr.msra.gmra.mxu1 %vm1520_vm7, %v1517_v35  ;;  %v1452_v11 = vpop.permute.xlu0 %1451  ;;  %v1794_v35 = vmul.f32 %v4398_v39, %v4398_v39 }
 0x5a6   :  { %v1505_v33 = vsel %vm630_vm12, %v1501_v25, %v1450_v43  ;;  %v1506_v58 = vsel %vm630_vm12, %v1502_v34, %v1452_v11  ;;  %v1799_v43 = vadd.f32 %v1798_v61, %v1797_v37  ;;  %v1784_v6 = vrot.slane %v1783_v59, 4 }
 0x5a7   :  { %v1800_v0 = vsel %vm246_vm13, %v1794_v35, 0.0 }
 0x5a8   :  { %v1801_v11 = vadd.f32 %v1800_v0, %v1799_v43  ;;  %v1785_v12 = vadd.f32 %v1784_v6, %v1783_v59 }
 0x5a9   :  { %v1462_v32 = vpop.permute.xlu1 %1461  ;;  %v1464_v41 = vpop.permute.xlu0 %1463 }
 0x5aa   :  { %v1510_v50 = vsel %vm1507_vm10, %v1505_v33, %v1462_v32  ;;  %v1511_v60 = vsel %vm1507_vm10, %v1506_v58, %v1464_v41  ;;  %v1802_v47 = vrot.slane %v1801_v11, 4  ;;  %v1786_v46 = vrot.slane %v1785_v12, 2 }
 0x5ac   :  { %v1803_v32 = vadd.f32 %v1802_v47, %v1801_v11  ;;  %v1787_v62 = vadd.f32 %v1786_v46, %v1785_v12 }
 0x5ad   :  { %v1474_v19 = vpop.permute.xlu1 %1473  ;;  %v1476_v55 = vpop.permute.xlu0 %1475 }
 0x5ae   :  { %v1514_v27 = vsel %vm635_vm11, %v1510_v50, %v1474_v19  ;;  %v1515_v26 = vsel %vm635_vm11, %v1511_v60, %v1476_v55  ;;  %v1804_v41 = vrot.slane %v1803_v32, 2  ;;  %v1788_v25 = vrot.slane %v1787_v62, 1 }
 0x5af   :  { %v1518_v22 = vmul.f32 %v3050_v8, %v1514_v27  ;;  %v1519_v51 = vmul.f32 %v3051_v2, %v1515_v26 }
 0x5b0   :  { %v1805_v28 = vadd.f32 %v1804_v41, %v1803_v32  ;;  %v1789_v33 = vadd.f32 %v1788_v25, %v1787_v62 }
 0x5b1   :  { %3202 = vmatprep.mubr.msk.f32.mxu1 %vm1520_vm7, %v1518_v22 }
 0x5b2   :  { %3203 = vmatmul.mubr.msk.f32.gmra.mxu1 %vm1520_vm7, %v1519_v51  ;;  %v1806_v58 = vrot.slane %v1805_v28, 1  ;;  %v1790_v60 = vmul.f32 0.03125, %v1789_v33 }
 0x5b4   :  { %v1807_v27 = vadd.f32 %v1806_v58, %v1805_v28  ;;  %v1809_v20 = vmul.f32 %v1790_v60, %v1790_v60 }
 0x5b6   :  { %v1808_v23 = vmul.f32 0.03125, %v1807_v27 }
 0x5b8   :  { %v1810_v35 = vsub.f32 %v1808_v23, %v1809_v20 }
 0x5ba   :  { %v1811_v12 = vadd.f32 1e-05, %v1810_v35 }
 0x5bc   :  { %3301 = vrsqrt.f32 %v1811_v12 }
 0x5c9   :  { %v3302_v20 = vpop.eup %3301 }
 0x665   :  { %v4422_v34 = vpop.f32.mrf.mxu1 }
 0x666   :  { %v1633_v55 = vmul.f32 %v4422_v34, %v4422_v34  ;;  %v1619_v51 = vsel %vm246_vm13, %v4422_v34, 0.0 }
 0x667   :  { %v4424_v50 = vpop.f32.mrf.mxu1 }
 0x668   :  { %v1632_v19 = vmul.f32 %v4424_v50, %v4424_v50  ;;  %v1618_v22 = vsel %vm246_vm13, %v4424_v50, 0.0  ;;  %v1637_v21 = vsel %vm246_vm13, %v1633_v55, 0.0 }
 0x669   :  { %v1620_v15 = vadd.f32 %v1619_v51, %v1618_v22 }
 0x66a   :  { %v1636_v3 = vsel %vm246_vm13, %v1632_v19, 0.0 }
 0x66b   :  { %v1638_v18 = vadd.f32 %v1637_v21, %v1636_v3 }
 0x672   :  { %v4432_v26 = vpop.f32.mrf.mxu1 }
 0x673   :  { %v1635_v49 = vmul.f32 %v4432_v26, %v4432_v26  ;;  %v1623_v37 = vsel %vm246_vm13, %v4432_v26, 0.0 }
 0x674   :  { %v1609_v13 = vpop.f32.mrf.mxu1 }
 0x675   :  { %v1621_v30 = vsel %vm246_vm13, %v1609_v13, 0.0  ;;  %v1634_v4 = vmul.f32 %v1609_v13, %v1609_v13  ;;  %v1641_v0 = vsel %vm246_vm13, %v1635_v49, 0.0 }
 0x676   :  { %v1622_v61 = vadd.f32 %v1621_v30, %v1620_v15  ;;  %v1813_v15 = vmul.f32 %v3302_v20, %v4179_v52 }
 0x677   :  { %v1639_v44 = vsel %vm246_vm13, %v1634_v4, 0.0 }
 0x678   :  { %v1624_v59 = vadd.f32 %v1623_v37, %v1622_v61  ;;  %v1640_v43 = vadd.f32 %v1639_v44, %v1638_v18  ;;  %v1822_v21 = vmul.f32 %v1813_v15, %v1790_v60  ;;  %v1817_v61 = vrot.slane %v1813_v15, %v3932_v63 }
 0x67a   :  { %v1625_v6 = vrot.slane %v1624_v59, 4  ;;  %v1642_v11 = vadd.f32 %v1641_v0, %v1640_v43  ;;  %v1824_v49 = vrot.slane %v1822_v21, 7  ;;  %v1818_v43 = vmul.f32 %v1817_v61, %v4396_v42 }
 0x67b   :  { %v1819_v0 = vmul.f32 %v4394_v29, %v1817_v61  ;;  %v1820_v60 = vmul.f32 %v1817_v61, %v4400_v9  ;;  %v1821_v29 = vmul.f32 %v4398_v39, %v1817_v61 }
 0x67c   :  { %v1626_v47 = vadd.f32 %v1625_v6, %v1624_v59  ;;  %v1643_v46 = vrot.slane %v1642_v11, 4  ;;  %v1826_v4 = vsub.f32 %v4179_v52, %v1824_v49 }
 0x67e   :  { %v1627_v32 = vrot.slane %v1626_v47, 2  ;;  %v1644_v62 = vadd.f32 %v1643_v46, %v1642_v11  ;;  %v1830_v44 = vrot.slane %v1826_v4, %v3935_v48 }
 0x680   :  { %v1628_v41 = vadd.f32 %v1627_v32, %v1626_v47  ;;  %v1645_v25 = vrot.slane %v1644_v62, 2  ;;  %v1831_v11 = vadd.f32 %v1830_v44, %v1818_v43  ;;  %v1832_v12 = vadd.f32 %v1830_v44, %v1819_v0 }
 0x681   :  { %v1833_v47 = vadd.f32 %v1830_v44, %v1820_v60 }
 0x682   :  { %v1629_v28 = vrot.slane %v1628_v41, 1  ;;  %v1646_v33 = vadd.f32 %v1645_v25, %v1644_v62  ;;  %v1835_v9 = vmax.f32 %v1831_v11, 0.0 }
 0x684   :  { %v1630_v58 = vadd.f32 %v1629_v28, %v1628_v41  ;;  %v1647_v19 = vrot.slane %v1646_v33, 1 }
 0x686   :  { %v1631_v27 = vmul.f32 0.03125, %v1630_v58  ;;  %v1648_v55 = vadd.f32 %v1647_v19, %v1646_v33  ;;  %v1836_v58 = vmax.f32 %v1832_v12, 0.0  ;;  %v1837_v19 = vmax.f32 %v1833_v47, 0.0 }
 0x688   :  { %v1649_v22 = vmul.f32 0.03125, %v1648_v55  ;;  %v1650_v51 = vmul.f32 %v1631_v27, %v1631_v27 }
 0x68a   :  { %v1651_v3 = vsub.f32 %v1649_v22, %v1650_v51 }
 0x68c   :  { %v1652_v23 = vadd.f32 1e-05, %v1651_v3 }
 0x68e   :  { %3303 = vrsqrt.f32 %v1652_v23 }
 0x69b   :  { %v3304_v30 = vpop.eup %3303 }
 0x69c   :  { %v1654_v18 = vmul.f32 %v3304_v30, %v4179_v52 }
 0x69e   :  { %v1663_v37 = vmul.f32 %v1654_v18, %v1631_v27  ;;  %v1658_v35 = vrot.slane %v1654_v18, %v3941_v17 }
 0x6a0   :  { %v1665_v59 = vrot.slane %v1663_v37, 7  ;;  %v1659_v46 = vmul.f32 %v1658_v35, %v4424_v50  ;;  %v1660_v32 = vmul.f32 %v4422_v34, %v1658_v35  ;;  %v1661_v62 = vmul.f32 %v1658_v35, %v1609_v13 }
 0x6a1   :  { %v1662_v25 = vmul.f32 %v4432_v26, %v1658_v35  ;;  %v1834_v50 = vadd.f32 %v1830_v44, %v1821_v29 }
 0x6a2   :  { %v1667_v6 = vsub.f32 %v4179_v52, %v1665_v59 }
 0x6a3   :  { %v1838_v23 = vmax.f32 %v1834_v50, 0.0 }
 0x6a4   :  { %v1671_v41 = vrot.slane %v1667_v6, %v3948_v36 }
 0x6a6   :  { %v1672_v28 = vadd.f32 %v1671_v41, %v1659_v46  ;;  %v1673_v42 = vadd.f32 %v1671_v41, %v1660_v32  ;;  %v1674_v33 = vadd.f32 %v1671_v41, %v1661_v62  ;;  %v1675_v52 = vadd.f32 %v1671_v41, %v1662_v25  ;;  %v3114_v62 = vld [vmem:[#allocation2 + $0xf8] sm:$0xff]  }
 0x6a7   :  { %v1862_v32 = vunpack.c.h.bf16 %v4256_v56  ;;  %v3071_v41 = vunpack.c.h.bf16 %v3114_v62  ;;  %v3070_v29 = vunpack.c.l.bf16 %v3114_v62 }
 0x6a8   :  { %v1676_v27 = vmax.f32 %v1672_v28, 0.0  ;;  %v1677_v55 = vmax.f32 %v1673_v42, 0.0  ;;  %v1678_v22 = vmax.f32 %v1674_v33, 0.0  ;;  %v1679_v26 = vmax.f32 %v1675_v52, 0.0 }
 0x6a9   :  { %3215 = vmatprep.subr.mxu1 %v1862_v32 }
 0x6aa   :  { %v4460_v51 = vadd.f32 %v1837_v19, %v1678_v22  ;;  %v4462_v34 = vadd.f32 %v1835_v9, %v1676_v27  ;;  %v4464_v13 = vadd.f32 %v1836_v58, %v1677_v55  ;;  %v4476_v15 = vadd.f32 %v1838_v23, %v1679_v26  ;;  %3216 = vmatpush3.msra.mxu1 %v1862_v32  ;;  %v3113_v9 = vld [vmem:[#allocation2 + $0xf0] sm:$0xff]   ;;  %v3112_v22 = vld [vmem:[#allocation2 + $0xe8] sm:$0xff]   ;;  %v3111_v23 = vld [vmem:[#allocation2 + $0xe0] sm:$0xff]  }
 0x6ab   :  { %3217 = vmatprep.subr.mxu1 %v3071_v41  ;;  %v3067_v58 = vunpack.c.h.bf16 %v3113_v9  ;;  %v3066_v55 = vunpack.c.l.bf16 %v3113_v9  ;;  %v3063_v50 = vunpack.c.h.bf16 %v3112_v22 }
 0x6ac   :  { %1959 = vrot.lane.b32.xlu0 %v4460_v51, %s3368_s29  ;;  %1955 = vrot.lane.b32.xlu1 %v4462_v34, %s3368_s29  ;;  %v1871_v39 = vrot.slane %v4462_v34, 4  ;;  %v1872_v3 = vrot.slane %v4464_v13, 4  ;;  %v1879_v21 = vrot.slane %v4462_v34, 5  ;;  %v1880_v49 = vrot.slane %v4464_v13, 5 }
 0x6ad   :  { %v1874_v4 = vrot.slane %v4476_v15, 4  ;;  %v1887_v18 = vrot.slane %v4462_v34, 7  ;;  %v1888_v61 = vrot.slane %v4464_v13, 7  ;;  %v1882_v35 = vrot.slane %v4476_v15, 5  ;;  %3218 = vmatpush3.msra.mxu1 %v3071_v41 }
 0x6ae   :  { %v4474_v20 = vsel %vm59_vm1, %v1871_v39, %v1872_v3  ;;  %v4486_v30 = vsel %vm68_vm0, %v1879_v21, %v1880_v49  ;;  %v1873_v59 = vrot.slane %v4460_v51, 4  ;;  %v1890_v43 = vrot.slane %v4476_v15, 7  ;;  %3219 = vmatprep.subr.mxu1 %v3070_v29 }
 0x6af   :  { %v4497_v37 = vsel %vm59_vm1, %v1874_v4, %v1871_v39  ;;  %v1893_v44 = vsel %vm77_vm2, %v1887_v18, %v1888_v61  ;;  %v4509_v0 = vsel %vm68_vm0, %v1882_v35, %v1879_v21  ;;  %v1895_v6 = vrot.slane %v4462_v34, 1  ;;  %3220 = vmatpush3.msra.mxu1 %v3070_v29 }
 0x6b0   :  { %1957 = vrot.lane.b32.xlu1 %v4464_v13, %s3368_s29  ;;  %1909 = vrot.lane.b32.xlu0 %v4474_v20, %s3366_s28  ;;  %v4513_v60 = vsel %vm59_vm1, %v1872_v3, %v1873_v59  ;;  %v1896_v11 = vrot.slane %v4464_v13, 1  ;;  %v1894_v12 = vsel %vm77_vm2, %v1890_v43, %v1887_v18  ;;  %v1881_v46 = vrot.slane %v4460_v51, 5 }
 0x6b1   :  { %v1875_v25 = vsel %vm59_vm1, %v1873_v59, %v1874_v4  ;;  %v1897_v28 = vrot.slane %v4460_v51, 1  ;;  %v1863_v33 = vrot.slane %v4462_v34, 3  ;;  %v1864_v56 = vrot.slane %v4464_v13, 3  ;;  %3221 = vmatprep.subr.mxu1 %v3067_v58 }
 0x6b2   :  { %v1901_v47 = vsel %vm86_vm3, %v1895_v6, %v1896_v11  ;;  %v1884_v42 = vsel %vm68_vm0, %v1880_v49, %v1881_v46  ;;  %v1889_v27 = vrot.slane %v4460_v51, 7  ;;  %3222 = vmatpush3.msra.mxu1 %v3067_v58  ;;  %v1883_v26 = vsel %vm68_vm0, %v1881_v46, %v1882_v35 }
 0x6b3   :  { %v1900_v52 = vsel %vm86_vm3, %v1896_v11, %v1897_v28  ;;  %v4544_v19 = vsel %vm50_vm4, %v1863_v33, %v1864_v56  ;;  %v1865_v3 = vrot.slane %v4460_v51, 3  ;;  %3223 = vmatprep.subr.mxu1 %v3066_v55  ;;  %v3062_v21 = vunpack.c.l.bf16 %v3112_v22 }
 0x6b4   :  { %1961 = vrot.lane.b32.xlu1 %v4476_v15, %s3368_s29  ;;  %1925 = vrot.lane.b32.xlu0 %v4486_v30, %s3369_s30  ;;  %v1892_v39 = vsel %vm77_vm2, %v1888_v61, %v1889_v27  ;;  %v3059_v4 = vunpack.c.h.bf16 %v3111_v23  ;;  %v3058_v18 = vunpack.c.l.bf16 %v3111_v23  ;;  %v1891_v61 = vsel %vm77_vm2, %v1889_v27, %v1890_v43 }
 0x6b5   :  { %3224 = vmatpush3.msra.mxu1 %v3066_v55  ;;  %v4559_v49 = vsel %vm50_vm4, %v1864_v56, %v1865_v3  ;;  %v1866_v59 = vrot.slane %v4476_v15, 3 }
 0x6b6   :  { %3225 = vmatprep.subr.mxu1 %v3063_v50 }
 0x6b7   :  { %3226 = vmatpush3.msra.mxu1 %v3063_v50  ;;  %v1870_v43 = vsel %vm50_vm4, %v1866_v59, %v1863_v33 }
 0x6b8   :  { %1907 = vrot.lane.b32.xlu1 %v4497_v37, %s3366_s28  ;;  %1941 = vrot.lane.b32.xlu0 %v1893_v44, %s3375_s7  ;;  %v1898_v44 = vrot.slane %v4476_v15, 1 }
 0x6b9   :  { %3227 = vmatprep.subr.mxu1 %v3062_v21 }
 0x6ba   :  { %3228 = vmatpush3.msra.mxu1 %v3062_v21  ;;  %v1899_v35 = vsel %vm86_vm3, %v1897_v28, %v1898_v44 }
 0x6bb   :  { %3229 = vmatprep.subr.mxu1 %v3059_v4 }
 0x6bc   :  { %1923 = vrot.lane.b32.xlu1 %v4509_v0, %s3369_s30  ;;  %1911 = vrot.lane.b32.xlu0 %v4513_v60, %s3366_s28 }
 0x6bd   :  { %3230 = vmatpush3.msra.mxu1 %v3059_v4 }
 0x6be   :  { %3231 = vmatprep.subr.mxu1 %v3058_v18 }
 0x6bf   :  { %3232 = vmatpush3.msra.mxu1 %v3058_v18 }
 0x6c0   :  { %1939 = vrot.lane.b32.xlu1 %v1894_v12, %s3375_s7  ;;  %1971 = vrot.lane.b32.xlu0 %v1901_v47, %s3376_s8 }
 0x6c4   :  { %1913 = vrot.lane.b32.xlu1 %v1875_v25, %s3366_s28  ;;  %1927 = vrot.lane.b32.xlu0 %v1884_v42, %s3369_s30 }
 0x6c8   :  { %1973 = vrot.lane.b32.xlu1 %v1900_v52, %s3376_s8  ;;  %1987 = vrot.lane.b32.xlu0 %v4544_v19, %s3371_s4 }
 0x6cc   :  { %1929 = vrot.lane.b32.xlu1 %v1883_v26, %s3369_s30  ;;  %1943 = vrot.lane.b32.xlu0 %v1892_v39, %s3375_s7 }
 0x6d0   :  { %1989 = vrot.lane.b32.xlu1 %v4559_v49, %s3371_s4  ;;  %1999 = vrot.lane.b32.xlu0 %v4474_v20, %s3377_s9  ;;  %v1902_v20 = vsel %vm86_vm3, %v1898_v44, %v1895_v6 }
 0x6d4   :  { %1945 = vrot.lane.b32.xlu1 %v1891_v61, %s3375_s7  ;;  %2011 = vrot.lane.b32.xlu0 %v4486_v30, %s3358_s12  ;;  %v1867_v30 = vsel %vm50_vm4, %v1865_v3, %v1866_v59 }
 0x6d8   :  { %2001 = vrot.lane.b32.xlu1 %v4513_v60, %s3377_s9  ;;  %1975 = vrot.lane.b32.xlu0 %v1899_v35, %s3376_s8 }
 0x6dc   :  { %2013 = vrot.lane.b32.xlu1 %v1884_v42, %s3358_s12  ;;  %1977 = vrot.lane.b32.xlu0 %v1902_v20, %s3376_s8 }
 0x6e0   :  { %1991 = vrot.lane.b32.xlu1 %v1867_v30, %s3371_s4  ;;  %1993 = vrot.lane.b32.xlu0 %v1870_v43, %s3371_s4 }
 0x6e4   :  { %2003 = vrot.lane.b32.xlu1 %v1875_v25, %s3377_s9  ;;  %2005 = vrot.lane.b32.xlu0 %v4497_v37, %s3377_s9 }
 0x6e8   :  { %2015 = vrot.lane.b32.xlu1 %v1883_v26, %s3358_s12  ;;  %2017 = vrot.lane.b32.xlu0 %v4509_v0, %s3358_s12  ;;  %s3333_s12 = scalar_lea.vmem %s2889_s11, 32 }
 0x6e9   :  { %p3334_p5 = scmp.ne.s32.totalorder %s2889_s11, %s3333_s12  ;;  %p3339_p7 = scmp.lt.s32.totalorder %s3333_s12, %s3333_s12 }
 0x6eb   :  { %p3340_p8 = por %p3339_p7, %p3338_p6 }
 0x6ed   :  { %p3341_p9 = pnand %p3340_p8, %p3334_p5 }
 0x71e   :  { %v1960_v60 = vpop.permute.xlu0 %1959  ;;  %v1956_v6 = vpop.permute.xlu1 %1955 }
 0x722   :  { %v1958_v11 = vpop.permute.xlu1 %1957  ;;  %v1910_v12 = vpop.permute.xlu0 %1909 }
 0x723   :  { %v2024_v3 = vsel %vm246_vm13, %v4544_v19, %v1910_v12 }
 0x726   :  { %v1962_v47 = vpop.permute.xlu1 %1961  ;;  %v1926_v46 = vpop.permute.xlu0 %1925 }
 0x727   :  { %v2028_v18 = vsel %vm357_vm15, %v2024_v3, %v1926_v46 }
 0x72a   :  { %v1908_v32 = vpop.permute.xlu1 %1907  ;;  %v1942_v62 = vpop.permute.xlu0 %1941 }
 0x72b   :  { %v2023_v9 = vsel %vm246_vm13, %v1870_v43, %v1908_v32  ;;  %v2032_v44 = vsel %vm1489_vm8, %v2028_v18, %v1942_v62 }
 0x72c   :  { %v2036_v43 = vsel %vm625_vm14, %v2032_v44, %v1958_v11 }
 0x72e   :  { %v1924_v41 = vpop.permute.xlu1 %1923  ;;  %v1912_v28 = vpop.permute.xlu0 %1911 }
 0x72f   :  { %v2027_v0 = vsel %vm357_vm15, %v2023_v9, %v1924_v41 }
 0x732   :  { %v1940_v42 = vpop.permute.xlu1 %1939  ;;  %v1972_v25 = vpop.permute.xlu0 %1971 }
 0x733   :  { %v2031_v58 = vsel %vm1489_vm8, %v2027_v0, %v1940_v42 }
 0x734   :  { %v2035_v55 = vsel %vm625_vm14, %v2031_v58, %v1956_v6 }
 0x735   :  { %v2039_v26 = vsel %vm1498_vm9, %v2035_v55, %v1972_v25 }
 0x736   :  { %v1914_v33 = vpop.permute.xlu1 %1913  ;;  %v1928_v56 = vpop.permute.xlu0 %1927 }
 0x737   :  { %v2026_v42 = vsel %vm246_vm13, %v1867_v30, %v1914_v33 }
 0x73a   :  { %v1974_v37 = vpop.permute.xlu1 %1973  ;;  %v1988_v29 = vpop.permute.xlu0 %1987 }
 0x73b   :  { %v2043_v39 = vsel %vm630_vm12, %v2039_v26, %v1988_v29  ;;  %v2040_v19 = vsel %vm1498_vm9, %v2036_v43, %v1974_v37 }
 0x73e   :  { %v1930_v52 = vpop.permute.xlu1 %1929  ;;  %v1944_v27 = vpop.permute.xlu0 %1943 }
 0x73f   :  { %v2030_v29 = vsel %vm357_vm15, %v2026_v42, %v1930_v52 }
 0x742   :  { %v1990_v22 = vpop.permute.xlu1 %1989  ;;  %v2000_v50 = vpop.permute.xlu0 %1999 }
 0x743   :  { %v2047_v23 = vsel %vm1507_vm10, %v2043_v39, %v2000_v50  ;;  %v2044_v6 = vsel %vm630_vm12, %v2040_v19, %v1990_v22 }
 0x746   :  { %v1946_v21 = vpop.permute.xlu1 %1945  ;;  %v2012_v4 = vpop.permute.xlu0 %2011 }
 0x747   :  { %v2051_v61 = vsel %vm635_vm11, %v2047_v23, %v2012_v4  ;;  %v2034_v0 = vsel %vm1489_vm8, %v2030_v29, %v1946_v21 }
 0x748   :  { %v2055_v35 = vmul.f32 %v3046_v38, %v2051_v61  ;;  %v2025_v38 = vsel %vm246_vm13, %v4559_v49, %v1912_v28  ;;  %v2038_v49 = vsel %vm625_vm14, %v2034_v0, %v1962_v47 }
 0x749   :  { %v2029_v37 = vsel %vm357_vm15, %v2025_v38, %v1928_v56 }
 0x74a   :  { %v2002_v20 = vpop.permute.xlu1 %2001  ;;  %3233 = vmatprep.mubr.msk.f32.mxu1 %vm1520_vm7, %v2055_v35  ;;  %v1976_v59 = vpop.permute.xlu0 %1975  ;;  %v2033_v9 = vsel %vm1489_vm8, %v2029_v37, %v1944_v27 }
 0x74b   :  { %v2048_v12 = vsel %vm1507_vm10, %v2044_v6, %v2002_v20 }
 0x74e   :  { %v2014_v46 = vpop.permute.xlu1 %2013  ;;  %v1978_v32 = vpop.permute.xlu0 %1977 }
 0x74f   :  { %v2052_v41 = vsel %vm635_vm11, %v2048_v12, %v2014_v46  ;;  %v2042_v28 = vsel %vm1498_vm9, %v2038_v49, %v1978_v32 }
 0x750   :  { %v2056_v62 = vmul.f32 %v3047_v57, %v2052_v41  ;;  %v2037_v57 = vsel %vm625_vm14, %v2033_v9, %v1960_v60 }
 0x751   :  { %v2041_v30 = vsel %vm1498_vm9, %v2037_v57, %v1976_v59 }
 0x752   :  { %v1992_v25 = vpop.permute.xlu1 %1991  ;;  %v1994_v11 = vpop.permute.xlu0 %1993  ;;  %3234 = vmatmul.mubr.msk.f32.vlgmr.msra.gmra.mxu1 %vm1520_vm7, %v2056_v62 }
 0x753   :  { %v2045_v33 = vsel %vm630_vm12, %v2041_v30, %v1992_v25  ;;  %v2046_v56 = vsel %vm630_vm12, %v2042_v28, %v1994_v11  ;;  %vm4924_vm12 = vcmask 72704  }
 0x756   :  { %v2004_v58 = vpop.permute.xlu1 %2003  ;;  %v2006_v40 = vpop.permute.xlu0 %2005 }
 0x757   :  { %v2049_v52 = vsel %vm1507_vm10, %v2045_v33, %v2004_v58  ;;  %v2050_v27 = vsel %vm1507_vm10, %v2046_v56, %v2006_v40 }
 0x75a   :  { %v2016_v55 = vpop.permute.xlu1 %2015  ;;  %v2018_v22 = vpop.permute.xlu0 %2017 }
 0x75b   :  { %v2053_v50 = vsel %vm635_vm11, %v2049_v52, %v2016_v55  ;;  %v2054_v60 = vsel %vm635_vm11, %v2050_v27, %v2018_v22  ;;  %v1843_v27 = vld [vmem:[#allocation2 + $0x118] sm:$0x7] }
 0x75c   :  { %v2057_v47 = vmul.f32 %v3050_v8, %v2053_v50  ;;  %v2058_v26 = vmul.f32 %v3051_v2, %v2054_v60  ;;  %v4649_v55 = vunpack.c.l.bf16 %v1843_v27 }
 0x75e   :  { %3236 = vmatprep.mubr.msk.f32.mxu1 %vm1520_vm7, %v2057_v47 }
 0x75f   :  { %3237 = vmatmul.mubr.msk.f32.gmra.mxu1 %vm1520_vm7, %v2058_v26 }
 0x812   :  { %v3235_v39 = vpop.f32.mrf.mxu1 }
 0x813   :  { %v2171_v21 = vmul.f32 %v3235_v39, %v3235_v39  ;;  %v2157_v61 = vsel %vm211_vm6, %v3235_v39, 0.0 }
 0x814   :  { %v2137_v3 = vpop.f32.mrf.mxu1 }
 0x815   :  { %v2170_v23 = vmul.f32 %v2137_v3, %v2137_v3  ;;  %v2156_v4 = vsel %vm211_vm6, %v2137_v3, 0.0  ;;  %v2175_v24 = vsel %vm211_vm6, %v2171_v21, 0.0 }
 0x816   :  { %v2158_v35 = vadd.f32 %v2157_v61, %v2156_v4 }
 0x817   :  { %v2174_v44 = vsel %vm211_vm6, %v2170_v23, 0.0 }
 0x818   :  { %v2176_v43 = vadd.f32 %v2175_v24, %v2174_v44 }
 0x81f   :  { %v3238_v18 = vpop.f32.mrf.mxu1 }
 0x820   :  { %v2173_v2 = vmul.f32 %v3238_v18, %v3238_v18  ;;  %v2161_v6 = vsel %vm211_vm6, %v3238_v18, 0.0 }
 0x821   :  { %v2147_v8 = vpop.f32.mrf.mxu1 }
 0x822   :  { %v2159_v20 = vsel %vm211_vm6, %v2147_v8, 0.0  ;;  %v2172_v59 = vmul.f32 %v2147_v8, %v2147_v8  ;;  %v2179_v41 = vsel %vm211_vm6, %v2173_v2, 0.0 }
 0x823   :  { %v2160_v19 = vadd.f32 %v2159_v20, %v2158_v35 }
 0x824   :  { %v2177_v12 = vsel %vm211_vm6, %v2172_v59, 0.0 }
 0x825   :  { %v2162_v46 = vadd.f32 %v2161_v6, %v2160_v19  ;;  %v2178_v32 = vadd.f32 %v2177_v12, %v2176_v43 }
 0x827   :  { %v2163_v62 = vrot.slane %v2162_v46, 4  ;;  %v2180_v38 = vadd.f32 %v2179_v41, %v2178_v32 }
 0x829   :  { %v2164_v42 = vadd.f32 %v2163_v62, %v2162_v46  ;;  %v2181_v25 = vrot.slane %v2180_v38, 4 }
 0x82b   :  { %v2165_v11 = vrot.slane %v2164_v42, 2  ;;  %v2182_v37 = vadd.f32 %v2181_v25, %v2180_v38 }
 0x82d   :  { %v2166_v29 = vadd.f32 %v2165_v11, %v2164_v42  ;;  %v2183_v9 = vrot.slane %v2182_v37, 2 }
 0x82f   :  { %v2167_v0 = vrot.slane %v2166_v29, 1  ;;  %v2184_v58 = vadd.f32 %v2183_v9, %v2182_v37 }
 0x831   :  { %v2168_v40 = vadd.f32 %v2167_v0, %v2166_v29  ;;  %v2185_v57 = vrot.slane %v2184_v58, 1 }
 0x833   :  { %v2169_v49 = vmul.f32 0.03125, %v2168_v40  ;;  %v2186_v30 = vadd.f32 %v2185_v57, %v2184_v58 }
 0x835   :  { %v2187_v28 = vmul.f32 0.03125, %v2186_v30  ;;  %v2188_v33 = vmul.f32 %v2169_v49, %v2169_v49 }
 0x837   :  { %v2189_v56 = vsub.f32 %v2187_v28, %v2188_v33 }
 0x839   :  { %v2190_v52 = vadd.f32 1e-05, %v2189_v56 }
 0x83b   :  { %3305 = vrsqrt.f32 %v2190_v52 }
 0x848   :  { %v3306_v22 = vpop.eup %3305 }
 0x849   :  { %v2192_v50 = vmul.f32 %v3306_v22, %v4649_v55 }
 0x84b   :  { %v2201_v60 = vmul.f32 %v2192_v50, %v2169_v49  ;;  %v2196_v47 = vrot.slane %v2192_v50, %v3628_v5 }
 0x84d   :  { %v2203_v26 = vrot.slane %v2201_v60, 7  ;;  %v2197_v21 = vmul.f32 %v2196_v47, %v2137_v3  ;;  %v2198_v4 = vmul.f32 %v3235_v39, %v2196_v47  ;;  %v2199_v61 = vmul.f32 %v2196_v47, %v2147_v8 }
 0x84e   :  { %v2200_v20 = vmul.f32 %v3238_v18, %v2196_v47 }
 0x84f   :  { %v2205_v23 = vsub.f32 %v4649_v55, %v2203_v26 }
 0x851   :  { %v2209_v44 = vrot.slane %v2205_v23, %v3632_v14 }
 0x853   :  { %v2212_v35 = vadd.f32 %v2209_v44, %v2199_v61  ;;  %v2210_v24 = vadd.f32 %v2209_v44, %v2197_v21  ;;  %v2211_v2 = vadd.f32 %v2209_v44, %v2198_v4  ;;  %v2213_v6 = vadd.f32 %v2209_v44, %v2200_v20  ;;  %v2219_v21 = vld [vmem:[#allocation2 + $0x10c] sm:$0x1]  ;;  %v4738_v44 = vld [vmem:[#allocation2 + $0x108] ss:$8 sps:$4 sm:$0xff]  }
 0x854   :  { %v2221_v4 = vunpack.c.l.bf16 %v2219_v21 }
 0x855   :  { %v4655_v59 = vmax.f32 %v2212_v35, 0.0  ;;  %v4657_v43 = vmax.f32 %v2210_v24, 0.0  ;;  %v2215_v19 = vmax.f32 %v2211_v2, 0.0  ;;  %v4666_v12 = vmax.f32 %v2213_v6, 0.0 }
 0x856   :  { %3239 = vmatprep.subr.msk.mxu0 %vm268_vm5, %v2221_v4  ;;  %v2220_v35 = vunpack.c.l.bf16 %v4738_v44 }
 0x857   :  { %2318 = vrot.lane.b32.xlu0 %v4655_v59, %s3359_s13  ;;  %2314 = vrot.lane.b32.xlu1 %v4657_v43, %s3359_s13  ;;  %v2230_v39 = vrot.slane %v4657_v43, 4  ;;  %v2231_v3 = vrot.slane %v2215_v19, 4  ;;  %v2238_v18 = vrot.slane %v4657_v43, 5  ;;  %v2239_v46 = vrot.slane %v2215_v19, 5 }
 0x858   :  { %v2233_v41 = vrot.slane %v4666_v12, 4  ;;  %v2246_v62 = vrot.slane %v4657_v43, 7  ;;  %v2247_v38 = vrot.slane %v2215_v19, 7  ;;  %v2241_v11 = vrot.slane %v4666_v12, 5  ;;  %3240 = vmatpush3.msk.msra.mxu0 %vm268_vm5, %v2221_v4 }
 0x859   :  { %v2236_v8 = vsel %vm59_vm1, %v2230_v39, %v2231_v3  ;;  %v2244_v32 = vsel %vm68_vm0, %v2238_v18, %v2239_v46  ;;  %v2232_v37 = vrot.slane %v4655_v59, 4  ;;  %v2249_v29 = vrot.slane %v4666_v12, 7  ;;  %3241 = vmatprep.subr.mxu0 %v2220_v35 }
 0x85a   :  { %v4680_v42 = vsel %vm59_vm1, %v2233_v41, %v2230_v39  ;;  %v2252_v25 = vsel %vm77_vm2, %v2246_v62, %v2247_v38  ;;  %v2245_v9 = vsel %vm68_vm0, %v2241_v11, %v2238_v18  ;;  %v2254_v58 = vrot.slane %v4657_v43, 1  ;;  %3242 = vmatpush3.msra.mxu0 %v2220_v35 }
 0x85b   :  { %2316 = vrot.lane.b32.xlu1 %v2215_v19, %s3359_s13  ;;  %2268 = vrot.lane.b32.xlu0 %v2236_v8, %s3361_s22  ;;  %v2235_v0 = vsel %vm59_vm1, %v2231_v3, %v2232_v37  ;;  %v2255_v40 = vrot.slane %v2215_v19, 1  ;;  %v2253_v57 = vsel %vm77_vm2, %v2249_v29, %v2246_v62  ;;  %v2240_v30 = vrot.slane %v4655_v59, 5 }
 0x85c   :  { %v2234_v28 = vsel %vm59_vm1, %v2232_v37, %v2233_v41  ;;  %v2256_v56 = vrot.slane %v4655_v59, 1  ;;  %v2222_v52 = vrot.slane %v4657_v43, 3  ;;  %v2223_v27 = vrot.slane %v2215_v19, 3 }
 0x85d   :  { %v2260_v49 = vsel %vm86_vm3, %v2254_v58, %v2255_v40  ;;  %v2243_v33 = vsel %vm68_vm0, %v2239_v46, %v2240_v30  ;;  %v2248_v60 = vrot.slane %v4655_v59, 7  ;;  %v2242_v47 = vsel %vm68_vm0, %v2240_v30, %v2241_v11 }
 0x85e   :  { %v2259_v22 = vsel %vm86_vm3, %v2255_v40, %v2256_v56  ;;  %v4716_v50 = vsel %vm50_vm4, %v2222_v52, %v2223_v27  ;;  %v2224_v23 = vrot.slane %v4655_v59, 3  ;;  %v2257_v2 = vrot.slane %v4666_v12, 1 }
 0x85f   :  { %2320 = vrot.lane.b32.xlu1 %v4666_v12, %s3359_s13  ;;  %2284 = vrot.lane.b32.xlu0 %v2244_v32, %s3360_s21  ;;  %v2251_v26 = vsel %vm77_vm2, %v2247_v38, %v2248_v60  ;;  %v2250_v24 = vsel %vm77_vm2, %v2248_v60, %v2249_v29  ;;  %v2225_v43 = vrot.slane %v4666_v12, 3  ;;  %v2581_v19 = vunpack.c.h.bf16 %v4738_v44 }
 0x860   :  { %v4732_v61 = vsel %vm50_vm4, %v2223_v27, %v2224_v23  ;;  %v2258_v20 = vsel %vm86_vm3, %v2256_v56, %v2257_v2  ;;  %v2261_v59 = vsel %vm86_vm3, %v2257_v2, %v2254_v58  ;;  %vm4916_vm0 = vcmask 15360  }
 0x861   :  { %3249 = vmatprep.subr.mxu0 %v2581_v19  ;;  %v2226_v6 = vsel %vm50_vm4, %v2224_v23, %v2225_v43  ;;  %v2229_v39 = vsel %vm50_vm4, %v2225_v43, %v2222_v52  ;;  %vm4917_vm1 = vcmask 23552   ;;  %vm4918_vm2 = vcmask 31744   ;;  %vm4922_vm7 = vmmov %vm4916_vm0 }
 0x862   :  { %vm4919_vm3 = vcmask 39936   ;;  %vm4920_vm4 = vcmask 48128   ;;  %vm4921_vm5 = vcmask 56320   ;;  %vm4923_vm11 = vmmov %vm4917_vm1 }
 0x863   :  { %2266 = vrot.lane.b32.xlu1 %v4680_v42, %s3361_s22  ;;  %2300 = vrot.lane.b32.xlu0 %v2252_v25, %s3362_s25  ;;  %vm4925_vm15 = vmmov %vm4918_vm2 }
 0x864   :  { %vm4926_vm8 = vmmov %vm4919_vm3 }
 0x865   :  { %vm4927_vm9 = vmmov %vm4920_vm4 }
 0x866   :  { %vm4928_vm10 = vmmov %vm4921_vm5 }
 0x867   :  { %2282 = vrot.lane.b32.xlu1 %v2245_v9, %s3360_s21  ;;  %2270 = vrot.lane.b32.xlu0 %v2235_v0, %s3361_s22 }
 0x86b   :  { %2298 = vrot.lane.b32.xlu1 %v2253_v57, %s3362_s25  ;;  %2330 = vrot.lane.b32.xlu0 %v2260_v49, %s3363_s0 }
 0x86f   :  { %2272 = vrot.lane.b32.xlu1 %v2234_v28, %s3361_s22  ;;  %2286 = vrot.lane.b32.xlu0 %v2243_v33, %s3360_s21 }
 0x873   :  { %2332 = vrot.lane.b32.xlu1 %v2259_v22, %s3363_s0  ;;  %2346 = vrot.lane.b32.xlu0 %v4716_v50, %s3364_s26 }
 0x877   :  { %2288 = vrot.lane.b32.xlu1 %v2242_v47, %s3360_s21  ;;  %2302 = vrot.lane.b32.xlu0 %v2251_v26, %s3362_s25 }
 0x87b   :  { %2348 = vrot.lane.b32.xlu1 %v4732_v61, %s3364_s26  ;;  %2358 = vrot.lane.b32.xlu0 %v2236_v8, %s3365_s27 }
 0x87f   :  { %2304 = vrot.lane.b32.xlu1 %v2250_v24, %s3362_s25  ;;  %2370 = vrot.lane.b32.xlu0 %v2244_v32, %s3366_s28 }
 0x883   :  { %2360 = vrot.lane.b32.xlu1 %v2235_v0, %s3365_s27  ;;  %2334 = vrot.lane.b32.xlu0 %v2258_v20, %s3363_s0 }
 0x887   :  { %2372 = vrot.lane.b32.xlu1 %v2243_v33, %s3366_s28  ;;  %2336 = vrot.lane.b32.xlu0 %v2261_v59, %s3363_s0 }
 0x88b   :  { %2350 = vrot.lane.b32.xlu1 %v2226_v6, %s3364_s26  ;;  %2352 = vrot.lane.b32.xlu0 %v2229_v39, %s3364_s26 }
 0x88f   :  { %2362 = vrot.lane.b32.xlu1 %v2234_v28, %s3365_s27  ;;  %2364 = vrot.lane.b32.xlu0 %v4680_v42, %s3365_s27 }
 0x893   :  { %2374 = vrot.lane.b32.xlu1 %v2242_v47, %s3366_s28  ;;  %2376 = vrot.lane.b32.xlu0 %v2245_v9, %s3366_s28 }
 0x8c9   :  { %v2319_v3 = vpop.permute.xlu0 %2318  ;;  %v2315_v8 = vpop.permute.xlu1 %2314 }
 0x8cd   :  { %v2317_v12 = vpop.permute.xlu1 %2316  ;;  %v2269_v18 = vpop.permute.xlu0 %2268 }
 0x8ce   :  { %v2383_v27 = vsel %vm211_vm6, %v4716_v50, %v2269_v18 }
 0x8d1   :  { %v2321_v46 = vpop.permute.xlu1 %2320  ;;  %v2285_v1 = vpop.permute.xlu0 %2284 }
 0x8d2   :  { %v2387_v26 = vsel %vm4922_vm7, %v2383_v27, %v2285_v1 }
 0x8d5   :  { %v2267_v32 = vpop.permute.xlu1 %2266  ;;  %v2301_v41 = vpop.permute.xlu0 %2300 }
 0x8d6   :  { %v2382_v58 = vsel %vm211_vm6, %v2229_v39, %v2267_v32  ;;  %v2391_v21 = vsel %vm4923_vm11, %v2387_v26, %v2301_v41 }
 0x8d7   :  { %v2395_v2 = vsel %vm4925_vm15, %v2391_v21, %v2317_v12 }
 0x8d9   :  { %v2283_v62 = vpop.permute.xlu1 %2282  ;;  %v2271_v38 = vpop.permute.xlu0 %2270 }
 0x8da   :  { %v2386_v9 = vsel %vm4916_vm0, %v2382_v58, %v2283_v62  ;;  %vm4929_vm0 = vmmov %vm4924_vm12 }
 0x8dd   :  { %v2299_v25 = vpop.permute.xlu1 %2298  ;;  %v2331_v11 = vpop.permute.xlu0 %2330 }
 0x8de   :  { %v2390_v40 = vsel %vm4917_vm1, %v2386_v9, %v2299_v25  ;;  %vm4930_vm1 = vmmov %vm4922_vm7 }
 0x8df   :  { %v2394_v30 = vsel %vm4918_vm2, %v2390_v40, %v2315_v8  ;;  %vm4931_vm2 = vmmov %vm4930_vm1 }
 0x8e0   :  { %v2398_v56 = vsel %vm4919_vm3, %v2394_v30, %v2331_v11  ;;  %vm4932_vm3 = vmmov %vm4923_vm11 }
 0x8e1   :  { %v2273_v37 = vpop.permute.xlu1 %2272  ;;  %v2287_v29 = vpop.permute.xlu0 %2286  ;;  %vm4936_vm11 = vmmov %vm4926_vm8 }
 0x8e2   :  { %v2385_v1 = vsel %vm211_vm6, %v2226_v6, %v2273_v37 }
 0x8e5   :  { %v2333_v0 = vpop.permute.xlu1 %2332  ;;  %v2347_v42 = vpop.permute.xlu0 %2346 }
 0x8e6   :  { %v2402_v52 = vsel %vm4920_vm4, %v2398_v56, %v2347_v42  ;;  %v2399_v50 = vsel %vm4926_vm8, %v2395_v2, %v2333_v0  ;;  %vm4933_vm4 = vmmov %vm4932_vm3 }
 0x8e9   :  { %v2289_v57 = vpop.permute.xlu1 %2288  ;;  %v2303_v49 = vpop.permute.xlu0 %2302 }
 0x8ea   :  { %v2389_v62 = vsel %vm4931_vm2, %v2385_v1, %v2289_v57 }
 0x8ed   :  { %v2349_v28 = vpop.permute.xlu1 %2348  ;;  %v2359_v33 = vpop.permute.xlu0 %2358 }
 0x8ee   :  { %v2406_v22 = vsel %vm4921_vm5, %v2402_v52, %v2359_v33  ;;  %v2403_v20 = vsel %vm4927_vm9, %v2399_v50, %v2349_v28  ;;  %vm4934_vm5 = vmmov %vm4925_vm15 }
 0x8ef   :  { %vm4935_vm7 = vmmov %vm4934_vm5 }
 0x8f0   :  { %vm4938_vm15 = vmmov %vm4927_vm9 }
 0x8f1   :  { %v2305_v60 = vpop.permute.xlu1 %2304  ;;  %v2371_v47 = vpop.permute.xlu0 %2370 }
 0x8f2   :  { %v2410_v23 = vsel %vm246_vm13, %v2406_v22, %v2371_v47  ;;  %v2393_v10 = vsel %vm4933_vm4, %v2389_v62, %v2305_v60 }
 0x8f3   :  { %v2414_v4 = vmul.f32 %v2934_v16, %v2410_v23  ;;  %v2384_v16 = vsel %vm211_vm6, %v4732_v61, %v2271_v38  ;;  %v2397_v38 = vsel %vm4935_vm7, %v2393_v10, %v2321_v46 }
 0x8f4   :  { %v2388_v41 = vsel %vm4930_vm1, %v2384_v16, %v2287_v29  ;;  %vm4942_vm1 = vmmov %vm4929_vm0 }
 0x8f5   :  { %v2361_v35 = vpop.permute.xlu1 %2360  ;;  %3243 = vmatprep.mubr.msk.f32.mxu0 %vm4924_vm12, %v2414_v4  ;;  %v2335_v24 = vpop.permute.xlu0 %2334  ;;  %v2392_v25 = vsel %vm4932_vm3, %v2388_v41, %v2303_v49  ;;  %vm4937_vm12 = vmmov %vm4926_vm8 }
 0x8f6   :  { %v2407_v59 = vsel %vm4928_vm10, %v2403_v20, %v2361_v35  ;;  %v2396_v6 = vsel %vm4934_vm5, %v2392_v25, %v2319_v3  ;;  %vm4939_vm8 = vmmov %vm4927_vm9 }
 0x8f7   :  { %v2400_v11 = vsel %vm4936_vm11, %v2396_v6, %v2335_v24  ;;  %vm4940_vm9 = vmmov %vm4928_vm10 }
 0x8f8   :  { %vm4941_vm10 = vmmov %vm4940_vm9 }
 0x8f9   :  { %v2373_v43 = vpop.permute.xlu1 %2372  ;;  %v2337_v39 = vpop.permute.xlu0 %2336 }
 0x8fa   :  { %v2411_v8 = vsel %vm246_vm13, %v2407_v59, %v2373_v43  ;;  %v2401_v37 = vsel %vm4937_vm12, %v2397_v38, %v2337_v39 }
 0x8fb   :  { %v2415_v18 = vmul.f32 %v2935_v31, %v2411_v8 }
 0x8fd   :  { %v2351_v32 = vpop.permute.xlu1 %2350  ;;  %v2353_v12 = vpop.permute.xlu0 %2352  ;;  %3244 = vmatmul.mubr.msk.f32.vlgmr.msra.gmra.mxu0 %vm4929_vm0, %v2415_v18 }
 0x8fe   :  { %3250 = vmatpush3.msra.mxu0 %v2581_v19  ;;  %v2404_v29 = vsel %vm4938_vm15, %v2400_v11, %v2351_v32  ;;  %v2405_v44 = vsel %vm4939_vm8, %v2401_v37, %v2353_v12 }
 0x8ff   :  { %3257 = vmatprep.subr.mxu0 %v3367_v7 }
 0x901   :  { %v2363_v31 = vpop.permute.xlu1 %2362  ;;  %v2365_v61 = vpop.permute.xlu0 %2364 }
 0x902   :  { %v2408_v19 = vsel %vm4940_vm9, %v2404_v29, %v2363_v31  ;;  %v2409_v0 = vsel %vm4941_vm10, %v2405_v44, %v2365_v61 }
 0x905   :  { %v2375_v42 = vpop.permute.xlu1 %2374  ;;  %v2377_v58 = vpop.permute.xlu0 %2376 }
 0x906   :  { %v2412_v9 = vsel %vm246_vm13, %v2408_v19, %v2375_v42  ;;  %v2413_v3 = vsel %vm246_vm13, %v2409_v0, %v2377_v58 }
 0x907   :  { %v2416_v46 = vmul.f32 %v2938_v53, %v2412_v9  ;;  %v2417_v40 = vmul.f32 %v2939_v54, %v2413_v3 }
 0x909   :  { %3246 = vmatprep.mubr.msk.f32.mxu0 %vm4929_vm0, %v2416_v46 }
 0x90a   :  { %3247 = vmatmul.mubr.msk.f32.gmra.mxu0 %vm4942_vm1, %v2417_v40 }
 0x90b   :  { %3251 = vmatprep.mubr.msk.f32.mxu0 %vm246_vm13, %v4462_v34 }
 0x90e   :  { %3252 = vmatmul.mubr.msk.f32.vlgmr.msra.gmra.mxu0 %vm246_vm13, %v4464_v13 }
 0x90f   :  { %3254 = vmatprep.mubr.msk.f32.mxu0 %vm246_vm13, %v4460_v51 }
 0x912   :  { %3255 = vmatmul.mubr.msk.f32.gmra.mxu0 %vm246_vm13, %v4476_v15  ;;  %vm2854_vm13 = vcmask 58368  }
 0x9bd   :  { %v4826_v53 = vpop.f32.mrf.mxu0 }
 0x9be   :  { %v2533_v57 = vmul.f32 %v4826_v53, %v4826_v53  ;;  %v2519_v51 = vsel %vm211_vm6, %v4826_v53, 0.0 }
 0x9bf   :  { %v4828_v45 = vpop.f32.mrf.mxu0 }
 0x9c0   :  { %v2532_v54 = vmul.f32 %v4828_v45, %v4828_v45  ;;  %v2518_v34 = vsel %vm211_vm6, %v4828_v45, 0.0  ;;  %v2537_v28 = vsel %vm211_vm6, %v2533_v57, 0.0 }
 0x9c1   :  { %v2520_v49 = vadd.f32 %v2519_v51, %v2518_v34 }
 0x9c2   :  { %v2536_v15 = vsel %vm211_vm6, %v2532_v54, 0.0 }
 0x9c3   :  { %v2538_v27 = vadd.f32 %v2537_v28, %v2536_v15 }
 0x9ca   :  { %v4836_v13 = vpop.f32.mrf.mxu0 }
 0x9cb   :  { %v2535_v33 = vmul.f32 %v4836_v13, %v4836_v13  ;;  %v2523_v47 = vsel %vm211_vm6, %v4836_v13, 0.0 }
 0x9cc   :  { %v4841_v30 = vpop.f32.mrf.mxu0 }
 0x9cd   :  { %v2521_v56 = vsel %vm211_vm6, %v4841_v30, 0.0  ;;  %v2534_v52 = vmul.f32 %v4841_v30, %v4841_v30  ;;  %v2541_v35 = vsel %vm211_vm6, %v2535_v33, 0.0 }
 0x9ce   :  { %v2522_v22 = vadd.f32 %v2521_v56, %v2520_v49  ;;  %v4850_v60 = vpop.f32.mrf.mxu0 }
 0x9cf   :  { %v2539_v26 = vsel %vm211_vm6, %v2534_v52, 0.0  ;;  %v2690_v24 = vmul.f32 %v4850_v60, %v4850_v60  ;;  %v2676_v39 = vsel %vm211_vm6, %v4850_v60, 0.0 }
 0x9d0   :  { %v2524_v23 = vadd.f32 %v2523_v47, %v2522_v22  ;;  %v2540_v21 = vadd.f32 %v2539_v26, %v2538_v27  ;;  %v4855_v4 = vpop.f32.mrf.mxu0 }
 0x9d1   :  { %v2675_v2 = vsel %vm211_vm6, %v4855_v4, 0.0  ;;  %v2689_v50 = vmul.f32 %v4855_v4, %v4855_v4  ;;  %v2694_v12 = vsel %vm211_vm6, %v2690_v24, 0.0 }
 0x9d2   :  { %v2525_v20 = vrot.slane %v2524_v23, 4  ;;  %v2542_v59 = vadd.f32 %v2541_v35, %v2540_v21  ;;  %v4864_v43 = vpop.f32.mrf.mxu0  ;;  %v2677_v1 = vadd.f32 %v2676_v39, %v2675_v2 }
 0x9d3   :  { %v2693_v8 = vsel %vm211_vm6, %v2689_v50, 0.0  ;;  %v2692_v41 = vmul.f32 %v4864_v43, %v4864_v43  ;;  %v2680_v38 = vsel %vm211_vm6, %v4864_v43, 0.0 }
 0x9d4   :  { %v2526_v18 = vadd.f32 %v2525_v20, %v2524_v23  ;;  %v2543_v16 = vrot.slane %v2542_v59, 4  ;;  %v2666_v32 = vpop.f32.mrf.mxu0  ;;  %v2695_v61 = vadd.f32 %v2694_v12, %v2693_v8 }
 0x9d5   :  { %v2678_v62 = vsel %vm211_vm6, %v2666_v32, 0.0  ;;  %v2691_v25 = vmul.f32 %v2666_v32, %v2666_v32  ;;  %v2698_v0 = vsel %vm211_vm6, %v2692_v41, 0.0 }
 0x9d6   :  { %v2527_v10 = vrot.slane %v2526_v18, 2  ;;  %v2544_v31 = vadd.f32 %v2543_v16, %v2542_v59  ;;  %v2679_v6 = vadd.f32 %v2678_v62, %v2677_v1 }
 0x9d7   :  { %v2696_v11 = vsel %vm211_vm6, %v2691_v25, 0.0  ;;  %vm3378_vm6 = vmmov 0  }
 0x9d8   :  { %v2528_v37 = vadd.f32 %v2527_v10, %v2526_v18  ;;  %v2545_v29 = vrot.slane %v2544_v31, 2  ;;  %v2681_v44 = vadd.f32 %v2680_v38, %v2679_v6  ;;  %v2697_v19 = vadd.f32 %v2696_v11, %v2695_v61  ;;  %3265 = vmatprep.mubr.msk.f32.mxu0 %vm3378_vm6, %v3367_v7 }
 0x9da   :  { %v2529_v42 = vrot.slane %v2528_v37, 1  ;;  %v2546_v58 = vadd.f32 %v2545_v29, %v2544_v31  ;;  %v2682_v9 = vrot.slane %v2681_v44, 4  ;;  %v2699_v3 = vadd.f32 %v2698_v0, %v2697_v19 }
 0x9dc   :  { %v2530_v46 = vadd.f32 %v2529_v42, %v2528_v37  ;;  %v2547_v40 = vrot.slane %v2546_v58, 1  ;;  %v2683_v54 = vadd.f32 %v2682_v9, %v2681_v44  ;;  %v2700_v57 = vrot.slane %v2699_v3, 4 }
 0x9de   :  { %v2531_v34 = vmul.f32 0.03125, %v2530_v46  ;;  %v2548_v51 = vadd.f32 %v2547_v40, %v2546_v58  ;;  %v2684_v15 = vrot.slane %v2683_v54, 2  ;;  %v2701_v49 = vadd.f32 %v2700_v57, %v2699_v3 }
 0x9e0   :  { %v2549_v28 = vmul.f32 0.03125, %v2548_v51  ;;  %v2550_v33 = vmul.f32 %v2531_v34, %v2531_v34  ;;  %v2685_v56 = vadd.f32 %v2684_v15, %v2683_v54  ;;  %v2702_v52 = vrot.slane %v2701_v49, 2  ;;  %v3116_v15 = vld [vmem:[#allocation2 + $0x128] sm:$0xff]  }
 0x9e2   :  { %v2551_v27 = vsub.f32 %v2549_v28, %v2550_v33  ;;  %v2686_v22 = vrot.slane %v2685_v56, 1  ;;  %v2703_v47 = vadd.f32 %v2702_v52, %v2701_v49  ;;  %v3079_v49 = vunpack.c.h.bf16 %v3116_v15  ;;  %v3115_v28 = vld [vmem:[#allocation2 + $0x120] sm:$0xff]  }
 0x9e3   :  { %v3078_v33 = vunpack.c.l.bf16 %v3116_v15 }
 0x9e4   :  { %v2552_v26 = vadd.f32 1e-05, %v2551_v27  ;;  %v2687_v23 = vadd.f32 %v2686_v22, %v2685_v56  ;;  %v2704_v21 = vrot.slane %v2703_v47, 1  ;;  %v3075_v22 = vunpack.c.h.bf16 %v3115_v28 }
 0x9e6   :  { %3307 = vrsqrt.f32 %v2552_v26  ;;  %v2688_v35 = vmul.f32 0.03125, %v2687_v23  ;;  %v2705_v24 = vadd.f32 %v2704_v21, %v2703_v47  ;;  %v3074_v26 = vunpack.c.l.bf16 %v3115_v28  ;;  %v2743_v23 = vld [vmem:[#allocation2 + $0x138] sm:$0x1] }
 0x9e8   :  { %v2706_v2 = vmul.f32 0.03125, %v2705_v24  ;;  %v2707_v50 = vmul.f32 %v2688_v35, %v2688_v35 }
 0x9ea   :  { %v2708_v20 = vsub.f32 %v2706_v2, %v2707_v50  ;;  %v2744_v2 = vunpack.c.l.bf16 %v2743_v23 }
 0x9ec   :  { %v2709_v59 = vadd.f32 1e-05, %v2708_v20  ;;  %v2741_v20 = vld [vmem:[#allocation2 + $0x130] sm:$0x3] }
 0x9ee   :  { %3309 = vrsqrt.f32 %v2709_v59  ;;  %v2742_v59 = vunpack.c.l.bf16 %v2741_v20 }
 0x9f3   :  { %v3308_v39 = vpop.eup %3307 }
 0x9f4   :  { %v2554_v8 = vmul.f32 %v3308_v39, %v4649_v55  ;;  %v2780_v39 = vrot.slane %v2742_v59, %v3628_v5 }
 0x9f6   :  { %v2563_v18 = vmul.f32 %v2554_v8, %v2531_v34  ;;  %v2558_v62 = vrot.slane %v2554_v8, %v3941_v17 }
 0x9f8   :  { %v2565_v16 = vrot.slane %v2563_v18, 7  ;;  %v2561_v6 = vmul.f32 %v2558_v62, %v4841_v30  ;;  %v2562_v38 = vmul.f32 %v4836_v13, %v2558_v62  ;;  %v2559_v58 = vmul.f32 %v2558_v62, %v4828_v45 }
 0x9fa   :  { %v2567_v12 = vsub.f32 %v4649_v55, %v2565_v16 }
 0x9fb   :  { %v3310_v1 = vpop.eup %3309 }
 0x9fc   :  { %v2711_v41 = vmul.f32 %v3310_v1, %v4649_v55  ;;  %v2571_v10 = vrot.slane %v2567_v12, %v3948_v36 }
 0x9fe   :  { %v2720_v25 = vmul.f32 %v2711_v41, %v2688_v35  ;;  %v2715_v31 = vrot.slane %v2711_v41, %v3932_v63  ;;  %v2574_v37 = vadd.f32 %v2571_v10, %v2561_v6  ;;  %v2575_v44 = vadd.f32 %v2571_v10, %v2562_v38 }
 0x9ff   :  { %v2560_v63 = vmul.f32 %v4826_v53, %v2558_v62  ;;  %v2572_v46 = vadd.f32 %v2571_v10, %v2559_v58  ;;  %v2874_v38 = vrot.slane %v2742_v59, %v3632_v14 }
 0xa00   :  { %v2722_v61 = vrot.slane %v2720_v25, 7  ;;  %v2718_v29 = vmul.f32 %v2715_v31, %v2666_v32  ;;  %v2719_v0 = vmul.f32 %v4864_v43, %v2715_v31  ;;  %v2717_v42 = vmul.f32 %v4850_v60, %v2715_v31 }
 0xa01   :  { %v2716_v36 = vmul.f32 %v2715_v31, %v4855_v4  ;;  %v2578_v32 = vmax.f32 %v2574_v37, 0.0  ;;  %v2579_v54 = vmax.f32 %v2575_v44, 0.0  ;;  %v2576_v53 = vmax.f32 %v2572_v46, 0.0 }
 0xa02   :  { %v2724_v11 = vsub.f32 %v4649_v55, %v2722_v61  ;;  %v2573_v55 = vadd.f32 %v2571_v10, %v2560_v63 }
 0xa04   :  { %v2728_v19 = vrot.slane %v2724_v11, %v3935_v48  ;;  %v2577_v4 = vmax.f32 %v2573_v55, 0.0 }
 0xa06   :  { %v2731_v30 = vadd.f32 %v2728_v19, %v2718_v29  ;;  %v2732_v9 = vadd.f32 %v2728_v19, %v2719_v0  ;;  %v2730_v13 = vadd.f32 %v2728_v19, %v2717_v42  ;;  %v2729_v3 = vadd.f32 %v2728_v19, %v2716_v36 }
 0xa07   :  { %v2879_v29 = vrot.slane %v2742_v59, %v3941_v17 }
 0xa08   :  { %v2735_v40 = vmax.f32 %v2731_v30, 0.0  ;;  %v2736_v48 = vmax.f32 %v2732_v9, 0.0  ;;  %v2734_v34 = vmax.f32 %v2730_v13, 0.0  ;;  %v2733_v60 = vmax.f32 %v2729_v3, 0.0 }
 0xa0a   :  { %v2740_v57 = vadd.f32 %v2736_v48, %v2579_v54  ;;  %v2739_v43 = vadd.f32 %v2735_v40, %v2578_v32  ;;  %v2738_v51 = vadd.f32 %v2734_v34, %v2577_v4  ;;  %v2737_v45 = vadd.f32 %v2733_v60, %v2576_v53 }
 0xa0c   :  { %2770 = vperm.xlu1 %3292, %v2740_v57   ;;  %2765 = vperm.xlu0 %3291, %v2739_v43  }
 0xa10   :  { %2760 = vperm.xlu1 %3292, %v2738_v51   ;;  %2755 = vperm.xlu0 %3291, %v2737_v45  }
 0xa87   :  { %v2771_v56 = vpop.permute.xlu1 %2770  ;;  %v2766_v52 = vpop.permute.xlu0 %2765 }
 0xa88   :  { %v2776_v27 = vmul.f32 %v3079_v49, %v2771_v56  ;;  %v2775_v47 = vmul.f32 %v3078_v33, %v2766_v52 }
 0xa8a   :  { %3258 = vmatpush3.msra.mxu0 %v2776_v27 }
 0xa8b   :  { %3259 = vmatprep.subr.mxu0 %v3367_v7  ;;  %v2761_v21 = vpop.permute.xlu1 %2760  ;;  %v2756_v35 = vpop.permute.xlu0 %2755 }
 0xa8c   :  { %v2774_v24 = vmul.f32 %v3075_v22, %v2761_v21  ;;  %3260 = vmatpush3.msra.mxu0 %v2775_v47  ;;  %v2773_v50 = vmul.f32 %v3074_v26, %v2756_v35 }
 0xa8d   :  { %3261 = vmatprep.subr.mxu0 %v3367_v7 }
 0xa8e   :  { %3262 = vmatpush3.msra.mxu0 %v2774_v24 }
 0xa8f   :  { %3263 = vmatprep.subr.mxu0 %v3367_v7 }
 0xa90   :  { %3264 = vmatpush3.msra.mxu0 %v2773_v50 }
 0xa91   :  { %3266 = vmatmul.mubr.msk.f32.vlgmr.msra.gmra.mxu0 %vm625_vm14, %v2744_v2 }
 0xb51   :  { %v2850_v8 = vpop.f32.mrf.mxu0 }
 0xb52   :  { %v2851_v18 = vadd.f32 %v2850_v8, %v2780_v39 }
 0xb53   :  { %v3267_v16 = vpop.f32.mrf.mxu0 }
 0xb54   :  { %v2855_v1 = vsel %vm2854_vm13, %v2851_v18, 0.0  ;;  %v2860_v12 = vmul.f32 %v2851_v18, %v2851_v18 }
 0xb55   :  { %2856 = vadd.xlane.f32.xlu1 %v2855_v1 }
 0xb56   :  { %v2861_v41 = vsel %vm2854_vm13, %v2860_v12, 0.0 }
 0xb57   :  { %2862 = vadd.xlane.f32.xlu0 %v2861_v41 }
 0xbde   :  { %v2857_v62 = vpop.xlane.xlu1 %2856 }
 0xbdf   :  { %v2859_v7 = vmul.f32 0.125, %v2857_v62 }
 0xbe0   :  { %v2863_v25 = vpop.xlane.xlu0 %2862 }
 0xbe1   :  { %v2865_v10 = vmul.f32 %v2859_v7, %v2859_v7  ;;  %v2864_v31 = vmul.f32 0.125, %v2863_v25  ;;  %v2867_v5 = vsub.f32 %v2851_v18, %v2859_v7 }
 0xbe3   :  { %v2866_v61 = vsub.f32 %v2864_v31, %v2865_v10 }
 0xbe5   :  { %v2868_v6 = vadd.f32 1e-05, %v2866_v61 }
 0xbe7   :  { %3311 = vrsqrt.f32 %v2868_v6 }
 0xbf4   :  { %v3312_v11 = vpop.eup %3311 }
 0xbf5   :  { %v2870_v37 = vmul.f32 %v3312_v11, %v2867_v5 }
 0xbf7   :  { %v2875_v44 = vmul.f32 %v2874_v38, %v2870_v37 }
 0xbf9   :  { %v2880_v19 = vadd.f32 %v2879_v29, %v2875_v44 }
 0xbfb   :  { %2881 = vst.msk [vmem:[#allocation5] sm:$0x3] %vm2854_vm13, %v2880_v19 }
 0xbfc   :  { %3344 = shalt.err (!%p3341_p9)
}
 0xbfd   :  { %2891 = dma.vmem_to_hbm [thread:$0]  %s2889_s11, 32, %s4908_s2, [#allocation4]  }
 0xbfe   :  { %3355 = dma.done.wait [#allocation4], 32  }
 0xbff   :  { %3356 = vsyncadd [#allocation4], 4294967264 }
 0xc00   :  { %2895 = vsyncpa [#allocation3], 1 }
 0xc01   :  { %2896 = vsyncpa [#allocation4], 1 }

</bundles_post_ra>
